<compile_context>
chip_gen: v7x
topology: tpu7x:2x2x1
jax: 0.10.0
libtpu: 0.0.40
codegen_flags: <defaults>
</compile_context>

<pallas_src>
import numpy as np
import jax
import jax.numpy as jnp
from jax import lax
from jax.experimental import pallas as pl
from jax.experimental.pallas import tpu as pltpu

MULT = 500.0       # sharp-sigmoid multiplier
N_TH = 15          # len(thresholds)
N_KERNELS = 20
KSIZE = 5
BN_EPS = 1e-5
POOL = 3


def _round_up(x, m):
    return (x + m - 1) // m * m


# --------------------------------------------------------------------------- #
# channel bookkeeping (reproduces the `output[:, ch * i]` last-write-wins bug) #
# --------------------------------------------------------------------------- #

def _active_channels():
    """Only 22 of the 45 stacked channels are ever written:
       even channels 0,2,...,28  <- source ch 2, threshold th[c//2]
       odd  channels 1,3,...,13  <- source ch 1, threshold th[c]
    Returns (orig_idx, src_idx, th_idx) arrays of length 22 (our chosen order)."""
    orig, src, thi = [], [], []
    for c in range(0, 29, 2):
        orig.append(c); src.append(2); thi.append(c // 2)
    for c in range(1, 14, 2):
        orig.append(c); src.append(1); thi.append(c)
    return np.array(orig), np.array(src), np.array(thi)


# --------------------------------------------------------------------------- #
# parameters                                                                   #
# --------------------------------------------------------------------------- #

def init_raw_params(key):
    ks = jax.random.split(key, 6)
    return dict(
        w_conv=np.asarray(0.05 * jax.random.normal(ks[0], (N_KERNELS, 3 * N_TH, KSIZE, KSIZE))),
        b_conv=np.asarray(0.05 * jax.random.normal(ks[1], (N_KERNELS,))),
        gamma=np.asarray(1.0 + 0.1 * jax.random.normal(ks[2], (N_KERNELS,))),
        beta=np.asarray(0.1 * jax.random.normal(ks[3], (N_KERNELS,))),
        w_fc=np.asarray(0.1 * jax.random.normal(ks[4], (10, N_KERNELS))),
        b_fc=np.asarray(0.1 * jax.random.normal(ks[5], (10,))),
    )


def pack_params(raw, H, W):
    """Host-side (numpy) repack of the torch-style params into kernel operands."""
    th = np.linspace(0.07, 0.93, N_TH).astype(np.float32)
    orig, src, thi = _active_channels()
    C = len(orig)                                     # 22 live channels
    Hp, Wp = H // POOL, W // POOL
    Ho, Wo = Hp - KSIZE + 1, Wp - KSIZE + 1
    NPIX = Hp * Wp
    NCOL = Ho * Wo * N_KERNELS
    NCOLP = _round_up(NCOL, 128)                      # lane-dense padding: 500 -> 512

    # per-lane thresholds, in the same 22-channel order used for T rows / x22 slabs
    th_flat = np.repeat(th[thi].astype(np.float32), NPIX)[None, :]        # (1, C*NPIX)

    # Toeplitz conv matrix: row = c*NPIX + hp*Wp + wp, col = (ho*Wo+wo)*20 + n  (cols zero-padded)
    w_act = raw["w_conv"].astype(np.float32)[:, orig]                     # (20, 22, 5, 5)
    T = np.zeros((C * NPIX, NCOLP), np.float32)
    for ho in range(Ho):
        for wo in range(Wo):
            m = ho * Wo + wo
            for ki in range(KSIZE):
                for kj in range(KSIZE):
                    rows = np.arange(C) * NPIX + (ho + ki) * Wp + (wo + kj)
                    cols = m * N_KERNELS + np.arange(N_KERNELS)
                    T[np.ix_(rows, cols)] = w_act[:, :, ki, kj].T         # [c, n]
    b_row = np.zeros((1, NCOLP), np.float32)
    b_row[0, :NCOL] = np.tile(raw["b_conv"].astype(np.float32), Ho * Wo)
    Pn = np.zeros((NCOLP, N_KERNELS), np.float32)                         # channel indicator
    Pn[:NCOL] = np.tile(np.eye(N_KERNELS, dtype=np.float32), (Ho * Wo, 1))

    return dict(
        dims=(Hp, Wp, Ho, Wo, NPIX, NCOL, NCOLP),
        src=src,                                             # slab order for in-kernel expansion
        th=jnp.asarray(th_flat),
        t=jnp.asarray(T, dtype=jnp.bfloat16),                # bf16 MXU operand, f32 accumulate
        b_row=jnp.asarray(b_row),
        gamma=jnp.asarray(raw["gamma"].astype(np.float32)[None, :]),
        beta=jnp.asarray(raw["beta"].astype(np.float32)[None, :]),
        pn=jnp.asarray(Pn),
        pnt=jnp.asarray(np.ascontiguousarray(Pn.T)),
        w_fc=jnp.asarray(np.ascontiguousarray(raw["w_fc"].astype(np.float32).T)),  # (20, 10)
        b_fc=jnp.asarray(raw["b_fc"].astype(np.float32)[None, :]),
    )


# --------------------------------------------------------------------------- #
# fused kernel                                                                 #
# --------------------------------------------------------------------------- #

def _make_kernel(src_order, npix, n_valid, inv_spatial, inv_bn_count, tb):
    def kernel(x_ref, th_ref, t_ref, brow_ref, g_ref, bt_ref,
               pn_ref, pnt_ref, wfc_ref, bfc_ref, o_ref, y_all):
        bi = pl.program_id(0)

        # ---- quantize: lane-tile the two pooled source slabs into the 22 live channels ----
        pooled = x_ref[...]                                   # (TB, 2*NPIX) f32, already pooled
        p1 = pooled[:, :npix]                                 # src ch 1
        p2 = pooled[:, npix:]                                 # src ch 2
        x22 = jnp.concatenate([p2 if s == 2 else p1 for s in src_order], axis=-1)  # (TB, C*NPIX)
        z = (x22 - th_ref[...]) * MULT
        q = 1.0 / (1.0 + jnp.exp(-z))                         # EUP exp; saturates to exact 0 / 1

        # ---- conv1 as a single Toeplitz matmul (bf16 operands, f32 accumulation) ----
        y = jnp.dot(q.astype(jnp.bfloat16), t_ref[...],
                    preferred_element_type=jnp.float32) + brow_ref[...]            # (TB, NCOLP)
        row0 = pl.multiple_of(bi * tb, tb)
        y_all[pl.ds(row0, tb), :] = y                          # aligned full-tile store

        # ---- last step: BN (training-mode global batch stats) + sigmoid + pool + fc + lsm ----
        @pl.when(bi == pl.num_programs(0) - 1)
        def _():
            yf = y_all[...]                                                        # (B_pad, NCOLP)
            valid = lax.broadcasted_iota(jnp.int32, (yf.shape[0], 1), 0) < n_valid
            ym = jnp.where(valid, yf, 0.0)                     # mask padded batch rows out of stats
            mean = jnp.dot(jnp.sum(ym, axis=0, keepdims=True), pn_ref[...],
                           preferred_element_type=jnp.float32) * inv_bn_count      # (1, 20)
            mean_bc = jnp.dot(mean, pnt_ref[...],
                              preferred_element_type=jnp.float32)                  # (1, NCOLP)
            d = yf - mean_bc
            dm = jnp.where(valid, d, 0.0)
            var = jnp.dot(jnp.sum(dm * dm, axis=0, keepdims=True), pn_ref[...],
                          preferred_element_type=jnp.float32) * inv_bn_count       # (1, 20)
            scale = g_ref[...] * lax.rsqrt(var + BN_EPS)                           # (1, 20)
            scale_bc = jnp.dot(scale, pnt_ref[...],
                               preferred_element_type=jnp.float32)                 # (1, NCOLP)
            beta_bc = jnp.dot(bt_ref[...], pnt_ref[...],
                              preferred_element_type=jnp.float32)                  # (1, NCOLP)
            # nn.Sigmoid on the normalized activations (reuses d; no shift_bc matmul)
            s = 1.0 / (1.0 + jnp.exp(-(d * scale_bc + beta_bc)))                   # (B_pad, NCOLP)
            # AdaptiveAvgPool2d((1,1)) + Flatten: mean over Ho*Wo per channel (pad cols are 0 rows
            # of Pn, so they contribute nothing)
            pooled2 = jnp.dot(s, pn_ref[...],
                              preferred_element_type=jnp.float32) * inv_spatial    # (B_pad, 20)
            # fc2 + LogSoftmax(dim=1)
            zz = jnp.dot(pooled2, wfc_ref[...],
                         preferred_element_type=jnp.float32) + bfc_ref[...]        # (B_pad, 10)
            mx = jnp.max(zz, axis=-1, keepdims=True)
            lse = mx + jnp.log(jnp.sum(jnp.exp(zz - mx), axis=-1, keepdims=True))
            o_ref[...] = zz - lse

    return kernel


# --------------------------------------------------------------------------- #
# forward                                                                      #
# --------------------------------------------------------------------------- #

def net_forward(x, packed, tb_max=None):
    """x: (B, 3, H, W) float32 NCHW -> (B, 10) log-probabilities."""
    B = x.shape[0]
    Hp, Wp, Ho, Wo, NPIX, NCOL, NCOLP = packed["dims"]

    # Wrapper glue: keep only the two source channels that survive the channel-index bug and do
    # the non-overlapping 3x3 average pool here -> the kernel streams 9x fewer bytes and the
    # (B, 9, 162) window stack never hits HBM.
    xs = x[:, 1:3, :Hp * POOL, :Wp * POOL].astype(jnp.float32)
    pooled = xs.reshape(B, 2, Hp, POOL, Wp, POOL).mean(axis=(3, 5)).reshape(B, 2 * NPIX)

    # Batch tile: fill the MXU M dimension (128 rows on v5e's 128-wide MXU, 256 on v6e/v7x).
    if tb_max is None:
        kind = jax.devices()[0].device_kind.lower()
        tb_max = 256 if ("v6" in kind or "v7" in kind) else 128
    tb = min(tb_max, _round_up(B, 8))
    b_pad = _round_up(B, tb)
    if b_pad != B:
        pooled = jnp.pad(pooled, ((0, b_pad - B), (0, 0)))   # pad rows masked out of BN stats

    kernel = _make_kernel(tuple(int(s) for s in packed["src"]), NPIX, B,
                          1.0 / (Ho * Wo), 1.0 / (B * Ho * Wo), tb)

    args = (pooled, packed["th"], packed["t"], packed["b_row"], packed["gamma"],
            packed["beta"], packed["pn"], packed["pnt"], packed["w_fc"], packed["b_fc"])

    def const_spec(a):
        nd = a.ndim
        return pl.BlockSpec(a.shape, lambda bi, _nd=nd: (0,) * _nd)

    in_specs = [pl.BlockSpec((tb, 2 * NPIX), lambda bi: (bi, 0))]
    in_specs += [const_spec(a) for a in args[1:]]

    # Explicit VMEM budget: double-buffered constants + streamed input tiles + staged conv
    # outputs + epilogue temporaries, clamped to stay inside v7x's 64 MiB physical VMEM.
    const_bytes = 2 * sum(int(np.prod(a.shape)) * a.dtype.itemsize for a in args[1:])
    est = const_bytes + 2 * (tb * 2 * NPIX * 4) + 6 * (b_pad * NCOLP * 4) + (4 << 20)
    vmem_limit = int(min(64 << 20, max(32 << 20, est)))

    out = pl.pallas_call(
        kernel,
        out_shape=jax.ShapeDtypeStruct((b_pad, 10), jnp.float32),
        grid_spec=pltpu.PrefetchScalarGridSpec(
            num_scalar_prefetch=0,
            grid=(b_pad // tb,),
            in_specs=in_specs,
            out_specs=pl.BlockSpec((b_pad, 10), lambda bi: (0, 0)),
            scratch_shapes=[pltpu.VMEM((b_pad, NCOLP), jnp.float32)],   # staged conv outputs
        ),
        compiler_params=pltpu.CompilerParams(
            dimension_semantics=("arbitrary",),    # staged accumulation + single final BN pass
            vmem_limit_bytes=vmem_limit,
        ),
    )(*args)
    return out[:B]


if __name__ == "__main__":
    key = jax.random.PRNGKey(0)
    pkey, xkey = jax.random.split(key)
    raw = init_raw_params(pkey)
    H = W = 27                                  # 27 -> AvgPool(3) -> 9 -> conv5x5 -> 5
    packed = pack_params(raw, H, W)
    # values in [0,1) so the thresholds (0.07 .. 0.93) are meaningful
    x = jax.random.uniform(xkey, (2, 3, H, W), dtype=jnp.float32)
    out = jax.jit(lambda inp: net_forward(inp, packed))(x)
    jax.block_until_ready(out)
    assert out.shape == (2, 10)
    out_np = np.asarray(out)
    assert np.all(np.isfinite(out_np))
    # log-softmax rows must exponentiate-sum to 1
    np.testing.assert_allclose(np.exp(out_np).sum(axis=-1), 1.0, rtol=1e-3)
    print("KERNEL_OK")
</pallas_src>

<mosaic_0001>
module attributes {stable_mosaic.version = 11 : i64} {
  func.func @kernel(%arg0: i32, %arg1: memref<8x162xf32, #tpu.memory_space<vmem>>, %arg2: memref<1x1782xf32, #tpu.memory_space<vmem>>, %arg3: memref<1782x512xbf16, #tpu.memory_space<vmem>>, %arg4: memref<1x512xf32, #tpu.memory_space<vmem>>, %arg5: memref<1x20xf32, #tpu.memory_space<vmem>>, %arg6: memref<1x20xf32, #tpu.memory_space<vmem>>, %arg7: memref<512x20xf32, #tpu.memory_space<vmem>>, %arg8: memref<20x512xf32, #tpu.memory_space<vmem>>, %arg9: memref<20x10xf32, #tpu.memory_space<vmem>>, %arg10: memref<1x10xf32, #tpu.memory_space<vmem>>, %arg11: memref<8x10xf32, #tpu.memory_space<vmem>>, %arg12: memref<8x512xf32, #tpu.memory_space<vmem>>) attributes {dimension_semantics = [#tpu.dimension_semantics<arbitrary>], iteration_bounds = array<i64: 1>, scalar_prefetch = 0 : i64, scratch_operands = 1 : i64, tpu.core_type = #tpu.core_type<tc>, window_params = [{transform_indices = @transform_0, window_bounds = array<i64: 8, 162>}, {pipeline_mode = #tpu.pipeline_mode<synchronous>, transform_indices = @transform_1, window_bounds = array<i64: 1, 1782>}, {pipeline_mode = #tpu.pipeline_mode<synchronous>, transform_indices = @transform_2, window_bounds = array<i64: 1782, 512>}, {pipeline_mode = #tpu.pipeline_mode<synchronous>, transform_indices = @transform_3, window_bounds = array<i64: 1, 512>}, {pipeline_mode = #tpu.pipeline_mode<synchronous>, transform_indices = @transform_4, window_bounds = array<i64: 1, 20>}, {pipeline_mode = #tpu.pipeline_mode<synchronous>, transform_indices = @transform_5, window_bounds = array<i64: 1, 20>}, {pipeline_mode = #tpu.pipeline_mode<synchronous>, transform_indices = @transform_6, window_bounds = array<i64: 512, 20>}, {pipeline_mode = #tpu.pipeline_mode<synchronous>, transform_indices = @transform_7, window_bounds = array<i64: 20, 512>}, {pipeline_mode = #tpu.pipeline_mode<synchronous>, transform_indices = @transform_8, window_bounds = array<i64: 20, 10>}, {pipeline_mode = #tpu.pipeline_mode<synchronous>, transform_indices = @transform_9, window_bounds = array<i64: 1, 10>}, {pipeline_mode = #tpu.pipeline_mode<synchronous>, transform_indices = @transform_10, window_bounds = array<i64: 8, 10>}]} {
    %c0 = arith.constant 0 : index
    %c0_0 = arith.constant 0 : index
    %0 = vector.load %arg1[%c0, %c0_0] : memref<8x162xf32, #tpu.memory_space<vmem>>, vector<8x162xf32>
    %1 = vector.extract_strided_slice %0 {offsets = [0, 0], sizes = [8, 81], strides = [1, 1]} : vector<8x162xf32> to vector<8x81xf32>
    %2 = vector.extract_strided_slice %0 {offsets = [0, 81], sizes = [8, 81], strides = [1, 1]} : vector<8x162xf32> to vector<8x81xf32>
    %3 = tpu.concatenate %2, %2, %2, %2, %2, %2, %2, %2, %2, %2, %2, %2, %2, %2, %2, %1 in 1 : vector<8x81xf32>, vector<8x81xf32>, vector<8x81xf32>, vector<8x81xf32>, vector<8x81xf32>, vector<8x81xf32>, vector<8x81xf32>, vector<8x81xf32>, vector<8x81xf32>, vector<8x81xf32>, vector<8x81xf32>, vector<8x81xf32>, vector<8x81xf32>, vector<8x81xf32>, vector<8x81xf32>, vector<8x81xf32> -> vector<8x1296xf32>
    %4 = tpu.concatenate %1, %1, %1, %1, %1, %1 in 1 : vector<8x81xf32>, vector<8x81xf32>, vector<8x81xf32>, vector<8x81xf32>, vector<8x81xf32>, vector<8x81xf32> -> vector<8x486xf32>
    %5 = tpu.concatenate %3, %4 in 1 : vector<8x1296xf32>, vector<8x486xf32> -> vector<8x1782xf32>
    %c0_1 = arith.constant 0 : index
    %c0_2 = arith.constant 0 : index
    %6 = vector.load %arg2[%c0_1, %c0_2] : memref<1x1782xf32, #tpu.memory_space<vmem>>, vector<1x1782xf32>
    %7 = vector.broadcast %6 : vector<1x1782xf32> to vector<8x1782xf32>
    %8 = arith.subf %5, %7 : vector<8x1782xf32>
    %cst = arith.constant 5.000000e+02 : f32
    %9 = vector.broadcast %cst : f32 to vector<8x1782xf32>
    %10 = arith.mulf %8, %9 : vector<8x1782xf32>
    %cst_3 = arith.constant 0.000000e+00 : f32
    %11 = vector.broadcast %cst_3 : f32 to vector<8x1782xf32>
    %12 = arith.subf %11, %10 : vector<8x1782xf32>
    %13 = math.exp %12 : vector<8x1782xf32>
    %cst_4 = arith.constant 1.000000e+00 : f32
    %14 = vector.broadcast %cst_4 : f32 to vector<8x1782xf32>
    %15 = arith.addf %14, %13 : vector<8x1782xf32>
    %cst_5 = arith.constant 1.000000e+00 : f32
    %16 = vector.broadcast %cst_5 : f32 to vector<8x1782xf32>
    %17 = arith.divf %16, %15 : vector<8x1782xf32>
    %18 = arith.truncf %17 : vector<8x1782xf32> to vector<8x1782xbf16>
    %c0_6 = arith.constant 0 : index
    %c0_7 = arith.constant 0 : index
    %19 = vector.load %arg3[%c0_6, %c0_7] : memref<1782x512xbf16, #tpu.memory_space<vmem>>, vector<1782x512xbf16>
    %cst_8 = arith.constant dense<0.000000e+00> : vector<8x512xf32>
    %20 = tpu.matmul %18, %19, %cst_8 {dimension_numbers = #tpu.dot_dimension_numbers<[1], [0], [0], [1], [0, 0, 1, 1], [], []>} : vector<8x1782xbf16>, vector<1782x512xbf16>, vector<8x512xf32> -> vector<8x512xf32>
    %c0_9 = arith.constant 0 : index
    %c0_10 = arith.constant 0 : index
    %21 = vector.load %arg4[%c0_9, %c0_10] : memref<1x512xf32, #tpu.memory_space<vmem>>, vector<1x512xf32>
    %22 = vector.broadcast %21 : vector<1x512xf32> to vector<8x512xf32>
    %23 = arith.addf %20, %22 : vector<8x512xf32>
    %c8_i32 = arith.constant 8 : i32
    %24 = arith.muli %arg0, %c8_i32 : i32
    %25 = tpu.assume_multiple %24, 8 : i32
    %26 = arith.index_cast %25 : i32 to index
    %c0_11 = arith.constant 0 : index
    %27 = vector.load %arg12[%26, %c0_11] : memref<8x512xf32, #tpu.memory_space<vmem>>, vector<8x512xf32>
    tpu.vector_store %arg12[%26, %c0_11], %23 {strides = array<i32>} : memref<8x512xf32, #tpu.memory_space<vmem>>, vector<8x512xf32>,
    %c0_i32 = arith.constant 0 : i32
    %28 = arith.cmpi eq, %arg0, %c0_i32 : i32
    %29 = arith.extui %28 : i1 to i32
    %c0_i32_12 = arith.constant 0 : i32
    %30 = arith.cmpi ne, %29, %c0_i32_12 : i32
    scf.if %30 {
      %c0_13 = arith.constant 0 : index
      %c0_14 = arith.constant 0 : index
      %31 = vector.load %arg12[%c0_13, %c0_14] : memref<8x512xf32, #tpu.memory_space<vmem>>, vector<8x512xf32>
      %32 = tpu.iota {dimensions = array<i32: 0>} : vector<8x1xi32>
      %c2_i32 = arith.constant 2 : i32
      %33 = vector.broadcast %c2_i32 : i32 to vector<8x1xi32>
      %34 = arith.cmpi slt, %32, %33 : vector<8x1xi32>
      %cst_15 = arith.constant 0.000000e+00 : f32
      %35 = vector.shape_cast %34 : vector<8x1xi1> to vector<8x1xi1>
      %36 = vector.broadcast %35 : vector<8x1xi1> to vector<8x512xi1>
      %37 = vector.broadcast %cst_15 : f32 to vector<8x512xf32>
      %38 = arith.select %36, %31, %37 : vector<8x512xi1>, vector<8x512xf32>
      %cst_16 = arith.constant dense<0.000000e+00> : vector<512xf32>
      %39 = vector.multi_reduction <add>, %38, %cst_16 [0] : vector<8x512xf32> to vector<512xf32>
      %40 = vector.shape_cast %39 : vector<512xf32> to vector<1x512xf32>
      %c0_17 = arith.constant 0 : index
      %c0_18 = arith.constant 0 : index
      %41 = vector.load %arg7[%c0_17, %c0_18] : memref<512x20xf32, #tpu.memory_space<vmem>>, vector<512x20xf32>
      %cst_19 = arith.constant dense<0.000000e+00> : vector<1x20xf32>
      %42 = tpu.matmul %40, %41, %cst_19 {dimension_numbers = #tpu.dot_dimension_numbers<[1], [0], [0], [1], [0, 0, 1, 1], [], []>} : vector<1x512xf32>, vector<512x20xf32>, vector<1x20xf32> -> vector<1x20xf32>
      %cst_20 = arith.constant 2.000000e-02 : f32
      %43 = vector.broadcast %cst_20 : f32 to vector<1x20xf32>
      %44 = arith.mulf %42, %43 : vector<1x20xf32>
      %c0_21 = arith.constant 0 : index
      %c0_22 = arith.constant 0 : index
      %45 = vector.load %arg8[%c0_21, %c0_22] : memref<20x512xf32, #tpu.memory_space<vmem>>, vector<20x512xf32>
      %cst_23 = arith.constant dense<0.000000e+00> : vector<1x512xf32>
      %46 = tpu.matmul %44, %45, %cst_23 {dimension_numbers = #tpu.dot_dimension_numbers<[1], [0], [0], [1], [0, 0, 1, 1], [], []>} : vector<1x20xf32>, vector<20x512xf32>, vector<1x512xf32> -> vector<1x512xf32>
      %47 = vector.broadcast %46 : vector<1x512xf32> to vector<8x512xf32>
      %48 = arith.subf %31, %47 : vector<8x512xf32>
      %cst_24 = arith.constant 0.000000e+00 : f32
      %49 = vector.shape_cast %34 : vector<8x1xi1> to vector<8x1xi1>
      %50 = vector.broadcast %49 : vector<8x1xi1> to vector<8x512xi1>
      %51 = vector.broadcast %cst_24 : f32 to vector<8x512xf32>
      %52 = arith.select %50, %48, %51 : vector<8x512xi1>, vector<8x512xf32>
      %53 = arith.mulf %52, %52 : vector<8x512xf32>
      %cst_25 = arith.constant dense<0.000000e+00> : vector<512xf32>
      %54 = vector.multi_reduction <add>, %53, %cst_25 [0] : vector<8x512xf32> to vector<512xf32>
      %55 = vector.shape_cast %54 : vector<512xf32> to vector<1x512xf32>
      %c0_26 = arith.constant 0 : index
      %c0_27 = arith.constant 0 : index
      %56 = vector.load %arg7[%c0_26, %c0_27] : memref<512x20xf32, #tpu.memory_space<vmem>>, vector<512x20xf32>
      %cst_28 = arith.constant dense<0.000000e+00> : vector<1x20xf32>
      %57 = tpu.matmul %55, %56, %cst_28 {dimension_numbers = #tpu.dot_dimension_numbers<[1], [0], [0], [1], [0, 0, 1, 1], [], []>} : vector<1x512xf32>, vector<512x20xf32>, vector<1x20xf32> -> vector<1x20xf32>
      %cst_29 = arith.constant 2.000000e-02 : f32
      %58 = vector.broadcast %cst_29 : f32 to vector<1x20xf32>
      %59 = arith.mulf %57, %58 : vector<1x20xf32>
      %c0_30 = arith.constant 0 : index
      %c0_31 = arith.constant 0 : index
      %60 = vector.load %arg5[%c0_30, %c0_31] : memref<1x20xf32, #tpu.memory_space<vmem>>, vector<1x20xf32>
      %cst_32 = arith.constant 9.99999974E-6 : f32
      %61 = vector.broadcast %cst_32 : f32 to vector<1x20xf32>
      %62 = arith.addf %59, %61 : vector<1x20xf32>
      %63 = math.rsqrt %62 : vector<1x20xf32>
      %64 = arith.mulf %60, %63 : vector<1x20xf32>
      %c0_33 = arith.constant 0 : index
      %c0_34 = arith.constant 0 : index
      %65 = vector.load %arg8[%c0_33, %c0_34] : memref<20x512xf32, #tpu.memory_space<vmem>>, vector<20x512xf32>
      %cst_35 = arith.constant dense<0.000000e+00> : vector<1x512xf32>
      %66 = tpu.matmul %64, %65, %cst_35 {dimension_numbers = #tpu.dot_dimension_numbers<[1], [0], [0], [1], [0, 0, 1, 1], [], []>} : vector<1x20xf32>, vector<20x512xf32>, vector<1x512xf32> -> vector<1x512xf32>
      %c0_36 = arith.constant 0 : index
      %c0_37 = arith.constant 0 : index
      %67 = vector.load %arg6[%c0_36, %c0_37] : memref<1x20xf32, #tpu.memory_space<vmem>>, vector<1x20xf32>
      %c0_38 = arith.constant 0 : index
      %c0_39 = arith.constant 0 : index
      %68 = vector.load %arg8[%c0_38, %c0_39] : memref<20x512xf32, #tpu.memory_space<vmem>>, vector<20x512xf32>
      %cst_40 = arith.constant dense<0.000000e+00> : vector<1x512xf32>
      %69 = tpu.matmul %67, %68, %cst_40 {dimension_numbers = #tpu.dot_dimension_numbers<[1], [0], [0], [1], [0, 0, 1, 1], [], []>} : vector<1x20xf32>, vector<20x512xf32>, vector<1x512xf32> -> vector<1x512xf32>
      %70 = vector.broadcast %66 : vector<1x512xf32> to vector<8x512xf32>
      %71 = arith.mulf %48, %70 : vector<8x512xf32>
      %72 = vector.broadcast %69 : vector<1x512xf32> to vector<8x512xf32>
      %73 = arith.addf %71, %72 : vector<8x512xf32>
      %cst_41 = arith.constant 0.000000e+00 : f32
      %74 = vector.broadcast %cst_41 : f32 to vector<8x512xf32>
      %75 = arith.subf %74, %73 : vector<8x512xf32>
      %76 = math.exp %75 : vector<8x512xf32>
      %cst_42 = arith.constant 1.000000e+00 : f32
      %77 = vector.broadcast %cst_42 : f32 to vector<8x512xf32>
      %78 = arith.addf %77, %76 : vector<8x512xf32>
      %cst_43 = arith.constant 1.000000e+00 : f32
      %79 = vector.broadcast %cst_43 : f32 to vector<8x512xf32>
      %80 = arith.divf %79, %78 : vector<8x512xf32>
      %c0_44 = arith.constant 0 : index
      %c0_45 = arith.constant 0 : index
      %81 = vector.load %arg7[%c0_44, %c0_45] : memref<512x20xf32, #tpu.memory_space<vmem>>, vector<512x20xf32>
      %cst_46 = arith.constant dense<0.000000e+00> : vector<8x20xf32>
      %82 = tpu.matmul %80, %81, %cst_46 {dimension_numbers = #tpu.dot_dimension_numbers<[1], [0], [0], [1], [0, 0, 1, 1], [], []>} : vector<8x512xf32>, vector<512x20xf32>, vector<8x20xf32> -> vector<8x20xf32>
      %cst_47 = arith.constant 4.000000e-02 : f32
      %83 = vector.broadcast %cst_47 : f32 to vector<8x20xf32>
      %84 = arith.mulf %82, %83 : vector<8x20xf32>
      %c0_48 = arith.constant 0 : index
      %c0_49 = arith.constant 0 : index
      %85 = vector.load %arg9[%c0_48, %c0_49] : memref<20x10xf32, #tpu.memory_space<vmem>>, vector<20x10xf32>
      %cst_50 = arith.constant dense<0.000000e+00> : vector<8x10xf32>
      %86 = tpu.matmul %84, %85, %cst_50 {dimension_numbers = #tpu.dot_dimension_numbers<[1], [0], [0], [1], [0, 0, 1, 1], [], []>} : vector<8x20xf32>, vector<20x10xf32>, vector<8x10xf32> -> vector<8x10xf32>
      %c0_51 = arith.constant 0 : index
      %c0_52 = arith.constant 0 : index
      %87 = vector.load %arg10[%c0_51, %c0_52] : memref<1x10xf32, #tpu.memory_space<vmem>>, vector<1x10xf32>
      %88 = vector.broadcast %87 : vector<1x10xf32> to vector<8x10xf32>
      %89 = arith.addf %86, %88 : vector<8x10xf32>
      %cst_53 = arith.constant dense<0xFF800000> : vector<8xf32>
      %90 = vector.multi_reduction <maximumf>, %89, %cst_53 [1] : vector<8x10xf32> to vector<8xf32>
      %91 = vector.shape_cast %90 : vector<8xf32> to vector<8x1xf32>
      %92 = vector.broadcast %91 : vector<8x1xf32> to vector<8x10xf32>
      %93 = arith.subf %89, %92 : vector<8x10xf32>
      %94 = math.exp %93 : vector<8x10xf32>
      %cst_54 = arith.constant dense<0.000000e+00> : vector<8xf32>
      %95 = vector.multi_reduction <add>, %94, %cst_54 [1] : vector<8x10xf32> to vector<8xf32>
      %96 = vector.shape_cast %95 : vector<8xf32> to vector<8x1xf32>
      %97 = math.log %96 : vector<8x1xf32>
      %98 = arith.addf %91, %97 : vector<8x1xf32>
      %99 = vector.broadcast %98 : vector<8x1xf32> to vector<8x10xf32>
      %100 = arith.subf %89, %99 : vector<8x10xf32>
      %c0_55 = arith.constant 0 : index
      %c0_56 = arith.constant 0 : index
      %101 = vector.load %arg11[%c0_55, %c0_56] : memref<8x10xf32, #tpu.memory_space<vmem>>, vector<8x10xf32>
      tpu.vector_store %arg11[%c0_55, %c0_56], %100 {strides = array<i32>} : memref<8x10xf32, #tpu.memory_space<vmem>>, vector<8x10xf32>,
    } else {
    }
    return
  }
  func.func @transform_0(%arg0: i32) -> (i32, i32) {
    %c0_i32 = arith.constant 0 : i32
    %c0_i32_0 = arith.constant 0 : i32
    return %arg0, %c0_i32 : i32, i32
  }
  func.func @transform_1(%arg0: i32) -> (i32, i32) {
    %c0_i32 = arith.constant 0 : i32
    %c0_i32_0 = arith.constant 0 : i32
    %c0_i32_1 = arith.constant 0 : i32
    return %c0_i32, %c0_i32_0 : i32, i32
  }
  func.func @transform_2(%arg0: i32) -> (i32, i32) {
    %c0_i32 = arith.constant 0 : i32
    %c0_i32_0 = arith.constant 0 : i32
    %c0_i32_1 = arith.constant 0 : i32
    return %c0_i32, %c0_i32_0 : i32, i32
  }
  func.func @transform_3(%arg0: i32) -> (i32, i32) {
    %c0_i32 = arith.constant 0 : i32
    %c0_i32_0 = arith.constant 0 : i32
    %c0_i32_1 = arith.constant 0 : i32
    return %c0_i32, %c0_i32_0 : i32, i32
  }
  func.func @transform_4(%arg0: i32) -> (i32, i32) {
    %c0_i32 = arith.constant 0 : i32
    %c0_i32_0 = arith.constant 0 : i32
    %c0_i32_1 = arith.constant 0 : i32
    return %c0_i32, %c0_i32_0 : i32, i32
  }
  func.func @transform_5(%arg0: i32) -> (i32, i32) {
    %c0_i32 = arith.constant 0 : i32
    %c0_i32_0 = arith.constant 0 : i32
    %c0_i32_1 = arith.constant 0 : i32
    return %c0_i32, %c0_i32_0 : i32, i32
  }
  func.func @transform_6(%arg0: i32) -> (i32, i32) {
    %c0_i32 = arith.constant 0 : i32
    %c0_i32_0 = arith.constant 0 : i32
    %c0_i32_1 = arith.constant 0 : i32
    return %c0_i32, %c0_i32_0 : i32, i32
  }
  func.func @transform_7(%arg0: i32) -> (i32, i32) {
    %c0_i32 = arith.constant 0 : i32
    %c0_i32_0 = arith.constant 0 : i32
    %c0_i32_1 = arith.constant 0 : i32
    return %c0_i32, %c0_i32_0 : i32, i32
  }
  func.func @transform_8(%arg0: i32) -> (i32, i32) {
    %c0_i32 = arith.constant 0 : i32
    %c0_i32_0 = arith.constant 0 : i32
    %c0_i32_1 = arith.constant 0 : i32
    return %c0_i32, %c0_i32_0 : i32, i32
  }
  func.func @transform_9(%arg0: i32) -> (i32, i32) {
    %c0_i32 = arith.constant 0 : i32
    %c0_i32_0 = arith.constant 0 : i32
    %c0_i32_1 = arith.constant 0 : i32
    return %c0_i32, %c0_i32_0 : i32, i32
  }
  func.func @transform_10(%arg0: i32) -> (i32, i32) {
    %c0_i32 = arith.constant 0 : i32
    %c0_i32_0 = arith.constant 0 : i32
    %c0_i32_1 = arith.constant 0 : i32
    return %c0_i32, %c0_i32_0 : i32, i32
  }
}

</mosaic_0001>

<bundles_post_ra>
// kernel: _lambda_.1
= control target key start
LH: loop header
LB: loop body
LE: loop exit
PB: predicated region body
PF: predicated region fallthrough
CT: control target
= control target key end

     0   :  { %s6645_s17 = smov 47   ;;  %s6646_s18 = smov 81   ;;  %vm50_vm0 = vcmask 662528   ;;  %vm43_vm1 = vcmask 384000   ;;  %vm57_vm2 = vcmask 277504   ;;  %vm65_vm3 = vcmask 941056   ;;  %s8821_s0 = inlined_call_operand.vmem [shape: f32[8,162], index: 0, kind: input, shape index: {}]   ;;  %s8822_s2 = inlined_call_operand.vmem [shape: bf16[1782,512], index: 2, kind: input, shape index: {}]   ;;  %s8823_s1 = inlined_call_operand.vmem [shape: f32[1,1782], index: 1, kind: input, shape index: {}]   ;;  %s8824_s6 = inlined_call_operand.vmem [shape: f32[512,20], index: 6, kind: input, shape index: {}]   ;;  %s8825_s3 = inlined_call_operand.vmem [shape: f32[1,512], index: 3, kind: input, shape index: {}]   ;;  %s8826_s7 = inlined_call_operand.vmem [shape: f32[20,512], index: 7, kind: input, shape index: {}]   ;;  %s8827_s4 = inlined_call_operand.vmem [shape: f32[1,20], index: 4, kind: input, shape index: {}]   ;;  %s8828_s5 = inlined_call_operand.vmem [shape: f32[1,20], index: 5, kind: input, shape index: {}]   ;;  %s8829_s8 = inlined_call_operand.vmem [shape: f32[20,10], index: 8, kind: input, shape index: {}]   ;;  %s8830_s9 = inlined_call_operand.vmem [shape: f32[1,10], index: 9, kind: input, shape index: {}]   ;;  %s8831_s10 = inlined_call_operand.vmem [shape: f32[8,10], index: 10, kind: output, shape index: {}]  }
   0x1   :  { %v6722_v0 = vld [vmem:[%s8821_s0] sm:$0xff]  ;;  %v6727_v1 = vld [vmem:[%s8821_s0 + $0x8] sm:$0xff]  ;;  %s6648_s19 = smov 34   ;;  %s6649_s27 = smov 115   ;;  %vm73_vm4 = vcmask 556032   ;;  %vm80_vm5 = vcmask 171008  }
   0x2   :  { %39 = vrot.lane.b32.xlu1 %v6722_v0, %s6645_s17  ;;  %46 = vrot.lane.b32.xlu0 %v6722_v0, %s6646_s18  ;;  %v5896_v2 = vld [vmem:[%s8822_s2 + $0x4] ss:$16 sps:$4 sm:$0xff]   ;;  %v5898_v3 = vld [vmem:[%s8822_s2 + $0xc] ss:$16 sps:$4 sm:$0xff]   ;;  %s6651_s0 = smov 21   ;;  %s6652_s13 = smov 102  }
   0x3   :  { %3109 = vmatprep.subr.bf16.mxu0 %v5896_v2  ;;  %v5900_v4 = vld [vmem:[%s8822_s2] ss:$16 sps:$4 sm:$0xff]   ;;  %v5901_v5 = vld [vmem:[%s8822_s2 + $0x8] ss:$16 sps:$4 sm:$0xff]   ;;  %3396 = vmatprep.subr.bf16.mxu1 %v5898_v3  ;;  %v5902_v6 = vld [vmem:[%s8822_s2 + $0x24] ss:$16 sps:$4 sm:$0xff]  }
   0x4   :  { %3110 = vmatpush1.bf16.msra.mxu0 %v5900_v4  ;;  %3397 = vmatpush1.bf16.msra.mxu1 %v5901_v5  ;;  %v5904_v7 = vld [vmem:[%s8822_s2 + $0x2c] ss:$16 sps:$4 sm:$0xff]   ;;  %v5906_v8 = vld [vmem:[%s8822_s2 + $0x20] ss:$16 sps:$4 sm:$0xff]   ;;  %v5907_v9 = vld [vmem:[%s8822_s2 + $0x28] ss:$16 sps:$4 sm:$0xff]  }
   0x5   :  { %3111 = vmatprep.subr.bf16.mxu0 %v5902_v6  ;;  %v5908_v10 = vld [vmem:[%s8822_s2 + $0x44] ss:$16 sps:$4 sm:$0xff]   ;;  %3398 = vmatprep.subr.bf16.mxu1 %v5904_v7  ;;  %v5910_v11 = vld [vmem:[%s8822_s2 + $0x4c] ss:$16 sps:$4 sm:$0xff]   ;;  %v5912_v12 = vld [vmem:[%s8822_s2 + $0x40] ss:$16 sps:$4 sm:$0xff]   ;;  %v198_v6 = vlaneseq }
   0x6   :  { %41 = vrot.lane.b32.xlu1 %v6727_v1, %s6645_s17  ;;  %48 = vrot.lane.b32.xlu0 %v6727_v1, %s6646_s18  ;;  %s6647_s18 = smov 68   ;;  %v5913_v13 = vld [vmem:[%s8822_s2 + $0x48] ss:$16 sps:$4 sm:$0xff]   ;;  %v5914_v14 = vld [vmem:[%s8822_s2 + $0x64] ss:$16 sps:$4 sm:$0xff]   ;;  %s6656_s17 = smov 123  }
   0x7   :  { %v5916_v15 = vld [vmem:[%s8822_s2 + $0x6c] ss:$16 sps:$4 sm:$0xff]   ;;  %v5918_v16 = vld [vmem:[%s8822_s2 + $0x60] ss:$16 sps:$4 sm:$0xff]   ;;  %v5919_v17 = vld [vmem:[%s8822_s2 + $0x68] ss:$16 sps:$4 sm:$0xff]  }
   0x8   :  { %3112 = vmatpush1.bf16.msra.mxu0 %v5906_v8  ;;  %3399 = vmatpush1.bf16.msra.mxu1 %v5907_v9  ;;  %v5920_v18 = vld [vmem:[%s8822_s2 + $0x84] ss:$16 sps:$4 sm:$0xff]   ;;  %v5922_v19 = vld [vmem:[%s8822_s2 + $0x8c] ss:$16 sps:$4 sm:$0xff]   ;;  %v5924_v20 = vld [vmem:[%s8822_s2 + $0x80] ss:$16 sps:$4 sm:$0xff]  }
   0x9   :  { %3113 = vmatprep.subr.bf16.mxu0 %v5908_v10  ;;  %3400 = vmatprep.subr.bf16.mxu1 %v5910_v11  ;;  %v5925_v21 = vld [vmem:[%s8822_s2 + $0x88] ss:$16 sps:$4 sm:$0xff]   ;;  %v5926_v22 = vld [vmem:[%s8822_s2 + $0xa4] ss:$16 sps:$4 sm:$0xff]   ;;  %v5928_v23 = vld [vmem:[%s8822_s2 + $0xac] ss:$16 sps:$4 sm:$0xff]  }
   0xa   :  { %69 = vrot.lane.b32.xlu1 %v6722_v0, %s6647_s18  ;;  %53 = vrot.lane.b32.xlu0 %v6722_v0, %s6648_s19  ;;  %v5930_v24 = vld [vmem:[%s8822_s2 + $0xa0] ss:$16 sps:$4 sm:$0xff]   ;;  %v5931_v25 = vld [vmem:[%s8822_s2 + $0xa8] ss:$16 sps:$4 sm:$0xff]   ;;  %s6658_s12 = smov 29   ;;  %s6659_s22 = smov 63  }
   0xb   :  { %v5932_v26 = vld [vmem:[%s8822_s2 + $0xc4] ss:$16 sps:$4 sm:$0xff]   ;;  %v5934_v27 = vld [vmem:[%s8822_s2 + $0xcc] ss:$16 sps:$4 sm:$0xff]   ;;  %v5936_v28 = vld [vmem:[%s8822_s2 + $0xc0] ss:$16 sps:$4 sm:$0xff]  }
   0xc   :  { %3114 = vmatpush1.bf16.msra.mxu0 %v5912_v12  ;;  %3401 = vmatpush1.bf16.msra.mxu1 %v5913_v13  ;;  %v5937_v29 = vld [vmem:[%s8822_s2 + $0xc8] ss:$16 sps:$4 sm:$0xff]   ;;  %v5938_v30 = vld [vmem:[%s8822_s2 + $0xe4] ss:$16 sps:$4 sm:$0xff]   ;;  %v5940_v31 = vld [vmem:[%s8822_s2 + $0xec] ss:$16 sps:$4 sm:$0xff]  }
   0xd   :  { %3115 = vmatprep.subr.bf16.mxu0 %v5914_v14  ;;  %3402 = vmatprep.subr.bf16.mxu1 %v5916_v15  ;;  %v5942_v32 = vld [vmem:[%s8822_s2 + $0xe0] ss:$16 sps:$4 sm:$0xff]   ;;  %v5943_v33 = vld [vmem:[%s8822_s2 + $0xe8] ss:$16 sps:$4 sm:$0xff]   ;;  %v5944_v34 = vld [vmem:[%s8822_s2 + $0x104] ss:$16 sps:$4 sm:$0xff]  }
   0xe   :  { %63 = vrot.lane.b32.xlu1 %v6727_v1, %s6649_s27  ;;  %71 = vrot.lane.b32.xlu0 %v6727_v1, %s6647_s18  ;;  %v5946_v35 = vld [vmem:[%s8822_s2 + $0x10c] ss:$16 sps:$4 sm:$0xff]   ;;  %v5948_v36 = vld [vmem:[%s8822_s2 + $0x100] ss:$16 sps:$4 sm:$0xff]   ;;  %s6654_s18 = smov 89   ;;  %v6956_v7 = vshrl.u32 %v198_v6, 7 }
   0xf   :  { %v5949_v37 = vld [vmem:[%s8822_s2 + $0x108] ss:$16 sps:$4 sm:$0xff]   ;;  %v5950_v38 = vld [vmem:[%s8822_s2 + $0x124] ss:$16 sps:$4 sm:$0xff]   ;;  %v5952_v39 = vld [vmem:[%s8822_s2 + $0x12c] ss:$16 sps:$4 sm:$0xff]  }
  0x10   :  { %3116 = vmatpush1.bf16.msra.mxu0 %v5918_v16  ;;  %3403 = vmatpush1.bf16.msra.mxu1 %v5919_v17  ;;  %v5954_v40 = vld [vmem:[%s8822_s2 + $0x120] ss:$16 sps:$4 sm:$0xff]   ;;  %v5955_v41 = vld [vmem:[%s8822_s2 + $0x128] ss:$16 sps:$4 sm:$0xff]   ;;  %v5956_v42 = vld [vmem:[%s8822_s2 + $0x144] ss:$16 sps:$4 sm:$0xff]  }
  0x11   :  { %3117 = vmatprep.subr.bf16.mxu0 %v5920_v18  ;;  %3404 = vmatprep.subr.bf16.mxu1 %v5922_v19  ;;  %v5958_v43 = vld [vmem:[%s8822_s2 + $0x14c] ss:$16 sps:$4 sm:$0xff]   ;;  %v5960_v44 = vld [vmem:[%s8822_s2 + $0x140] ss:$16 sps:$4 sm:$0xff]   ;;  %v5961_v45 = vld [vmem:[%s8822_s2 + $0x148] ss:$16 sps:$4 sm:$0xff]  }
  0x12   :  { %61 = vrot.lane.b32.xlu1 %v6722_v0, %s6649_s27  ;;  %55 = vrot.lane.b32.xlu0 %v6727_v1, %s6648_s19  ;;  %s6650_s19 = smov 55   ;;  %s6655_s27 = smov 42   ;;  %v5962_v46 = vld [vmem:[%s8822_s2 + $0x164] ss:$16 sps:$4 sm:$0xff]   ;;  %v5964_v47 = vld [vmem:[%s8822_s2 + $0x16c] ss:$16 sps:$4 sm:$0xff]  }
  0x13   :  { %v5966_v48 = vld [vmem:[%s8822_s2 + $0x160] ss:$16 sps:$4 sm:$0xff]   ;;  %v5967_v49 = vld [vmem:[%s8822_s2 + $0x168] ss:$16 sps:$4 sm:$0xff]   ;;  %v5968_v50 = vld [vmem:[%s8822_s2 + $0x184] ss:$16 sps:$4 sm:$0xff]  }
  0x14   :  { %3118 = vmatpush1.bf16.msra.mxu0 %v5924_v20  ;;  %3405 = vmatpush1.bf16.msra.mxu1 %v5925_v21  ;;  %v5970_v51 = vld [vmem:[%s8822_s2 + $0x18c] ss:$16 sps:$4 sm:$0xff]   ;;  %v5972_v52 = vld [vmem:[%s8822_s2 + $0x180] ss:$16 sps:$4 sm:$0xff]   ;;  %v5973_v53 = vld [vmem:[%s8822_s2 + $0x188] ss:$16 sps:$4 sm:$0xff]  }
  0x15   :  { %3119 = vmatprep.subr.bf16.mxu0 %v5926_v22  ;;  %3406 = vmatprep.subr.bf16.mxu1 %v5928_v23  ;;  %v5974_v54 = vld [vmem:[%s8822_s2 + $0x1a4] ss:$16 sps:$4 sm:$0xff]   ;;  %v5976_v55 = vld [vmem:[%s8822_s2 + $0x1ac] ss:$16 sps:$4 sm:$0xff]   ;;  %v5978_v56 = vld [vmem:[%s8822_s2 + $0x1a0] ss:$16 sps:$4 sm:$0xff]  }
  0x16   :  { %92 = vrot.lane.b32.xlu1 %v6722_v0, %s6650_s19  ;;  %76 = vrot.lane.b32.xlu0 %v6722_v0, %s6651_s0  ;;  %v5979_v57 = vld [vmem:[%s8822_s2 + $0x1a8] ss:$16 sps:$4 sm:$0xff]   ;;  %v5980_v58 = vld [vmem:[%s8822_s2 + $0x1c4] ss:$16 sps:$4 sm:$0xff]   ;;  %8846 = vst [vmem:[#allocation3_spill] sm:$0xff] %v6956_v7  ;;  %v6959_v8 = vsub.s32 0, %v6956_v7 }
  0x17   :  { %v5982_v59 = vld [vmem:[%s8822_s2 + $0x1cc] ss:$16 sps:$4 sm:$0xff]   ;;  %v5984_v60 = vld [vmem:[%s8822_s2 + $0x1c0] ss:$16 sps:$4 sm:$0xff]   ;;  %v5985_v61 = vld [vmem:[%s8822_s2 + $0x1c8] ss:$16 sps:$4 sm:$0xff]  }
  0x18   :  { %3120 = vmatpush1.bf16.msra.mxu0 %v5930_v24  ;;  %3407 = vmatpush1.bf16.msra.mxu1 %v5931_v25  ;;  %v5986_v62 = vld [vmem:[%s8822_s2 + $0x1e4] ss:$16 sps:$4 sm:$0xff]   ;;  %v5988_v63 = vld [vmem:[%s8822_s2 + $0x1ec] ss:$16 sps:$4 sm:$0xff]   ;;  %v5990_v2 = vld [vmem:[%s8822_s2 + $0x1e0] ss:$16 sps:$4 sm:$0xff]  }
  0x19   :  { %3121 = vmatprep.subr.bf16.mxu0 %v5932_v26  ;;  %3408 = vmatprep.subr.bf16.mxu1 %v5934_v27  ;;  %v5991_v3 = vld [vmem:[%s8822_s2 + $0x1e8] ss:$16 sps:$4 sm:$0xff]   ;;  %v5994_v4 = vld [vmem:[%s8822_s2 + $0x204] ss:$16 sps:$4 sm:$0xff]   ;;  %v5997_v5 = vld [vmem:[%s8822_s2 + $0x20c] ss:$16 sps:$4 sm:$0xff]  }
  0x1a   :  { %86 = vrot.lane.b32.xlu1 %v6727_v1, %s6652_s13  ;;  %94 = vrot.lane.b32.xlu0 %v6727_v1, %s6650_s19  ;;  %s6657_s19 = smov 76   ;;  %8847 = vst [vmem:[#allocation4_spill] sm:$0xff] %v6959_v8  ;;  %v6964_v11 = vld [vmem:[%s8823_s1] sm:$0xff]  ;;  %s6660_s20 = smov 16   ;;  %v6970_v13 = vsub.s32 1, %v6956_v7  ;;  %vm88_vm6 = vcmask 834560  }
  0x1b   :  { %v201_v14 = vrot.slane %v6964_v11, %v6959_v8  ;;  %vm96_vm7 = vcmask 449536   ;;  %vm103_vm8 = vcmask 64512   ;;  %vm118_vm9 = vcmask 343040  }
  0x1c   :  { %3122 = vmatpush1.bf16.msra.mxu0 %v5936_v28  ;;  %3409 = vmatpush1.bf16.msra.mxu1 %v5937_v29  ;;  %v205_v20 = vrot.slane %v6964_v11, %v6970_v13  ;;  %vm111_vm10 = vcmask 728064   ;;  %vm126_vm11 = vcmask 1006592   ;;  %vm141_vm12 = vcmask 236544  }
  0x1d   :  { %3123 = vmatprep.subr.bf16.mxu0 %v5938_v30  ;;  %3410 = vmatprep.subr.bf16.mxu1 %v5940_v31  ;;  %vm134_vm13 = vcmask 621568   ;;  %vm161_vm14 = vcmask 900096   ;;  %vm185_vm15 = vcmask 130048  }
  0x1e   :  { %84 = vrot.lane.b32.xlu1 %v6722_v0, %s6652_s13  ;;  %78 = vrot.lane.b32.xlu0 %v6727_v1, %s6651_s0  ;;  %s6653_s0 = smov 8  }
  0x20   :  { %3124 = vmatpush1.bf16.msra.mxu0 %v5942_v32  ;;  %3411 = vmatpush1.bf16.msra.mxu1 %v5943_v33  ;;  %v6983_v33 = vsub.s32 3, %v6956_v7 }
  0x21   :  { %3125 = vmatprep.subr.bf16.mxu0 %v5944_v34  ;;  %3412 = vmatprep.subr.bf16.mxu1 %v5946_v35 }
  0x22   :  { %101 = vrot.lane.b32.xlu1 %v6727_v1, %s6653_s0  ;;  %99 = vrot.lane.b32.xlu0 %v6722_v0, %s6653_s0 }
  0x24   :  { %3126 = vmatpush1.bf16.msra.mxu0 %v5948_v36  ;;  %3413 = vmatpush1.bf16.msra.mxu1 %v5949_v37 }
  0x25   :  { %3127 = vmatprep.subr.bf16.mxu0 %v5950_v38  ;;  %3414 = vmatprep.subr.bf16.mxu1 %v5952_v39 }
  0x26   :  { %109 = vrot.lane.b32.xlu1 %v6727_v1, %s6654_s18  ;;  %107 = vrot.lane.b32.xlu0 %v6722_v0, %s6654_s18 }
  0x28   :  { %3128 = vmatpush1.bf16.msra.mxu0 %v5954_v40  ;;  %3415 = vmatpush1.bf16.msra.mxu1 %v5955_v41 }
  0x29   :  { %3129 = vmatprep.subr.bf16.mxu0 %v5956_v42  ;;  %3416 = vmatprep.subr.bf16.mxu1 %v5958_v43 }
  0x2a   :  { %116 = vrot.lane.b32.xlu1 %v6727_v1, %s6655_s27  ;;  %114 = vrot.lane.b32.xlu0 %v6722_v0, %s6655_s27 }
  0x2c   :  { %3130 = vmatpush1.bf16.msra.mxu0 %v5960_v44  ;;  %3417 = vmatpush1.bf16.msra.mxu1 %v5961_v45  ;;  %v213_v44 = vrot.slane %v6964_v11, %v6983_v33 }
  0x2d   :  { %3131 = vmatprep.subr.bf16.mxu0 %v5962_v46  ;;  %3418 = vmatprep.subr.bf16.mxu1 %v5964_v47 }
  0x2e   :  { %124 = vrot.lane.b32.xlu1 %v6727_v1, %s6656_s17  ;;  %122 = vrot.lane.b32.xlu0 %v6722_v0, %s6656_s17 }
  0x30   :  { %3132 = vmatpush1.bf16.msra.mxu0 %v5966_v48  ;;  %3419 = vmatpush1.bf16.msra.mxu1 %v5967_v49 }
  0x31   :  { %3133 = vmatprep.subr.bf16.mxu0 %v5968_v50  ;;  %3420 = vmatprep.subr.bf16.mxu1 %v5970_v51 }
  0x32   :  { %132 = vrot.lane.b32.xlu1 %v6727_v1, %s6657_s19  ;;  %130 = vrot.lane.b32.xlu0 %v6722_v0, %s6657_s19 }
  0x34   :  { %3134 = vmatpush1.bf16.msra.mxu0 %v5972_v52  ;;  %3421 = vmatpush1.bf16.msra.mxu1 %v5973_v53 }
  0x35   :  { %3135 = vmatprep.subr.bf16.mxu0 %v5974_v54  ;;  %3422 = vmatprep.subr.bf16.mxu1 %v5976_v55 }
  0x36   :  { %139 = vrot.lane.b32.xlu1 %v6727_v1, %s6658_s12  ;;  %137 = vrot.lane.b32.xlu0 %v6722_v0, %s6658_s12 }
  0x38   :  { %3136 = vmatpush1.bf16.msra.mxu0 %v5978_v56  ;;  %3423 = vmatpush1.bf16.msra.mxu1 %v5979_v57 }
  0x39   :  { %3137 = vmatprep.subr.bf16.mxu0 %v5980_v58  ;;  %3424 = vmatprep.subr.bf16.mxu1 %v5982_v59 }
  0x3a   :  { %145 = vrot.lane.b32.xlu0 %v6722_v0, %s6659_s22 }
  0x3c   :  { %3138 = vmatpush1.bf16.msra.mxu0 %v5984_v60  ;;  %3425 = vmatpush1.bf16.msra.mxu1 %v5985_v61 }
  0x3d   :  { %3139 = vmatprep.subr.bf16.mxu0 %v5986_v62  ;;  %3426 = vmatprep.subr.bf16.mxu1 %v5988_v63 }
  0x40   :  { %3140 = vmatpush1.bf16.msra.mxu0 %v5990_v2  ;;  %3427 = vmatpush1.bf16.msra.mxu1 %v5991_v3 }
  0x41   :  { %3150 = vmatprep.subr.bf16.mxu0 %v5994_v4  ;;  %3437 = vmatprep.subr.bf16.mxu1 %v5997_v5 }
  0x74   :  { %v40_v9 = vpop.permute.xlu1 %39  ;;  %v47_v10 = vpop.permute.xlu0 %46 }
  0x75   :  { %v168_v12 = vsel %vm50_vm0, %v6722_v0, %v47_v10 }
  0x76   :  { %177 = vrot.lane.b32.xlu1 %v168_v12, %s6660_s20 }
  0x78   :  { %v42_v15 = vpop.permute.xlu1 %41  ;;  %v49_v16 = vpop.permute.xlu0 %48 }
  0x79   :  { %v44_v17 = vsel %vm43_vm1, %v40_v9, %v42_v15  ;;  %v51_v18 = vsel %vm50_vm0, %v47_v10, %v49_v16  ;;  %v5992_v15 = vld [vmem:[%s8822_s2 + $0x200] ss:$16 sps:$4 sm:$0xff]   ;;  %v5995_v16 = vld [vmem:[%s8822_s2 + $0x208] ss:$16 sps:$4 sm:$0xff]   ;;  %vm3092_vm1 = vcmask 965632  }
  0x7a   :  { %v148_v19 = vsel %vm50_vm0, %v44_v17, %v6722_v0  ;;  %v149_v22 = vsel %vm57_vm2, %v6727_v1, %v51_v18  ;;  %vm163_vm0 = vcmask 515072  }
  0x7b   :  { %v268_v21 = vsub.f32 %v148_v19, %v201_v14 }
  0x7c   :  { %v70_v23 = vpop.permute.xlu1 %69  ;;  %v54_v24 = vpop.permute.xlu0 %53 }
  0x7d   :  { %v282_v25 = vmul.f32 500.0, %v268_v21  ;;  %v150_v26 = vsel %vm65_vm3, %v149_v22, %v54_v24  ;;  %v169_v34 = vsel %vm57_vm2, %v47_v10, %v54_v24 }
  0x7e   :  { %v269_v27 = vsub.f32 %v150_v26, %v205_v20 }
  0x7f   :  { %v296_v28 = vsub.f32 0.0, %v282_v25  ;;  %v6003_v25 = vld [vmem:[%s8822_s2 + $0x22c] ss:$16 sps:$4 sm:$0xff]  }
  0x80   :  { %v283_v29 = vmul.f32 500.0, %v269_v27  ;;  %v64_v30 = vpop.permute.xlu1 %63  ;;  %v72_v31 = vpop.permute.xlu0 %71 }
  0x81   :  { %v310_v32 = vmul.f32 1.442695, %v296_v28  ;;  %v74_v1 = vsel %vm73_vm4, %v70_v23, %v72_v31  ;;  %v5998_v28 = vld [vmem:[%s8822_s2 + $0x220] ss:$16 sps:$4 sm:$0xff]   ;;  %v6009_v31 = vld [vmem:[%s8822_s2 + $0x24c] ss:$16 sps:$4 sm:$0xff]  }
  0x82   :  { %v297_v0 = vsub.f32 0.0, %v283_v29  ;;  %v152_v42 = vsel %vm80_vm5, %v64_v30, %v74_v1  ;;  %v6001_v29 = vld [vmem:[%s8822_s2 + $0x228] ss:$16 sps:$4 sm:$0xff]  }
  0x83   :  { %6566 = vpow2.f32 %v310_v32 }
  0x84   :  { %v312_v35 = vmul.f32 1.442695, %v297_v0  ;;  %v62_v36 = vpop.permute.xlu1 %61  ;;  %v56_v37 = vpop.permute.xlu0 %55 }
  0x85   :  { %v66_v38 = vsel %vm65_vm3, %v62_v36, %v64_v30  ;;  %v58_v39 = vsel %vm57_vm2, %v54_v24, %v56_v37  ;;  %v171_v40 = vsel %vm73_vm4, %v62_v36, %v70_v23  ;;  %v170_v41 = vsel %vm65_vm3, %v169_v34, %v62_v36  ;;  %v6000_v24 = vld [vmem:[%s8822_s2 + $0x224] ss:$16 sps:$4 sm:$0xff]   ;;  %v6004_v34 = vld [vmem:[%s8822_s2 + $0x240] ss:$16 sps:$4 sm:$0xff]  }
  0x86   :  { %6568 = vpow2.f32 %v312_v35  ;;  %v6993_v43 = vsel %vm73_vm4, %v58_v39, %v66_v38  ;;  %181 = vrot.lane.b32.xlu1 %v171_v40, %s6660_s20  ;;  %179 = vrot.lane.b32.xlu0 %v170_v41, %s6660_s20  ;;  %v6006_v30 = vld [vmem:[%s8822_s2 + $0x244] ss:$16 sps:$4 sm:$0xff]   ;;  %v6007_v35 = vld [vmem:[%s8822_s2 + $0x248] ss:$16 sps:$4 sm:$0xff]   ;;  %v7074_v41 = vsub.s32 2, %v6956_v7  ;;  %vm3096_vm2 = vcmask 1042432  }
  0x87   :  { %v6012_v37 = vld [vmem:[%s8822_s2 + $0x264] ss:$16 sps:$4 sm:$0xff]   ;;  %v6015_v38 = vld [vmem:[%s8822_s2 + $0x26c] ss:$16 sps:$4 sm:$0xff]   ;;  %vm3703_vm3 = vcmp.lt.s32.totalorder %v6956_v7, 2  ;;  %vm3955_vm4 = vcmask 1043456  }
  0x88   :  { %v6999_v45 = vpop.permute.xlu1 %92  ;;  %v77_v46 = vpop.permute.xlu0 %76 }
  0x89   :  { %v153_v47 = vsel %vm88_vm6, %v152_v42, %v77_v46  ;;  %v172_v48 = vsel %vm80_vm5, %v70_v23, %v77_v46 }
  0x8a   :  { %v271_v49 = vsub.f32 %v153_v47, %v213_v44  ;;  %183 = vrot.lane.b32.xlu0 %v172_v48, %s6660_s20  ;;  %v6013_v47 = vld [vmem:[%s8822_s2 + $0x268] ss:$16 sps:$4 sm:$0xff]   ;;  %v220_v48 = vsub.s32 5, %v6956_v7 }
  0x8c   :  { %v285_v50 = vmul.f32 500.0, %v271_v49  ;;  %v7004_v51 = vpop.permute.xlu1 %86  ;;  %v7006_v52 = vpop.permute.xlu0 %94 }
  0x8d   :  { %v6567_v53 = vpop.eup %6566  ;;  %v97_v42 = vsel %vm96_vm7, %v6999_v45, %v7006_v52  ;;  %v6018_v45 = vld [vmem:[%s8822_s2 + $0x284] ss:$16 sps:$4 sm:$0xff]  }
  0x8e   :  { %v338_v54 = vadd.f32 1.0, %v6567_v53  ;;  %v299_v55 = vsub.f32 0.0, %v285_v50  ;;  %v6021_v50 = vld [vmem:[%s8822_s2 + $0x28c] ss:$16 sps:$4 sm:$0xff]   ;;  %v155_v52 = vsel %vm103_vm8, %v7004_v51, %v97_v42  ;;  %v209_v53 = vrot.slane %v6964_v11, %v7074_v41 }
  0x8f   :  { %v6069_v42 = vld [vmem:[%s8822_s2 + $0x38c] ss:$16 sps:$4 sm:$0xff]  }
  0x90   :  { %v6569_v56 = vpop.eup %6568  ;;  %v316_v57 = vmul.f32 1.442695, %v299_v55  ;;  %v85_v58 = vpop.permute.xlu1 %84  ;;  %6570 = vrcp.f32 %v338_v54  ;;  %v6016_v54 = vld [vmem:[%s8822_s2 + $0x280] ss:$16 sps:$4 sm:$0xff]   ;;  %v6019_v55 = vld [vmem:[%s8822_s2 + $0x288] ss:$16 sps:$4 sm:$0xff]  }
  0x91   :  { %v79_v59 = vpop.permute.xlu0 %78  ;;  %v339_v60 = vadd.f32 1.0, %v6569_v56  ;;  %v89_v61 = vsel %vm88_vm6, %v85_v58, %v7004_v51  ;;  %v221_v56 = vrot.slane %v6964_v11, %v220_v48  ;;  %v6024_v51 = vld [vmem:[%s8822_s2 + $0x2a4] ss:$16 sps:$4 sm:$0xff]   ;;  %v6022_v11 = vld [vmem:[%s8822_s2 + $0x2a0] ss:$16 sps:$4 sm:$0xff]   ;;  %vm6663_vm6 = vmmov 0  }
  0x92   :  { %v81_v62 = vsel %vm80_vm5, %v77_v46, %v79_v59  ;;  %6572 = vpow2.f32 %v316_v57  ;;  %v6010_v46 = vld [vmem:[%s8822_s2 + $0x260] ss:$16 sps:$4 sm:$0xff]   ;;  %v6027_v57 = vld [vmem:[%s8822_s2 + $0x2ac] ss:$16 sps:$4 sm:$0xff]   ;;  %v270_v59 = vsub.f32 %v6993_v43, %v209_v53  ;;  %vm3951_vm5 = vcmask 162816  }
  0x93   :  { %v7012_v63 = vsel %vm96_vm7, %v81_v62, %v89_v61  ;;  %6574 = vrcp.f32 %v339_v60  ;;  %v6025_v60 = vld [vmem:[%s8822_s2 + $0x2a8] ss:$16 sps:$4 sm:$0xff]   ;;  %v6030_v62 = vld [vmem:[%s8822_s2 + $0x2c4] ss:$16 sps:$4 sm:$0xff]   ;;  %v6033_v43 = vld [vmem:[%s8822_s2 + $0x2cc] ss:$16 sps:$4 sm:$0xff]  }
  0x94   :  { %v102_v2 = vpop.permute.xlu1 %101  ;;  %vm4889_vm7 = vcmask 80896  }
  0x95   :  { %v7014_v3 = vpop.permute.xlu0 %99 }
  0x96   :  { %v104_v4 = vsel %vm103_vm8, %v7014_v3, %v102_v2  ;;  %v156_v58 = vsel %vm111_vm10, %v155_v52, %v7014_v3  ;;  %v284_v2 = vmul.f32 500.0, %v270_v59  ;;  %v6028_v3 = vld [vmem:[%s8822_s2 + $0x2c0] ss:$16 sps:$4 sm:$0xff]   ;;  %v6075_v52 = vld [vmem:[%s8822_s2 + $0x3ac] ss:$16 sps:$4 sm:$0xff]  }
  0x97   :  { %v273_v61 = vsub.f32 %v156_v58, %v221_v56  ;;  %v6078_v56 = vld [vmem:[%s8822_s2 + $0x3c4] ss:$16 sps:$4 sm:$0xff]   ;;  %v6079_v58 = vld [vmem:[%s8822_s2 + $0x3c8] ss:$16 sps:$4 sm:$0xff]  }
  0x98   :  { %v110_v5 = vpop.permute.xlu1 %109  ;;  %v6084_v59 = vld [vmem:[%s8822_s2 + $0x3e4] ss:$16 sps:$4 sm:$0xff]  }
  0x99   :  { %v108_v6 = vpop.permute.xlu0 %107 }
  0x9a   :  { %v112_v9 = vsel %vm111_vm10, %v108_v6, %v110_v5  ;;  %v6571_v12 = vpop.eup %6570  ;;  %v287_v5 = vmul.f32 500.0, %v273_v61  ;;  %v6036_v6 = vld [vmem:[%s8822_s2 + $0x2e4] ss:$16 sps:$4 sm:$0xff]   ;;  %v6085_v61 = vld [vmem:[%s8822_s2 + $0x3e8] ss:$16 sps:$4 sm:$0xff]  }
  0x9b   :  { %v157_v10 = vsel %vm118_vm9, %v104_v4, %v112_v9  ;;  %v380_v23 = vpack.c.bf16 %v6571_v12, %v6571_v12  ;;  %v6031_v4 = vld [vmem:[%s8822_s2 + $0x2c8] ss:$16 sps:$4 sm:$0xff]   ;;  %v6039_v9 = vld [vmem:[%s8822_s2 + $0x2ec] ss:$16 sps:$4 sm:$0xff]   ;;  %v6034_v12 = vld [vmem:[%s8822_s2 + $0x2e0] ss:$16 sps:$4 sm:$0xff]  }
  0x9c   :  { %v6573_v14 = vpop.eup %6572  ;;  %v7026_v17 = vpop.permute.xlu1 %116 }
  0x9d   :  { %v7028_v18 = vpop.permute.xlu0 %114  ;;  %v6575_v19 = vpop.eup %6574  ;;  %v341_v21 = vadd.f32 1.0, %v6573_v14  ;;  %v6037_v14 = vld [vmem:[%s8822_s2 + $0x2e8] ss:$16 sps:$4 sm:$0xff]  }
  0x9e   :  { %v7032_v20 = vsel %vm126_vm11, %v157_v10, %v7028_v18  ;;  %v381_v22 = vpack.c.bf16 %v6575_v19, %v6575_v19  ;;  %v298_v10 = vsub.f32 0.0, %v284_v2  ;;  %v6045_v19 = vld [vmem:[%s8822_s2 + $0x30c] ss:$16 sps:$4 sm:$0xff]  }
  0x9f   :  { %6576 = vrcp.f32 %v341_v21  ;;  %v6040_v21 = vld [vmem:[%s8822_s2 + $0x300] ss:$16 sps:$4 sm:$0xff]  }
  0xa0   :  { %3141 = vmatprep.mubr.bf16.mxu0 %v381_v22  ;;  %3428 = vmatprep.mubr.bf16.mxu1 %v381_v22  ;;  %v7040_v26 = vpop.permute.xlu1 %124  ;;  %v314_v22 = vmul.f32 1.442695, %v298_v10  ;;  %v6099_v10 = vld [vmem:[%s8822_s2 + $0x42c] ss:$16 sps:$4 sm:$0xff]  }
  0xa1   :  { %v7042_v27 = vpop.permute.xlu0 %122  ;;  %3142 = vmatmul.mubr.bf16.vlgmr.msra.gmra.mrb[0].mxu0 %v380_v23  ;;  %3429 = vmatmul.mubr.bf16.vlgmr.msra.gmra.mrb[0].mxu1 %v380_v23  ;;  %v6043_v23 = vld [vmem:[%s8822_s2 + $0x308] ss:$16 sps:$4 sm:$0xff]  }
  0xa2   :  { %3151 = vmatpush1.bf16.msra.mxu0 %v5992_v15  ;;  %3438 = vmatpush1.bf16.msra.mxu1 %v5995_v16  ;;  %v301_v15 = vsub.f32 0.0, %v287_v5  ;;  %v6042_v16 = vld [vmem:[%s8822_s2 + $0x304] ss:$16 sps:$4 sm:$0xff]   ;;  %6578 = vpow2.f32 %v314_v22  ;;  %v6103_v22 = vld [vmem:[%s8822_s2 + $0x448] ss:$16 sps:$4 sm:$0xff]  }
  0xa3   :  { %3152 = vmatprep.subr.bf16.mxu0 %v6000_v24  ;;  %3439 = vmatprep.subr.bf16.mxu1 %v6003_v25  ;;  %v6048_v25 = vld [vmem:[%s8822_s2 + $0x324] ss:$16 sps:$4 sm:$0xff]  }
  0xa4   :  { %v133_v32 = vpop.permute.xlu1 %132  ;;  %v320_v24 = vmul.f32 1.442695, %v301_v15  ;;  %v6097_v15 = vld [vmem:[%s8822_s2 + $0x428] ss:$16 sps:$4 sm:$0xff]  }
  0xa5   :  { %v131_v0 = vpop.permute.xlu0 %130 }
  0xa6   :  { %v135_v1 = vsel %vm134_vm13, %v131_v0, %v133_v32  ;;  %3153 = vmatpush1.bf16.msra.mxu0 %v5998_v28  ;;  %3440 = vmatpush1.bf16.msra.mxu1 %v6001_v29  ;;  %v6051_v28 = vld [vmem:[%s8822_s2 + $0x32c] ss:$16 sps:$4 sm:$0xff]   ;;  %v6046_v29 = vld [vmem:[%s8822_s2 + $0x320] ss:$16 sps:$4 sm:$0xff]   ;;  %6580 = vpow2.f32 %v320_v24 }
  0xa7   :  { %v160_v36 = vsel %vm141_vm12, %v7040_v26, %v135_v1  ;;  %3154 = vmatprep.subr.bf16.mxu0 %v6006_v30  ;;  %3441 = vmatprep.subr.bf16.mxu1 %v6009_v31  ;;  %v6049_v30 = vld [vmem:[%s8822_s2 + $0x328] ss:$16 sps:$4 sm:$0xff]   ;;  %v6054_v31 = vld [vmem:[%s8822_s2 + $0x344] ss:$16 sps:$4 sm:$0xff]   ;;  %v6057_v32 = vld [vmem:[%s8822_s2 + $0x34c] ss:$16 sps:$4 sm:$0xff]  }
  0xa8   :  { %v6052_v0 = vld [vmem:[%s8822_s2 + $0x340] ss:$16 sps:$4 sm:$0xff]   ;;  %v6055_v1 = vld [vmem:[%s8822_s2 + $0x348] ss:$16 sps:$4 sm:$0xff]   ;;  %v6111_v24 = vld [vmem:[%s8822_s2 + $0x46c] ss:$16 sps:$4 sm:$0xff]  }
  0xa9   :  { %v7071_v39 = vpop.permute.xlu0 %137  ;;  %v6577_v40 = vpop.eup %6576 }
  0xaa   :  { %v7080_v44 = vsel %vm161_vm14, %v160_v36, %v7071_v39  ;;  %3155 = vmatpush1.bf16.msra.mxu0 %v6004_v34  ;;  %3442 = vmatpush1.bf16.msra.mxu1 %v6007_v35  ;;  %v383_v49 = vpack.c.bf16 %v6577_v40, %v6577_v40  ;;  %v6060_v34 = vld [vmem:[%s8822_s2 + $0x364] ss:$16 sps:$4 sm:$0xff]   ;;  %v6063_v35 = vld [vmem:[%s8822_s2 + $0x36c] ss:$16 sps:$4 sm:$0xff]   ;;  %v6058_v36 = vld [vmem:[%s8822_s2 + $0x360] ss:$16 sps:$4 sm:$0xff]  }
  0xab   :  { %3156 = vmatprep.subr.bf16.mxu0 %v6012_v37  ;;  %3443 = vmatprep.subr.bf16.mxu1 %v6015_v38  ;;  %v6061_v37 = vld [vmem:[%s8822_s2 + $0x368] ss:$16 sps:$4 sm:$0xff]   ;;  %v6066_v40 = vld [vmem:[%s8822_s2 + $0x384] ss:$16 sps:$4 sm:$0xff]  }
  0xac   :  { %3182 = vmatprep.mubr.bf16.mxu0 %v383_v49  ;;  %3469 = vmatprep.mubr.bf16.mxu1 %v383_v49  ;;  %v6579_v38 = vpop.eup %6578  ;;  %v6064_v49 = vld [vmem:[%s8822_s2 + $0x380] ss:$16 sps:$4 sm:$0xff]  }
  0xae   :  { %3157 = vmatpush1.bf16.msra.mxu0 %v6010_v46  ;;  %3444 = vmatpush1.bf16.msra.mxu1 %v6013_v47  ;;  %v340_v47 = vadd.f32 1.0, %v6579_v38  ;;  %v6123_v38 = vld [vmem:[%s8822_s2 + $0x4ac] ss:$16 sps:$4 sm:$0xff]  }
  0xaf   :  { %3158 = vmatprep.subr.bf16.mxu0 %v6018_v45  ;;  %3445 = vmatprep.subr.bf16.mxu1 %v6021_v50  ;;  %v6067_v45 = vld [vmem:[%s8822_s2 + $0x388] ss:$16 sps:$4 sm:$0xff]   ;;  %v6072_v50 = vld [vmem:[%s8822_s2 + $0x3a4] ss:$16 sps:$4 sm:$0xff]  }
  0xb0   :  { %v6581_v46 = vpop.eup %6580  ;;  %6582 = vrcp.f32 %v340_v47  ;;  %v6121_v47 = vld [vmem:[%s8822_s2 + $0x4a8] ss:$16 sps:$4 sm:$0xff]  }
  0xb1   :  { %v343_v53 = vadd.f32 1.0, %v6581_v46  ;;  %v6118_v46 = vld [vmem:[%s8822_s2 + $0x4a0] ss:$16 sps:$4 sm:$0xff]  }
  0xb2   :  { %3159 = vmatpush1.bf16.msra.mxu0 %v6016_v54  ;;  %3446 = vmatpush1.bf16.msra.mxu1 %v6019_v55  ;;  %v6070_v54 = vld [vmem:[%s8822_s2 + $0x3a0] ss:$16 sps:$4 sm:$0xff]   ;;  %v6073_v55 = vld [vmem:[%s8822_s2 + $0x3a8] ss:$16 sps:$4 sm:$0xff]  }
  0xb3   :  { %3160 = vmatprep.subr.bf16.mxu0 %v6024_v51  ;;  %3447 = vmatprep.subr.bf16.mxu1 %v6027_v57  ;;  %v6081_v51 = vld [vmem:[%s8822_s2 + $0x3cc] ss:$16 sps:$4 sm:$0xff]   ;;  %6584 = vrcp.f32 %v343_v53  ;;  %v6076_v57 = vld [vmem:[%s8822_s2 + $0x3c0] ss:$16 sps:$4 sm:$0xff]  }
  0xb6   :  { %3161 = vmatpush1.bf16.msra.mxu0 %v6022_v11  ;;  %3448 = vmatpush1.bf16.msra.mxu1 %v6025_v60  ;;  %v6087_v11 = vld [vmem:[%s8822_s2 + $0x3ec] ss:$16 sps:$4 sm:$0xff]   ;;  %v6082_v60 = vld [vmem:[%s8822_s2 + $0x3e0] ss:$16 sps:$4 sm:$0xff]  }
  0xb7   :  { %3162 = vmatprep.subr.bf16.mxu0 %v6030_v62  ;;  %3449 = vmatprep.subr.bf16.mxu1 %v6033_v43  ;;  %v6090_v62 = vld [vmem:[%s8822_s2 + $0x404] ss:$16 sps:$4 sm:$0xff]   ;;  %v6093_v43 = vld [vmem:[%s8822_s2 + $0x40c] ss:$16 sps:$4 sm:$0xff]  }
  0xba   :  { %3163 = vmatpush1.bf16.msra.mxu0 %v6028_v3  ;;  %3450 = vmatpush1.bf16.msra.mxu1 %v6031_v4  ;;  %v6583_v2 = vpop.eup %6582  ;;  %v6088_v3 = vld [vmem:[%s8822_s2 + $0x400] ss:$16 sps:$4 sm:$0xff]   ;;  %v6091_v4 = vld [vmem:[%s8822_s2 + $0x408] ss:$16 sps:$4 sm:$0xff]  }
  0xbb   :  { %3164 = vmatprep.subr.bf16.mxu0 %v6036_v6  ;;  %3451 = vmatprep.subr.bf16.mxu1 %v6039_v9  ;;  %v382_v6 = vpack.c.bf16 %v6583_v2, %v6583_v2  ;;  %v6096_v9 = vld [vmem:[%s8822_s2 + $0x424] ss:$16 sps:$4 sm:$0xff]   ;;  %v6130_v2 = vld [vmem:[%s8822_s2 + $0x4e0] ss:$16 sps:$4 sm:$0xff]  }
  0xbd   :  { %v6585_v5 = vpop.eup %6584 }
  0xbe   :  { %3165 = vmatpush1.bf16.msra.mxu0 %v6034_v12  ;;  %3452 = vmatpush1.bf16.msra.mxu1 %v6037_v14  ;;  %v385_v12 = vpack.c.bf16 %v6585_v5, %v6585_v5  ;;  %v6094_v14 = vld [vmem:[%s8822_s2 + $0x420] ss:$16 sps:$4 sm:$0xff]   ;;  %v6141_v5 = vld [vmem:[%s8822_s2 + $0x50c] ss:$16 sps:$4 sm:$0xff]  }
  0xbf   :  { %3166 = vmatprep.subr.bf16.mxu0 %v6042_v16  ;;  %3453 = vmatprep.subr.bf16.mxu1 %v6045_v19  ;;  %v6102_v16 = vld [vmem:[%s8822_s2 + $0x444] ss:$16 sps:$4 sm:$0xff]   ;;  %v6105_v19 = vld [vmem:[%s8822_s2 + $0x44c] ss:$16 sps:$4 sm:$0xff]  }
  0xc2   :  { %3167 = vmatpush1.bf16.msra.mxu0 %v6040_v21  ;;  %3454 = vmatpush1.bf16.msra.mxu1 %v6043_v23  ;;  %v6100_v21 = vld [vmem:[%s8822_s2 + $0x440] ss:$16 sps:$4 sm:$0xff]   ;;  %v6108_v23 = vld [vmem:[%s8822_s2 + $0x464] ss:$16 sps:$4 sm:$0xff]  }
  0xc3   :  { %3168 = vmatprep.subr.bf16.mxu0 %v6048_v25  ;;  %3455 = vmatprep.subr.bf16.mxu1 %v6051_v28  ;;  %v216_v25 = vsub.s32 4, %v6956_v7  ;;  %v228_v28 = vsub.s32 7, %v6956_v7 }
  0xc6   :  { %3169 = vmatpush1.bf16.msra.mxu0 %v6046_v29  ;;  %3456 = vmatpush1.bf16.msra.mxu1 %v6049_v30  ;;  %v6106_v29 = vld [vmem:[%s8822_s2 + $0x460] ss:$16 sps:$4 sm:$0xff]   ;;  %v6109_v30 = vld [vmem:[%s8822_s2 + $0x468] ss:$16 sps:$4 sm:$0xff]  }
  0xc7   :  { %3170 = vmatprep.subr.bf16.mxu0 %v6054_v31  ;;  %3457 = vmatprep.subr.bf16.mxu1 %v6057_v32  ;;  %v6114_v31 = vld [vmem:[%s8822_s2 + $0x484] ss:$16 sps:$4 sm:$0xff]   ;;  %v6117_v32 = vld [vmem:[%s8822_s2 + $0x48c] ss:$16 sps:$4 sm:$0xff]  }
  0xca   :  { %3171 = vmatpush1.bf16.msra.mxu0 %v6052_v0  ;;  %3458 = vmatpush1.bf16.msra.mxu1 %v6055_v1  ;;  %v119_v0 = vsel %vm118_vm9, %v7028_v18, %v7026_v17  ;;  %v127_v1 = vsel %vm126_vm11, %v7042_v27, %v7040_v26  ;;  %v6112_v17 = vld [vmem:[%s8822_s2 + $0x480] ss:$16 sps:$4 sm:$0xff]   ;;  %v6115_v18 = vld [vmem:[%s8822_s2 + $0x488] ss:$16 sps:$4 sm:$0xff]   ;;  %v6120_v27 = vld [vmem:[%s8822_s2 + $0x4a4] ss:$16 sps:$4 sm:$0xff]  }
  0xcb   :  { %3172 = vmatprep.subr.bf16.mxu0 %v6060_v34  ;;  %3459 = vmatprep.subr.bf16.mxu1 %v6063_v35  ;;  %v7308_v34 = vld [vmem:[%s8823_s1] sm:$0xff]  ;;  %v159_v26 = vsel %vm134_vm13, %v119_v0, %v127_v1  ;;  %v6165_v0 = vld [vmem:[%s8822_s2 + $0x58c] ss:$16 sps:$4 sm:$0xff]  }
  0xcc   :  { %v217_v35 = vrot.slane %v7308_v34, %v216_v25 }
  0xce   :  { %3173 = vmatpush1.bf16.msra.mxu0 %v6058_v36  ;;  %3460 = vmatpush1.bf16.msra.mxu1 %v6061_v37  ;;  %v229_v36 = vrot.slane %v7308_v34, %v228_v28  ;;  %v7312_v37 = vpop.permute.xlu1 %139  ;;  %v6159_v28 = vld [vmem:[%s8822_s2 + $0x56c] ss:$16 sps:$4 sm:$0xff]  }
  0xcf   :  { %3174 = vmatprep.subr.bf16.mxu0 %v6066_v40  ;;  %3461 = vmatprep.subr.bf16.mxu1 %v6069_v42  ;;  %v272_v40 = vsub.f32 %v7012_v63, %v217_v35  ;;  %v6126_v63 = vld [vmem:[%s8822_s2 + $0x4c4] ss:$16 sps:$4 sm:$0xff]  }
  0xd0   :  { %v275_v42 = vsub.f32 %v159_v26, %v229_v36  ;;  %v6160_v36 = vld [vmem:[%s8822_s2 + $0x580] ss:$16 sps:$4 sm:$0xff]   ;;  %v6171_v26 = vld [vmem:[%s8822_s2 + $0x5ac] ss:$16 sps:$4 sm:$0xff]  }
  0xd1   :  { %v286_v53 = vmul.f32 500.0, %v272_v40  ;;  %v6169_v40 = vld [vmem:[%s8822_s2 + $0x5a8] ss:$16 sps:$4 sm:$0xff]  }
  0xd2   :  { %3175 = vmatpush1.bf16.msra.mxu0 %v6064_v49  ;;  %3462 = vmatpush1.bf16.msra.mxu1 %v6067_v45  ;;  %v7337_v49 = vld [vmem:[%s8823_s1 + $0x8] sm:$0x3f] }
  0xd3   :  { %3176 = vmatprep.subr.bf16.mxu0 %v6072_v50  ;;  %3463 = vmatprep.subr.bf16.mxu1 %v6075_v52  ;;  %v6129_v45 = vld [vmem:[%s8822_s2 + $0x4cc] ss:$16 sps:$4 sm:$0xff]   ;;  %v7347_v52 = vpop.permute.xlu0 %145 }
  0xd6   :  { %3177 = vmatpush1.bf16.msra.mxu0 %v6070_v54  ;;  %3464 = vmatpush1.bf16.msra.mxu1 %v6073_v55  ;;  %v289_v54 = vmul.f32 500.0, %v275_v42  ;;  %v6124_v55 = vld [vmem:[%s8822_s2 + $0x4c0] ss:$16 sps:$4 sm:$0xff]   ;;  %v6174_v42 = vld [vmem:[%s8822_s2 + $0x5c4] ss:$16 sps:$4 sm:$0xff]  }
  0xd7   :  { %3178 = vmatprep.subr.bf16.mxu0 %v6078_v56  ;;  %3465 = vmatprep.subr.bf16.mxu1 %v6081_v51  ;;  %v6127_v56 = vld [vmem:[%s8822_s2 + $0x4c8] ss:$16 sps:$4 sm:$0xff]   ;;  %v7356_v51 = vrot.slane %v7337_v49, %v216_v25  ;;  %v6156_v25 = vld [vmem:[%s8822_s2 + $0x564] ss:$16 sps:$4 sm:$0xff]  }
  0xda   :  { %3179 = vmatpush1.bf16.msra.mxu0 %v6076_v57  ;;  %3466 = vmatpush1.bf16.msra.mxu1 %v6079_v58  ;;  %v6132_v57 = vld [vmem:[%s8822_s2 + $0x4e4] ss:$16 sps:$4 sm:$0xff]   ;;  %v6135_v58 = vld [vmem:[%s8822_s2 + $0x4ec] ss:$16 sps:$4 sm:$0xff]  }
  0xdb   :  { %3180 = vmatprep.subr.bf16.mxu0 %v6084_v59  ;;  %3467 = vmatprep.subr.bf16.mxu1 %v6087_v11 }
  0xde   :  { %3181 = vmatpush1.bf16.msra.mxu0 %v6082_v60  ;;  %3468 = vmatpush1.bf16.msra.mxu1 %v6085_v61  ;;  %v300_v60 = vsub.f32 0.0, %v286_v53  ;;  %v6183_v53 = vld [vmem:[%s8822_s2 + $0x5ec] ss:$16 sps:$4 sm:$0xff]  }
  0xdf   :  { %3191 = vmatprep.subr.bf16.mxu0 %v6090_v62  ;;  %3478 = vmatprep.subr.bf16.mxu1 %v6093_v43  ;;  %v303_v62 = vsub.f32 0.0, %v289_v54  ;;  %v6178_v54 = vld [vmem:[%s8822_s2 + $0x5e0] ss:$16 sps:$4 sm:$0xff]  }
  0xe1   :  { %3183 = vmatmul.mubr.bf16.vlgmr.msra.gmra.mrb[0].mxu0 %v382_v6  ;;  %3470 = vmatmul.mubr.bf16.vlgmr.msra.gmra.mrb[0].mxu1 %v382_v6  ;;  %v318_v6 = vmul.f32 1.442695, %v300_v60 }
  0xe2   :  { %3192 = vmatpush1.bf16.msra.mxu0 %v6088_v3  ;;  %3479 = vmatpush1.bf16.msra.mxu1 %v6091_v4  ;;  %v6133_v3 = vld [vmem:[%s8822_s2 + $0x4e8] ss:$16 sps:$4 sm:$0xff]   ;;  %v6138_v4 = vld [vmem:[%s8822_s2 + $0x504] ss:$16 sps:$4 sm:$0xff]  }
  0xe3   :  { %3193 = vmatprep.subr.bf16.mxu0 %v6096_v9  ;;  %3480 = vmatprep.subr.bf16.mxu1 %v6099_v10  ;;  %v324_v9 = vmul.f32 1.442695, %v303_v62  ;;  %v6136_v10 = vld [vmem:[%s8822_s2 + $0x500] ss:$16 sps:$4 sm:$0xff]   ;;  %6586 = vpow2.f32 %v318_v6 }
  0xe4   :  { %3223 = vmatprep.mubr.bf16.mxu0 %v385_v12  ;;  %3510 = vmatprep.mubr.bf16.mxu1 %v385_v12  ;;  %v6139_v12 = vld [vmem:[%s8822_s2 + $0x508] ss:$16 sps:$4 sm:$0xff]   ;;  %v6184_v62 = vld [vmem:[%s8822_s2 + $0x600] ss:$16 sps:$4 sm:$0xff]  }
  0xe5   :  { %6588 = vpow2.f32 %v324_v9  ;;  %v6190_v9 = vld [vmem:[%s8822_s2 + $0x620] ss:$16 sps:$4 sm:$0xff]  }
  0xe6   :  { %3194 = vmatpush1.bf16.msra.mxu0 %v6094_v14  ;;  %3481 = vmatpush1.bf16.msra.mxu1 %v6097_v15  ;;  %v6144_v14 = vld [vmem:[%s8822_s2 + $0x524] ss:$16 sps:$4 sm:$0xff]   ;;  %v6147_v15 = vld [vmem:[%s8822_s2 + $0x52c] ss:$16 sps:$4 sm:$0xff]  }
  0xe7   :  { %3195 = vmatprep.subr.bf16.mxu0 %v6102_v16  ;;  %3482 = vmatprep.subr.bf16.mxu1 %v6105_v19  ;;  %v6142_v16 = vld [vmem:[%s8822_s2 + $0x520] ss:$16 sps:$4 sm:$0xff]   ;;  %v6145_v19 = vld [vmem:[%s8822_s2 + $0x528] ss:$16 sps:$4 sm:$0xff]  }
  0xe8   :  { %v7345_v50 = vpop.permute.xlu1 %177 }
  0xea   :  { %3196 = vmatpush1.bf16.msra.mxu0 %v6100_v21  ;;  %3483 = vmatpush1.bf16.msra.mxu1 %v6103_v22  ;;  %v6150_v21 = vld [vmem:[%s8822_s2 + $0x544] ss:$16 sps:$4 sm:$0xff]   ;;  %v6153_v22 = vld [vmem:[%s8822_s2 + $0x54c] ss:$16 sps:$4 sm:$0xff]  }
  0xeb   :  { %3197 = vmatprep.subr.bf16.mxu0 %v6108_v23  ;;  %3484 = vmatprep.subr.bf16.mxu1 %v6111_v24  ;;  %v6148_v23 = vld [vmem:[%s8822_s2 + $0x540] ss:$16 sps:$4 sm:$0xff]   ;;  %v6151_v24 = vld [vmem:[%s8822_s2 + $0x548] ss:$16 sps:$4 sm:$0xff]  }
  0xee   :  { %3198 = vmatpush1.bf16.msra.mxu0 %v6106_v29  ;;  %3485 = vmatpush1.bf16.msra.mxu1 %v6109_v30  ;;  %v6154_v29 = vld [vmem:[%s8822_s2 + $0x560] ss:$16 sps:$4 sm:$0xff]   ;;  %v6157_v30 = vld [vmem:[%s8822_s2 + $0x568] ss:$16 sps:$4 sm:$0xff]  }
  0xef   :  { %3199 = vmatprep.subr.bf16.mxu0 %v6114_v31  ;;  %3486 = vmatprep.subr.bf16.mxu1 %v6117_v32  ;;  %v6587_v31 = vpop.eup %6586  ;;  %v6162_v32 = vld [vmem:[%s8822_s2 + $0x584] ss:$16 sps:$4 sm:$0xff]  }
  0xf0   :  { %v6589_v1 = vpop.eup %6588  ;;  %v342_v35 = vadd.f32 1.0, %v6587_v31  ;;  %v237_v31 = vrot.slane %v7337_v49, %v6970_v13 }
  0xf2   :  { %3200 = vmatpush1.bf16.msra.mxu0 %v6112_v17  ;;  %3487 = vmatpush1.bf16.msra.mxu1 %v6115_v18  ;;  %v6163_v17 = vld [vmem:[%s8822_s2 + $0x588] ss:$16 sps:$4 sm:$0xff]   ;;  %v6168_v18 = vld [vmem:[%s8822_s2 + $0x5a4] ss:$16 sps:$4 sm:$0xff]   ;;  %6590 = vrcp.f32 %v342_v35 }
  0xf3   :  { %3201 = vmatprep.subr.bf16.mxu0 %v6120_v27  ;;  %3488 = vmatprep.subr.bf16.mxu1 %v6123_v38  ;;  %v345_v27 = vadd.f32 1.0, %v6589_v1  ;;  %v6166_v38 = vld [vmem:[%s8822_s2 + $0x5a0] ss:$16 sps:$4 sm:$0xff]  }
  0xf5   :  { %6592 = vrcp.f32 %v345_v27 }
  0xf6   :  { %3202 = vmatpush1.bf16.msra.mxu0 %v6118_v46  ;;  %3489 = vmatpush1.bf16.msra.mxu1 %v6121_v47  ;;  %v6177_v46 = vld [vmem:[%s8822_s2 + $0x5cc] ss:$16 sps:$4 sm:$0xff]   ;;  %v6172_v47 = vld [vmem:[%s8822_s2 + $0x5c0] ss:$16 sps:$4 sm:$0xff]  }
  0xf7   :  { %3203 = vmatprep.subr.bf16.mxu0 %v6126_v63  ;;  %3490 = vmatprep.subr.bf16.mxu1 %v6129_v45  ;;  %v6175_v63 = vld [vmem:[%s8822_s2 + $0x5c8] ss:$16 sps:$4 sm:$0xff]   ;;  %v6180_v45 = vld [vmem:[%s8822_s2 + $0x5e4] ss:$16 sps:$4 sm:$0xff]  }
  0xf8   :  { %v7364_v59 = vpop.permute.xlu1 %181  ;;  %v7366_v11 = vpop.permute.xlu0 %179 }
  0xf9   :  { %v7371_v61 = vsel %vm185_vm15, %v7366_v11, %v7364_v59 }
  0xfa   :  { %v280_v43 = vsub.f32 %v7371_v61, %v7356_v51  ;;  %3204 = vmatpush1.bf16.msra.mxu0 %v6124_v55  ;;  %3491 = vmatpush1.bf16.msra.mxu1 %v6127_v56  ;;  %v6181_v55 = vld [vmem:[%s8822_s2 + $0x5e8] ss:$16 sps:$4 sm:$0xff]   ;;  %v6186_v56 = vld [vmem:[%s8822_s2 + $0x604] ss:$16 sps:$4 sm:$0xff]   ;;  %v6519_v51 = vld [vmem:[%s8822_s2 + $0xcec] ss:$16 sps:$4 sm:$0xff]  }
  0xfb   :  { %3205 = vmatprep.subr.bf16.mxu0 %v6132_v57  ;;  %3492 = vmatprep.subr.bf16.mxu1 %v6135_v58  ;;  %v6189_v57 = vld [vmem:[%s8822_s2 + $0x60c] ss:$16 sps:$4 sm:$0xff]  }
  0xfc   :  { %v6591_v58 = vpop.eup %6590 }
  0xfe   :  { %3206 = vmatpush1.bf16.msra.mxu0 %v6130_v2  ;;  %3493 = vmatpush1.bf16.msra.mxu1 %v6133_v3  ;;  %v6187_v2 = vld [vmem:[%s8822_s2 + $0x608] ss:$16 sps:$4 sm:$0xff]   ;;  %v384_v3 = vpack.c.bf16 %v6591_v58, %v6591_v58  ;;  %v6232_v58 = vld [vmem:[%s8822_s2 + $0x700] ss:$16 sps:$4 sm:$0xff]  }
  0xff   :  { %3207 = vmatprep.subr.bf16.mxu0 %v6138_v4  ;;  %3494 = vmatprep.subr.bf16.mxu1 %v6141_v5  ;;  %v6593_v60 = vpop.eup %6592  ;;  %v6192_v4 = vld [vmem:[%s8822_s2 + $0x624] ss:$16 sps:$4 sm:$0xff]   ;;  %v6195_v5 = vld [vmem:[%s8822_s2 + $0x62c] ss:$16 sps:$4 sm:$0xff]  }
 0x100   :  { %v387_v6 = vpack.c.bf16 %v6593_v60, %v6593_v60  ;;  %v6235_v60 = vld [vmem:[%s8822_s2 + $0x708] ss:$16 sps:$4 sm:$0xff]  }
 0x102   :  { %3208 = vmatpush1.bf16.msra.mxu0 %v6136_v10  ;;  %3495 = vmatpush1.bf16.msra.mxu1 %v6139_v12  ;;  %v6193_v10 = vld [vmem:[%s8822_s2 + $0x628] ss:$16 sps:$4 sm:$0xff]   ;;  %v6198_v12 = vld [vmem:[%s8822_s2 + $0x644] ss:$16 sps:$4 sm:$0xff]  }
 0x103   :  { %3209 = vmatprep.subr.bf16.mxu0 %v6144_v14  ;;  %3496 = vmatprep.subr.bf16.mxu1 %v6147_v15  ;;  %v6201_v14 = vld [vmem:[%s8822_s2 + $0x64c] ss:$16 sps:$4 sm:$0xff]   ;;  %v6196_v15 = vld [vmem:[%s8822_s2 + $0x640] ss:$16 sps:$4 sm:$0xff]  }
 0x106   :  { %3210 = vmatpush1.bf16.msra.mxu0 %v6142_v16  ;;  %3497 = vmatpush1.bf16.msra.mxu1 %v6145_v19  ;;  %v6199_v16 = vld [vmem:[%s8822_s2 + $0x648] ss:$16 sps:$4 sm:$0xff]   ;;  %v6204_v19 = vld [vmem:[%s8822_s2 + $0x664] ss:$16 sps:$4 sm:$0xff]  }
 0x107   :  { %3211 = vmatprep.subr.bf16.mxu0 %v6150_v21  ;;  %3498 = vmatprep.subr.bf16.mxu1 %v6153_v22  ;;  %v6207_v21 = vld [vmem:[%s8822_s2 + $0x66c] ss:$16 sps:$4 sm:$0xff]   ;;  %v224_v22 = vsub.s32 6, %v6956_v7 }
 0x10a   :  { %3212 = vmatpush1.bf16.msra.mxu0 %v6148_v23  ;;  %3499 = vmatpush1.bf16.msra.mxu1 %v6151_v24  ;;  %v6202_v23 = vld [vmem:[%s8822_s2 + $0x660] ss:$16 sps:$4 sm:$0xff]   ;;  %v6205_v24 = vld [vmem:[%s8822_s2 + $0x668] ss:$16 sps:$4 sm:$0xff]  }
 0x10b   :  { %3213 = vmatprep.subr.bf16.mxu0 %v6156_v25  ;;  %3500 = vmatprep.subr.bf16.mxu1 %v6159_v28  ;;  %v6210_v25 = vld [vmem:[%s8822_s2 + $0x684] ss:$16 sps:$4 sm:$0xff]   ;;  %v6213_v28 = vld [vmem:[%s8822_s2 + $0x68c] ss:$16 sps:$4 sm:$0xff]  }
 0x10e   :  { %3214 = vmatpush1.bf16.msra.mxu0 %v6154_v29  ;;  %3501 = vmatpush1.bf16.msra.mxu1 %v6157_v30  ;;  %v142_v29 = vsel %vm141_vm12, %v7071_v39, %v7312_v37  ;;  %v225_v30 = vrot.slane %v7308_v34, %v224_v22  ;;  %v6216_v39 = vld [vmem:[%s8822_s2 + $0x6a4] ss:$16 sps:$4 sm:$0xff]   ;;  %v6219_v34 = vld [vmem:[%s8822_s2 + $0x6ac] ss:$16 sps:$4 sm:$0xff]  }
 0x10f   :  { %3215 = vmatprep.subr.bf16.mxu0 %v6162_v32  ;;  %3502 = vmatprep.subr.bf16.mxu1 %v6165_v0  ;;  %v6208_v32 = vld [vmem:[%s8822_s2 + $0x680] ss:$16 sps:$4 sm:$0xff]   ;;  %v6211_v0 = vld [vmem:[%s8822_s2 + $0x688] ss:$16 sps:$4 sm:$0xff]   ;;  %v164_v1 = vsel %vm163_vm0, %v142_v29, %v7347_v52  ;;  %v6261_v22 = vld [vmem:[%s8822_s2 + $0x78c] ss:$16 sps:$4 sm:$0xff]  }
 0x110   :  { %v274_v37 = vsub.f32 %v7032_v20, %v225_v30  ;;  %v277_v35 = vsub.f32 %v164_v1, %v237_v31  ;;  %v6225_v20 = vld [vmem:[%s8822_s2 + $0x6cc] ss:$16 sps:$4 sm:$0xff]   ;;  %v6264_v29 = vld [vmem:[%s8822_s2 + $0x7a4] ss:$16 sps:$4 sm:$0xff]  }
 0x111   :  { %v6267_v30 = vld [vmem:[%s8822_s2 + $0x7ac] ss:$16 sps:$4 sm:$0xff]   ;;  %v6270_v1 = vld [vmem:[%s8822_s2 + $0x7c4] ss:$16 sps:$4 sm:$0xff]  }
 0x112   :  { %3216 = vmatpush1.bf16.msra.mxu0 %v6160_v36  ;;  %3503 = vmatpush1.bf16.msra.mxu1 %v6163_v17  ;;  %v6214_v36 = vld [vmem:[%s8822_s2 + $0x6a0] ss:$16 sps:$4 sm:$0xff]   ;;  %v6217_v17 = vld [vmem:[%s8822_s2 + $0x6a8] ss:$16 sps:$4 sm:$0xff]   ;;  %v291_v27 = vmul.f32 500.0, %v277_v35 }
 0x113   :  { %3217 = vmatprep.subr.bf16.mxu0 %v6168_v18  ;;  %3504 = vmatprep.subr.bf16.mxu1 %v6171_v26  ;;  %v6222_v18 = vld [vmem:[%s8822_s2 + $0x6c4] ss:$16 sps:$4 sm:$0xff]   ;;  %v288_v26 = vmul.f32 500.0, %v274_v37  ;;  %v6271_v37 = vld [vmem:[%s8822_s2 + $0x7c8] ss:$16 sps:$4 sm:$0xff]  }
 0x114   :  { %v6276_v35 = vld [vmem:[%s8822_s2 + $0x7e4] ss:$16 sps:$4 sm:$0xff]  }
 0x116   :  { %3218 = vmatpush1.bf16.msra.mxu0 %v6166_v38  ;;  %3505 = vmatpush1.bf16.msra.mxu1 %v6169_v40  ;;  %v6220_v38 = vld [vmem:[%s8822_s2 + $0x6c0] ss:$16 sps:$4 sm:$0xff]   ;;  %v6223_v40 = vld [vmem:[%s8822_s2 + $0x6c8] ss:$16 sps:$4 sm:$0xff]  }
 0x117   :  { %3219 = vmatprep.subr.bf16.mxu0 %v6174_v42  ;;  %3506 = vmatprep.subr.bf16.mxu1 %v6177_v46  ;;  %v6228_v42 = vld [vmem:[%s8822_s2 + $0x6e4] ss:$16 sps:$4 sm:$0xff]   ;;  %v6231_v46 = vld [vmem:[%s8822_s2 + $0x6ec] ss:$16 sps:$4 sm:$0xff]  }
 0x11a   :  { %3220 = vmatpush1.bf16.msra.mxu0 %v6172_v47  ;;  %3507 = vmatpush1.bf16.msra.mxu1 %v6175_v63  ;;  %v302_v47 = vsub.f32 0.0, %v288_v26  ;;  %v305_v63 = vsub.f32 0.0, %v291_v27  ;;  %v6285_v26 = vld [vmem:[%s8822_s2 + $0x80c] ss:$16 sps:$4 sm:$0xff]  }
 0x11b   :  { %3221 = vmatprep.subr.bf16.mxu0 %v6180_v45  ;;  %3508 = vmatprep.subr.bf16.mxu1 %v6183_v53  ;;  %v6226_v45 = vld [vmem:[%s8822_s2 + $0x6e0] ss:$16 sps:$4 sm:$0xff]   ;;  %v6229_v53 = vld [vmem:[%s8822_s2 + $0x6e8] ss:$16 sps:$4 sm:$0xff]  }
 0x11e   :  { %3222 = vmatpush1.bf16.msra.mxu0 %v6178_v54  ;;  %3509 = vmatpush1.bf16.msra.mxu1 %v6181_v55  ;;  %v6234_v54 = vld [vmem:[%s8822_s2 + $0x704] ss:$16 sps:$4 sm:$0xff]   ;;  %v6237_v55 = vld [vmem:[%s8822_s2 + $0x70c] ss:$16 sps:$4 sm:$0xff]  }
 0x11f   :  { %3232 = vmatprep.subr.bf16.mxu0 %v6186_v56  ;;  %3519 = vmatprep.subr.bf16.mxu1 %v6189_v57  ;;  %v322_v56 = vmul.f32 1.442695, %v302_v47  ;;  %v328_v57 = vmul.f32 1.442695, %v305_v63  ;;  %v6288_v47 = vld [vmem:[%s8822_s2 + $0x824] ss:$16 sps:$4 sm:$0xff]  }
 0x120   :  { %v6291_v63 = vld [vmem:[%s8822_s2 + $0x82c] ss:$16 sps:$4 sm:$0xff]  }
 0x121   :  { %3224 = vmatmul.mubr.bf16.vlgmr.msra.gmra.mrb[0].mxu0 %v384_v3  ;;  %3511 = vmatmul.mubr.bf16.vlgmr.msra.gmra.mrb[0].mxu1 %v384_v3  ;;  %6594 = vpow2.f32 %v322_v56  ;;  %v6238_v3 = vld [vmem:[%s8822_s2 + $0x720] ss:$16 sps:$4 sm:$0xff]   ;;  %v6297_v56 = vld [vmem:[%s8822_s2 + $0x84c] ss:$16 sps:$4 sm:$0xff]  }
 0x122   :  { %3233 = vmatpush1.bf16.msra.mxu0 %v6184_v62  ;;  %3520 = vmatpush1.bf16.msra.mxu1 %v6187_v2  ;;  %v6240_v62 = vld [vmem:[%s8822_s2 + $0x724] ss:$16 sps:$4 sm:$0xff]   ;;  %v6243_v2 = vld [vmem:[%s8822_s2 + $0x72c] ss:$16 sps:$4 sm:$0xff]   ;;  %6596 = vpow2.f32 %v328_v57  ;;  %v6292_v57 = vld [vmem:[%s8822_s2 + $0x840] ss:$16 sps:$4 sm:$0xff]  }
 0x123   :  { %3234 = vmatprep.subr.bf16.mxu0 %v6192_v4  ;;  %3521 = vmatprep.subr.bf16.mxu1 %v6195_v5  ;;  %v6241_v4 = vld [vmem:[%s8822_s2 + $0x728] ss:$16 sps:$4 sm:$0xff]   ;;  %v6246_v5 = vld [vmem:[%s8822_s2 + $0x744] ss:$16 sps:$4 sm:$0xff]  }
 0x124   :  { %3264 = vmatprep.mubr.bf16.mxu0 %v387_v6  ;;  %3551 = vmatprep.mubr.bf16.mxu1 %v387_v6  ;;  %v6249_v6 = vld [vmem:[%s8822_s2 + $0x74c] ss:$16 sps:$4 sm:$0xff]  }
 0x126   :  { %3235 = vmatpush1.bf16.msra.mxu0 %v6190_v9  ;;  %3522 = vmatpush1.bf16.msra.mxu1 %v6193_v10  ;;  %v6244_v9 = vld [vmem:[%s8822_s2 + $0x740] ss:$16 sps:$4 sm:$0xff]   ;;  %v6247_v10 = vld [vmem:[%s8822_s2 + $0x748] ss:$16 sps:$4 sm:$0xff]  }
 0x127   :  { %3236 = vmatprep.subr.bf16.mxu0 %v6198_v12  ;;  %3523 = vmatprep.subr.bf16.mxu1 %v6201_v14  ;;  %v6252_v12 = vld [vmem:[%s8822_s2 + $0x764] ss:$16 sps:$4 sm:$0xff]   ;;  %v6255_v14 = vld [vmem:[%s8822_s2 + $0x76c] ss:$16 sps:$4 sm:$0xff]  }
 0x12a   :  { %3237 = vmatpush1.bf16.msra.mxu0 %v6196_v15  ;;  %3524 = vmatpush1.bf16.msra.mxu1 %v6199_v16  ;;  %v6250_v15 = vld [vmem:[%s8822_s2 + $0x760] ss:$16 sps:$4 sm:$0xff]   ;;  %v6253_v16 = vld [vmem:[%s8822_s2 + $0x768] ss:$16 sps:$4 sm:$0xff]  }
 0x12b   :  { %3238 = vmatprep.subr.bf16.mxu0 %v6204_v19  ;;  %3525 = vmatprep.subr.bf16.mxu1 %v6207_v21  ;;  %v6595_v19 = vpop.eup %6594  ;;  %v6258_v21 = vld [vmem:[%s8822_s2 + $0x784] ss:$16 sps:$4 sm:$0xff]  }
 0x12e   :  { %3239 = vmatpush1.bf16.msra.mxu0 %v6202_v23  ;;  %3526 = vmatpush1.bf16.msra.mxu1 %v6205_v24  ;;  %v6597_v23 = vpop.eup %6596  ;;  %v344_v24 = vadd.f32 1.0, %v6595_v19 }
 0x12f   :  { %3240 = vmatprep.subr.bf16.mxu0 %v6210_v25  ;;  %3527 = vmatprep.subr.bf16.mxu1 %v6213_v28  ;;  %v6256_v25 = vld [vmem:[%s8822_s2 + $0x780] ss:$16 sps:$4 sm:$0xff]   ;;  %v6259_v28 = vld [vmem:[%s8822_s2 + $0x788] ss:$16 sps:$4 sm:$0xff]   ;;  %v347_v31 = vadd.f32 1.0, %v6597_v23 }
 0x130   :  { %6598 = vrcp.f32 %v344_v24  ;;  %v6318_v23 = vld [vmem:[%s8822_s2 + $0x8c4] ss:$16 sps:$4 sm:$0xff]  }
 0x131   :  { %6600 = vrcp.f32 %v347_v31  ;;  %v6327_v31 = vld [vmem:[%s8822_s2 + $0x8ec] ss:$16 sps:$4 sm:$0xff]  }
 0x132   :  { %3241 = vmatpush1.bf16.msra.mxu0 %v6208_v32  ;;  %3528 = vmatpush1.bf16.msra.mxu1 %v6211_v0  ;;  %v6262_v32 = vld [vmem:[%s8822_s2 + $0x7a0] ss:$16 sps:$4 sm:$0xff]   ;;  %v6265_v0 = vld [vmem:[%s8822_s2 + $0x7a8] ss:$16 sps:$4 sm:$0xff]  }
 0x133   :  { %3242 = vmatprep.subr.bf16.mxu0 %v6216_v39  ;;  %3529 = vmatprep.subr.bf16.mxu1 %v6219_v34  ;;  %v6273_v39 = vld [vmem:[%s8822_s2 + $0x7cc] ss:$16 sps:$4 sm:$0xff]   ;;  %v6268_v34 = vld [vmem:[%s8822_s2 + $0x7c0] ss:$16 sps:$4 sm:$0xff]  }
 0x136   :  { %3243 = vmatpush1.bf16.msra.mxu0 %v6214_v36  ;;  %3530 = vmatpush1.bf16.msra.mxu1 %v6217_v17  ;;  %v6279_v36 = vld [vmem:[%s8822_s2 + $0x7ec] ss:$16 sps:$4 sm:$0xff]   ;;  %v6274_v17 = vld [vmem:[%s8822_s2 + $0x7e0] ss:$16 sps:$4 sm:$0xff]  }
 0x137   :  { %3244 = vmatprep.subr.bf16.mxu0 %v6222_v18  ;;  %3531 = vmatprep.subr.bf16.mxu1 %v6225_v20  ;;  %v6277_v18 = vld [vmem:[%s8822_s2 + $0x7e8] ss:$16 sps:$4 sm:$0xff]   ;;  %v6282_v20 = vld [vmem:[%s8822_s2 + $0x804] ss:$16 sps:$4 sm:$0xff]  }
 0x13a   :  { %3245 = vmatpush1.bf16.msra.mxu0 %v6220_v38  ;;  %3532 = vmatpush1.bf16.msra.mxu1 %v6223_v40  ;;  %v6599_v27 = vpop.eup %6598  ;;  %v6280_v40 = vld [vmem:[%s8822_s2 + $0x800] ss:$16 sps:$4 sm:$0xff]  }
 0x13b   :  { %3246 = vmatprep.subr.bf16.mxu0 %v6228_v42  ;;  %3533 = vmatprep.subr.bf16.mxu1 %v6231_v46  ;;  %v6601_v38 = vpop.eup %6600  ;;  %v6283_v42 = vld [vmem:[%s8822_s2 + $0x808] ss:$16 sps:$4 sm:$0xff]   ;;  %v386_v46 = vpack.c.bf16 %v6599_v27, %v6599_v27  ;;  %v6334_v27 = vld [vmem:[%s8822_s2 + $0x920] ss:$16 sps:$4 sm:$0xff]  }
 0x13e   :  { %3247 = vmatpush1.bf16.msra.mxu0 %v6226_v45  ;;  %3534 = vmatpush1.bf16.msra.mxu1 %v6229_v53  ;;  %v389_v45 = vpack.c.bf16 %v6601_v38, %v6601_v38  ;;  %v6286_v53 = vld [vmem:[%s8822_s2 + $0x820] ss:$16 sps:$4 sm:$0xff]   ;;  %v6337_v38 = vld [vmem:[%s8822_s2 + $0x928] ss:$16 sps:$4 sm:$0xff]  }
 0x13f   :  { %3248 = vmatprep.subr.bf16.mxu0 %v6234_v54  ;;  %3535 = vmatprep.subr.bf16.mxu1 %v6237_v55  ;;  %v6289_v54 = vld [vmem:[%s8822_s2 + $0x828] ss:$16 sps:$4 sm:$0xff]   ;;  %v6294_v55 = vld [vmem:[%s8822_s2 + $0x844] ss:$16 sps:$4 sm:$0xff]  }
 0x142   :  { %3249 = vmatpush1.bf16.msra.mxu0 %v6232_v58  ;;  %3536 = vmatpush1.bf16.msra.mxu1 %v6235_v60  ;;  %v6295_v58 = vld [vmem:[%s8822_s2 + $0x848] ss:$16 sps:$4 sm:$0xff]   ;;  %v6300_v60 = vld [vmem:[%s8822_s2 + $0x864] ss:$16 sps:$4 sm:$0xff]  }
 0x143   :  { %3250 = vmatprep.subr.bf16.mxu0 %v6240_v62  ;;  %3537 = vmatprep.subr.bf16.mxu1 %v6243_v2  ;;  %v6303_v62 = vld [vmem:[%s8822_s2 + $0x86c] ss:$16 sps:$4 sm:$0xff]   ;;  %v6298_v2 = vld [vmem:[%s8822_s2 + $0x860] ss:$16 sps:$4 sm:$0xff]  }
 0x146   :  { %3251 = vmatpush1.bf16.msra.mxu0 %v6238_v3  ;;  %3538 = vmatpush1.bf16.msra.mxu1 %v6241_v4  ;;  %v6301_v3 = vld [vmem:[%s8822_s2 + $0x868] ss:$16 sps:$4 sm:$0xff]   ;;  %v6306_v4 = vld [vmem:[%s8822_s2 + $0x884] ss:$16 sps:$4 sm:$0xff]  }
 0x147   :  { %3252 = vmatprep.subr.bf16.mxu0 %v6246_v5  ;;  %3539 = vmatprep.subr.bf16.mxu1 %v6249_v6  ;;  %v6309_v5 = vld [vmem:[%s8822_s2 + $0x88c] ss:$16 sps:$4 sm:$0xff]   ;;  %v233_v6 = vrot.slane %v7337_v49, %v6959_v8 }
 0x149   :  { %v276_v19 = vsub.f32 %v7080_v44, %v233_v6  ;;  %v6321_v44 = vld [vmem:[%s8822_s2 + $0x8cc] ss:$16 sps:$4 sm:$0xff]   ;;  %v6358_v6 = vld [vmem:[%s8822_s2 + $0x9a0] ss:$16 sps:$4 sm:$0xff]  }
 0x14a   :  { %3253 = vmatpush1.bf16.msra.mxu0 %v6244_v9  ;;  %3540 = vmatpush1.bf16.msra.mxu1 %v6247_v10  ;;  %v245_v9 = vrot.slane %v7337_v49, %v6983_v33  ;;  %v6304_v10 = vld [vmem:[%s8822_s2 + $0x880] ss:$16 sps:$4 sm:$0xff]  }
 0x14b   :  { %3254 = vmatprep.subr.bf16.mxu0 %v6252_v12  ;;  %3541 = vmatprep.subr.bf16.mxu1 %v6255_v14  ;;  %v6307_v12 = vld [vmem:[%s8822_s2 + $0x888] ss:$16 sps:$4 sm:$0xff]   ;;  %v186_v14 = vsel %vm185_vm15, %v7345_v50, %v7366_v11  ;;  %v290_v24 = vmul.f32 500.0, %v276_v19  ;;  %v6375_v19 = vld [vmem:[%s8822_s2 + $0x9ec] ss:$16 sps:$4 sm:$0xff]  }
 0x14c   :  { %v6313_v11 = vld [vmem:[%s8822_s2 + $0x8a8] ss:$16 sps:$4 sm:$0xff]  }
 0x14e   :  { %3255 = vmatpush1.bf16.msra.mxu0 %v6250_v15  ;;  %3542 = vmatpush1.bf16.msra.mxu1 %v6253_v16  ;;  %v6312_v15 = vld [vmem:[%s8822_s2 + $0x8a4] ss:$16 sps:$4 sm:$0xff]   ;;  %v6315_v16 = vld [vmem:[%s8822_s2 + $0x8ac] ss:$16 sps:$4 sm:$0xff]  }
 0x14f   :  { %3256 = vmatprep.subr.bf16.mxu0 %v6258_v21  ;;  %3543 = vmatprep.subr.bf16.mxu1 %v6261_v22  ;;  %v279_v21 = vsub.f32 %v186_v14, %v245_v9  ;;  %v6310_v22 = vld [vmem:[%s8822_s2 + $0x8a0] ss:$16 sps:$4 sm:$0xff]   ;;  %v6361_v9 = vld [vmem:[%s8822_s2 + $0x9a8] ss:$16 sps:$4 sm:$0xff]  }
 0x150   :  { %v6364_v14 = vld [vmem:[%s8822_s2 + $0x9c0] ss:$16 sps:$4 sm:$0xff]  }
 0x152   :  { %3257 = vmatpush1.bf16.msra.mxu0 %v6256_v25  ;;  %3544 = vmatpush1.bf16.msra.mxu1 %v6259_v28  ;;  %v293_v25 = vmul.f32 500.0, %v279_v21  ;;  %v6316_v28 = vld [vmem:[%s8822_s2 + $0x8c0] ss:$16 sps:$4 sm:$0xff]  }
 0x153   :  { %3258 = vmatprep.subr.bf16.mxu0 %v6264_v29  ;;  %3545 = vmatprep.subr.bf16.mxu1 %v6267_v30  ;;  %v6319_v29 = vld [vmem:[%s8822_s2 + $0x8c8] ss:$16 sps:$4 sm:$0xff]   ;;  %v6324_v30 = vld [vmem:[%s8822_s2 + $0x8e4] ss:$16 sps:$4 sm:$0xff]   ;;  %v6370_v21 = vld [vmem:[%s8822_s2 + $0x9e0] ss:$16 sps:$4 sm:$0xff]  }
 0x156   :  { %3259 = vmatpush1.bf16.msra.mxu0 %v6262_v32  ;;  %3546 = vmatpush1.bf16.msra.mxu1 %v6265_v0  ;;  %v304_v32 = vsub.f32 0.0, %v290_v24  ;;  %v307_v0 = vsub.f32 0.0, %v293_v25  ;;  %v6376_v25 = vld [vmem:[%s8822_s2 + $0xa00] ss:$16 sps:$4 sm:$0xff]  }
 0x157   :  { %3260 = vmatprep.subr.bf16.mxu0 %v6270_v1  ;;  %3547 = vmatprep.subr.bf16.mxu1 %v6273_v39  ;;  %v6322_v1 = vld [vmem:[%s8822_s2 + $0x8e0] ss:$16 sps:$4 sm:$0xff]   ;;  %v6325_v39 = vld [vmem:[%s8822_s2 + $0x8e8] ss:$16 sps:$4 sm:$0xff]  }
 0x15a   :  { %3261 = vmatpush1.bf16.msra.mxu0 %v6268_v34  ;;  %3548 = vmatpush1.bf16.msra.mxu1 %v6271_v37  ;;  %v6330_v34 = vld [vmem:[%s8822_s2 + $0x904] ss:$16 sps:$4 sm:$0xff]   ;;  %v6333_v37 = vld [vmem:[%s8822_s2 + $0x90c] ss:$16 sps:$4 sm:$0xff]  }
 0x15b   :  { %3262 = vmatprep.subr.bf16.mxu0 %v6276_v35  ;;  %3549 = vmatprep.subr.bf16.mxu1 %v6279_v36  ;;  %v326_v35 = vmul.f32 1.442695, %v304_v32  ;;  %v332_v36 = vmul.f32 1.442695, %v307_v0  ;;  %v6387_v32 = vld [vmem:[%s8822_s2 + $0xa2c] ss:$16 sps:$4 sm:$0xff]  }
 0x15c   :  { %v6382_v0 = vld [vmem:[%s8822_s2 + $0xa20] ss:$16 sps:$4 sm:$0xff]  }
 0x15d   :  { %6602 = vpow2.f32 %v326_v35  ;;  %v6391_v35 = vld [vmem:[%s8822_s2 + $0xa48] ss:$16 sps:$4 sm:$0xff]  }
 0x15e   :  { %3263 = vmatpush1.bf16.msra.mxu0 %v6274_v17  ;;  %3550 = vmatpush1.bf16.msra.mxu1 %v6277_v18  ;;  %v6328_v17 = vld [vmem:[%s8822_s2 + $0x900] ss:$16 sps:$4 sm:$0xff]   ;;  %v6331_v18 = vld [vmem:[%s8822_s2 + $0x908] ss:$16 sps:$4 sm:$0xff]   ;;  %6604 = vpow2.f32 %v332_v36  ;;  %v6396_v36 = vld [vmem:[%s8822_s2 + $0xa64] ss:$16 sps:$4 sm:$0xff]  }
 0x15f   :  { %3273 = vmatprep.subr.bf16.mxu0 %v6282_v20  ;;  %3560 = vmatprep.subr.bf16.mxu1 %v6285_v26  ;;  %v6336_v20 = vld [vmem:[%s8822_s2 + $0x924] ss:$16 sps:$4 sm:$0xff]   ;;  %v6339_v26 = vld [vmem:[%s8822_s2 + $0x92c] ss:$16 sps:$4 sm:$0xff]  }
 0x161   :  { %3265 = vmatmul.mubr.bf16.vlgmr.msra.gmra.mrb[0].mxu0 %v386_v46  ;;  %3552 = vmatmul.mubr.bf16.vlgmr.msra.gmra.mrb[0].mxu1 %v386_v46  ;;  %v6340_v46 = vld [vmem:[%s8822_s2 + $0x940] ss:$16 sps:$4 sm:$0xff]  }
 0x162   :  { %3274 = vmatpush1.bf16.msra.mxu0 %v6280_v40  ;;  %3561 = vmatpush1.bf16.msra.mxu1 %v6283_v42  ;;  %v6342_v40 = vld [vmem:[%s8822_s2 + $0x944] ss:$16 sps:$4 sm:$0xff]   ;;  %v6345_v42 = vld [vmem:[%s8822_s2 + $0x94c] ss:$16 sps:$4 sm:$0xff]  }
 0x163   :  { %3275 = vmatprep.subr.bf16.mxu0 %v6288_v47  ;;  %3562 = vmatprep.subr.bf16.mxu1 %v6291_v63  ;;  %v6343_v47 = vld [vmem:[%s8822_s2 + $0x948] ss:$16 sps:$4 sm:$0xff]   ;;  %v6348_v63 = vld [vmem:[%s8822_s2 + $0x964] ss:$16 sps:$4 sm:$0xff]  }
 0x164   :  { %3305 = vmatprep.mubr.bf16.mxu0 %v389_v45  ;;  %3592 = vmatprep.mubr.bf16.mxu1 %v389_v45  ;;  %v6351_v45 = vld [vmem:[%s8822_s2 + $0x96c] ss:$16 sps:$4 sm:$0xff]  }
 0x166   :  { %3276 = vmatpush1.bf16.msra.mxu0 %v6286_v53  ;;  %3563 = vmatpush1.bf16.msra.mxu1 %v6289_v54  ;;  %v6346_v53 = vld [vmem:[%s8822_s2 + $0x960] ss:$16 sps:$4 sm:$0xff]   ;;  %v6349_v54 = vld [vmem:[%s8822_s2 + $0x968] ss:$16 sps:$4 sm:$0xff]  }
 0x167   :  { %3277 = vmatprep.subr.bf16.mxu0 %v6294_v55  ;;  %3564 = vmatprep.subr.bf16.mxu1 %v6297_v56  ;;  %v6603_v55 = vpop.eup %6602  ;;  %v6354_v56 = vld [vmem:[%s8822_s2 + $0x984] ss:$16 sps:$4 sm:$0xff]  }
 0x16a   :  { %3278 = vmatpush1.bf16.msra.mxu0 %v6292_v57  ;;  %3565 = vmatpush1.bf16.msra.mxu1 %v6295_v58  ;;  %v6357_v57 = vld [vmem:[%s8822_s2 + $0x98c] ss:$16 sps:$4 sm:$0xff]   ;;  %v6605_v58 = vpop.eup %6604 }
 0x16b   :  { %3279 = vmatprep.subr.bf16.mxu0 %v6300_v60  ;;  %3566 = vmatprep.subr.bf16.mxu1 %v6303_v62  ;;  %v346_v60 = vadd.f32 1.0, %v6603_v55  ;;  %v6352_v62 = vld [vmem:[%s8822_s2 + $0x980] ss:$16 sps:$4 sm:$0xff]   ;;  %v6417_v55 = vld [vmem:[%s8822_s2 + $0xacc] ss:$16 sps:$4 sm:$0xff]  }
 0x16d   :  { %6606 = vrcp.f32 %v346_v60  ;;  %v6415_v60 = vld [vmem:[%s8822_s2 + $0xac8] ss:$16 sps:$4 sm:$0xff]  }
 0x16e   :  { %3280 = vmatpush1.bf16.msra.mxu0 %v6298_v2  ;;  %3567 = vmatpush1.bf16.msra.mxu1 %v6301_v3  ;;  %v6355_v2 = vld [vmem:[%s8822_s2 + $0x988] ss:$16 sps:$4 sm:$0xff]   ;;  %v6360_v3 = vld [vmem:[%s8822_s2 + $0x9a4] ss:$16 sps:$4 sm:$0xff]  }
 0x16f   :  { %3281 = vmatprep.subr.bf16.mxu0 %v6306_v4  ;;  %3568 = vmatprep.subr.bf16.mxu1 %v6309_v5  ;;  %v6363_v4 = vld [vmem:[%s8822_s2 + $0x9ac] ss:$16 sps:$4 sm:$0xff]   ;;  %v349_v5 = vadd.f32 1.0, %v6605_v58 }
 0x171   :  { %6608 = vrcp.f32 %v349_v5 }
 0x172   :  { %3282 = vmatpush1.bf16.msra.mxu0 %v6304_v10  ;;  %3569 = vmatpush1.bf16.msra.mxu1 %v6307_v12  ;;  %v6366_v10 = vld [vmem:[%s8822_s2 + $0x9c4] ss:$16 sps:$4 sm:$0xff]   ;;  %v6369_v12 = vld [vmem:[%s8822_s2 + $0x9cc] ss:$16 sps:$4 sm:$0xff]  }
 0x173   :  { %3283 = vmatprep.subr.bf16.mxu0 %v6312_v15  ;;  %3570 = vmatprep.subr.bf16.mxu1 %v6315_v16  ;;  %v6367_v15 = vld [vmem:[%s8822_s2 + $0x9c8] ss:$16 sps:$4 sm:$0xff]   ;;  %v6372_v16 = vld [vmem:[%s8822_s2 + $0x9e4] ss:$16 sps:$4 sm:$0xff]  }
 0x176   :  { %3284 = vmatpush1.bf16.msra.mxu0 %v6310_v22  ;;  %3571 = vmatpush1.bf16.msra.mxu1 %v6313_v11  ;;  %v6373_v22 = vld [vmem:[%s8822_s2 + $0x9e8] ss:$16 sps:$4 sm:$0xff]   ;;  %v6378_v11 = vld [vmem:[%s8822_s2 + $0xa04] ss:$16 sps:$4 sm:$0xff]  }
 0x177   :  { %3285 = vmatprep.subr.bf16.mxu0 %v6318_v23  ;;  %3572 = vmatprep.subr.bf16.mxu1 %v6321_v44  ;;  %v6381_v23 = vld [vmem:[%s8822_s2 + $0xa0c] ss:$16 sps:$4 sm:$0xff]   ;;  %v6607_v44 = vpop.eup %6606 }
 0x17a   :  { %3286 = vmatpush1.bf16.msra.mxu0 %v6316_v28  ;;  %3573 = vmatpush1.bf16.msra.mxu1 %v6319_v29  ;;  %v388_v28 = vpack.c.bf16 %v6607_v44, %v6607_v44  ;;  %v6379_v29 = vld [vmem:[%s8822_s2 + $0xa08] ss:$16 sps:$4 sm:$0xff]   ;;  %v6441_v44 = vld [vmem:[%s8822_s2 + $0xb4c] ss:$16 sps:$4 sm:$0xff]  }
 0x17b   :  { %3287 = vmatprep.subr.bf16.mxu0 %v6324_v30  ;;  %3574 = vmatprep.subr.bf16.mxu1 %v6327_v31  ;;  %v6609_v24 = vpop.eup %6608  ;;  %v6384_v31 = vld [vmem:[%s8822_s2 + $0xa24] ss:$16 sps:$4 sm:$0xff]  }
 0x17c   :  { %v391_v30 = vpack.c.bf16 %v6609_v24, %v6609_v24  ;;  %v6436_v24 = vld [vmem:[%s8822_s2 + $0xb40] ss:$16 sps:$4 sm:$0xff]  }
 0x17e   :  { %3288 = vmatpush1.bf16.msra.mxu0 %v6322_v1  ;;  %3575 = vmatpush1.bf16.msra.mxu1 %v6325_v39  ;;  %v6385_v1 = vld [vmem:[%s8822_s2 + $0xa28] ss:$16 sps:$4 sm:$0xff]   ;;  %v6390_v39 = vld [vmem:[%s8822_s2 + $0xa44] ss:$16 sps:$4 sm:$0xff]  }
 0x17f   :  { %3289 = vmatprep.subr.bf16.mxu0 %v6330_v34  ;;  %3576 = vmatprep.subr.bf16.mxu1 %v6333_v37  ;;  %v6393_v34 = vld [vmem:[%s8822_s2 + $0xa4c] ss:$16 sps:$4 sm:$0xff]   ;;  %v6388_v37 = vld [vmem:[%s8822_s2 + $0xa40] ss:$16 sps:$4 sm:$0xff]  }
 0x182   :  { %3290 = vmatpush1.bf16.msra.mxu0 %v6328_v17  ;;  %3577 = vmatpush1.bf16.msra.mxu1 %v6331_v18  ;;  %v6399_v17 = vld [vmem:[%s8822_s2 + $0xa6c] ss:$16 sps:$4 sm:$0xff]   ;;  %v6394_v18 = vld [vmem:[%s8822_s2 + $0xa60] ss:$16 sps:$4 sm:$0xff]  }
 0x183   :  { %3291 = vmatprep.subr.bf16.mxu0 %v6336_v20  ;;  %3578 = vmatprep.subr.bf16.mxu1 %v6339_v26  ;;  %v6397_v20 = vld [vmem:[%s8822_s2 + $0xa68] ss:$16 sps:$4 sm:$0xff]   ;;  %v6402_v26 = vld [vmem:[%s8822_s2 + $0xa84] ss:$16 sps:$4 sm:$0xff]  }
 0x186   :  { %3292 = vmatpush1.bf16.msra.mxu0 %v6334_v27  ;;  %3579 = vmatpush1.bf16.msra.mxu1 %v6337_v38  ;;  %v6405_v27 = vld [vmem:[%s8822_s2 + $0xa8c] ss:$16 sps:$4 sm:$0xff]   ;;  %v241_v38 = vrot.slane %v7337_v49, %v7074_v41 }
 0x187   :  { %3293 = vmatprep.subr.bf16.mxu0 %v6342_v40  ;;  %3580 = vmatprep.subr.bf16.mxu1 %v6345_v42  ;;  %v184_v40 = vpop.permute.xlu0 %183  ;;  %v193_v42 = vsel %vm185_vm15, %v7347_v52, %v7345_v50  ;;  %v6411_v52 = vld [vmem:[%s8822_s2 + $0xaac] ss:$16 sps:$4 sm:$0xff]  }
 0x188   :  { %v188_v50 = vsel %vm185_vm15, %v7364_v59, %v184_v40  ;;  %v6414_v59 = vld [vmem:[%s8822_s2 + $0xac4] ss:$16 sps:$4 sm:$0xff]   ;;  %v6460_v40 = vld [vmem:[%s8822_s2 + $0xbc0] ss:$16 sps:$4 sm:$0xff]  }
 0x18a   :  { %3294 = vmatpush1.bf16.msra.mxu0 %v6340_v46  ;;  %3581 = vmatpush1.bf16.msra.mxu1 %v6343_v47  ;;  %v6400_v46 = vld [vmem:[%s8822_s2 + $0xa80] ss:$16 sps:$4 sm:$0xff]   ;;  %v253_v47 = vrot.slane %v7337_v49, %v220_v48 }
 0x18b   :  { %3295 = vmatprep.subr.bf16.mxu0 %v6348_v63  ;;  %3582 = vmatprep.subr.bf16.mxu1 %v6351_v45  ;;  %v6403_v63 = vld [vmem:[%s8822_s2 + $0xa88] ss:$16 sps:$4 sm:$0xff]   ;;  %v6408_v45 = vld [vmem:[%s8822_s2 + $0xaa4] ss:$16 sps:$4 sm:$0xff]   ;;  %v6406_v48 = vld [vmem:[%s8822_s2 + $0xaa0] ss:$16 sps:$4 sm:$0xff]  }
 0x18c   :  { %v281_v49 = vsub.f32 %v188_v50, %v253_v47  ;;  %v6471_v47 = vld [vmem:[%s8822_s2 + $0xbec] ss:$16 sps:$4 sm:$0xff]   ;;  %v6474_v50 = vld [vmem:[%s8822_s2 + $0xc04] ss:$16 sps:$4 sm:$0xff]  }
 0x18e   :  { %3296 = vmatpush1.bf16.msra.mxu0 %v6346_v53  ;;  %3583 = vmatpush1.bf16.msra.mxu1 %v6349_v54  ;;  %v278_v53 = vsub.f32 %v193_v42, %v241_v38  ;;  %v6409_v54 = vld [vmem:[%s8822_s2 + $0xaa8] ss:$16 sps:$4 sm:$0xff]   ;;  %v295_v58 = vmul.f32 500.0, %v281_v49  ;;  %v6465_v38 = vld [vmem:[%s8822_s2 + $0xbcc] ss:$16 sps:$4 sm:$0xff]  }
 0x18f   :  { %3297 = vmatprep.subr.bf16.mxu0 %v6354_v56  ;;  %3584 = vmatprep.subr.bf16.mxu1 %v6357_v57  ;;  %v6412_v57 = vld [vmem:[%s8822_s2 + $0xac0] ss:$16 sps:$4 sm:$0xff]   ;;  %v6463_v42 = vld [vmem:[%s8822_s2 + $0xbc8] ss:$16 sps:$4 sm:$0xff]  }
 0x190   :  { %v292_v56 = vmul.f32 500.0, %v278_v53  ;;  %v309_v5 = vsub.f32 0.0, %v295_v58  ;;  %v6477_v53 = vld [vmem:[%s8822_s2 + $0xc0c] ss:$16 sps:$4 sm:$0xff]   ;;  %v6472_v49 = vld [vmem:[%s8822_s2 + $0xc00] ss:$16 sps:$4 sm:$0xff]  }
 0x191   :  { %v6478_v58 = vld [vmem:[%s8822_s2 + $0xc20] ss:$16 sps:$4 sm:$0xff]  }
 0x192   :  { %3298 = vmatpush1.bf16.msra.mxu0 %v6352_v62  ;;  %3585 = vmatpush1.bf16.msra.mxu1 %v6355_v2  ;;  %v6420_v62 = vld [vmem:[%s8822_s2 + $0xae4] ss:$16 sps:$4 sm:$0xff]   ;;  %v6423_v2 = vld [vmem:[%s8822_s2 + $0xaec] ss:$16 sps:$4 sm:$0xff]  }
 0x193   :  { %3299 = vmatprep.subr.bf16.mxu0 %v6360_v3  ;;  %3586 = vmatprep.subr.bf16.mxu1 %v6363_v4  ;;  %v306_v3 = vsub.f32 0.0, %v292_v56  ;;  %v6418_v4 = vld [vmem:[%s8822_s2 + $0xae0] ss:$16 sps:$4 sm:$0xff]  }
 0x196   :  { %3300 = vmatpush1.bf16.msra.mxu0 %v6358_v6  ;;  %3587 = vmatpush1.bf16.msra.mxu1 %v6361_v9  ;;  %v6421_v6 = vld [vmem:[%s8822_s2 + $0xae8] ss:$16 sps:$4 sm:$0xff]   ;;  %v6426_v9 = vld [vmem:[%s8822_s2 + $0xb04] ss:$16 sps:$4 sm:$0xff]  }
 0x197   :  { %3301 = vmatprep.subr.bf16.mxu0 %v6366_v10  ;;  %3588 = vmatprep.subr.bf16.mxu1 %v6369_v12  ;;  %v6429_v10 = vld [vmem:[%s8822_s2 + $0xb0c] ss:$16 sps:$4 sm:$0xff]   ;;  %v330_v12 = vmul.f32 1.442695, %v306_v3  ;;  %v6484_v3 = vld [vmem:[%s8822_s2 + $0xc40] ss:$16 sps:$4 sm:$0xff]  }
 0x199   :  { %6610 = vpow2.f32 %v330_v12  ;;  %v6498_v12 = vld [vmem:[%s8822_s2 + $0xc84] ss:$16 sps:$4 sm:$0xff]  }
 0x19a   :  { %3302 = vmatpush1.bf16.msra.mxu0 %v6364_v14  ;;  %3589 = vmatpush1.bf16.msra.mxu1 %v6367_v15  ;;  %v6424_v14 = vld [vmem:[%s8822_s2 + $0xb00] ss:$16 sps:$4 sm:$0xff]   ;;  %v336_v15 = vmul.f32 1.442695, %v309_v5  ;;  %v6492_v5 = vld [vmem:[%s8822_s2 + $0xc64] ss:$16 sps:$4 sm:$0xff]  }
 0x19b   :  { %3303 = vmatprep.subr.bf16.mxu0 %v6372_v16  ;;  %3590 = vmatprep.subr.bf16.mxu1 %v6375_v19  ;;  %v6427_v16 = vld [vmem:[%s8822_s2 + $0xb08] ss:$16 sps:$4 sm:$0xff]   ;;  %v6432_v19 = vld [vmem:[%s8822_s2 + $0xb24] ss:$16 sps:$4 sm:$0xff]  }
 0x19c   :  { %6612 = vpow2.f32 %v336_v15  ;;  %v6496_v15 = vld [vmem:[%s8822_s2 + $0xc80] ss:$16 sps:$4 sm:$0xff]  }
 0x19e   :  { %3304 = vmatpush1.bf16.msra.mxu0 %v6370_v21  ;;  %3591 = vmatpush1.bf16.msra.mxu1 %v6373_v22  ;;  %v6435_v21 = vld [vmem:[%s8822_s2 + $0xb2c] ss:$16 sps:$4 sm:$0xff]   ;;  %v6430_v22 = vld [vmem:[%s8822_s2 + $0xb20] ss:$16 sps:$4 sm:$0xff]  }
 0x19f   :  { %3314 = vmatprep.subr.bf16.mxu0 %v6378_v11  ;;  %3601 = vmatprep.subr.bf16.mxu1 %v6381_v23  ;;  %v6433_v11 = vld [vmem:[%s8822_s2 + $0xb28] ss:$16 sps:$4 sm:$0xff]   ;;  %v6438_v23 = vld [vmem:[%s8822_s2 + $0xb44] ss:$16 sps:$4 sm:$0xff]  }
 0x1a1   :  { %3306 = vmatmul.mubr.bf16.vlgmr.msra.gmra.mrb[0].mxu0 %v388_v28  ;;  %3593 = vmatmul.mubr.bf16.vlgmr.msra.gmra.mrb[0].mxu1 %v388_v28  ;;  %v6444_v28 = vld [vmem:[%s8822_s2 + $0xb64] ss:$16 sps:$4 sm:$0xff]  }
 0x1a2   :  { %3315 = vmatpush1.bf16.msra.mxu0 %v6376_v25  ;;  %3346 = vmatprep.mubr.bf16.mxu0 %v391_v30  ;;  %v6439_v25 = vld [vmem:[%s8822_s2 + $0xb48] ss:$16 sps:$4 sm:$0xff]  }
 0x1a3   :  { %3602 = vmatpush1.bf16.msra.mxu1 %v6379_v29  ;;  %3633 = vmatprep.mubr.bf16.mxu1 %v391_v30  ;;  %v6447_v29 = vld [vmem:[%s8822_s2 + $0xb6c] ss:$16 sps:$4 sm:$0xff]   ;;  %v6442_v30 = vld [vmem:[%s8822_s2 + $0xb60] ss:$16 sps:$4 sm:$0xff]  }
 0x1a4   :  { %3316 = vmatprep.subr.bf16.mxu0 %v6384_v31  ;;  %3603 = vmatprep.subr.bf16.mxu1 %v6387_v32  ;;  %v6611_v31 = vpop.eup %6610  ;;  %v6445_v32 = vld [vmem:[%s8822_s2 + $0xb68] ss:$16 sps:$4 sm:$0xff]  }
 0x1a6   :  { %3317 = vmatpush1.bf16.msra.mxu0 %v6382_v0  ;;  %v6450_v0 = vld [vmem:[%s8822_s2 + $0xb84] ss:$16 sps:$4 sm:$0xff]  }
 0x1a7   :  { %3604 = vmatpush1.bf16.msra.mxu1 %v6385_v1  ;;  %3318 = vmatprep.subr.bf16.mxu0 %v6390_v39  ;;  %v6453_v1 = vld [vmem:[%s8822_s2 + $0xb8c] ss:$16 sps:$4 sm:$0xff]   ;;  %v6613_v39 = vpop.eup %6612 }
 0x1a8   :  { %3605 = vmatprep.subr.bf16.mxu1 %v6393_v34  ;;  %v348_v34 = vadd.f32 1.0, %v6611_v31  ;;  %v6522_v31 = vld [vmem:[%s8822_s2 + $0xd04] ss:$16 sps:$4 sm:$0xff]  }
 0x1aa   :  { %3319 = vmatpush1.bf16.msra.mxu0 %v6388_v37  ;;  %v6448_v37 = vld [vmem:[%s8822_s2 + $0xb80] ss:$16 sps:$4 sm:$0xff]   ;;  %6614 = vrcp.f32 %v348_v34  ;;  %v6528_v34 = vld [vmem:[%s8822_s2 + $0xd24] ss:$16 sps:$4 sm:$0xff]  }
 0x1ab   :  { %3606 = vmatpush1.bf16.msra.mxu1 %v6391_v35  ;;  %3320 = vmatprep.subr.bf16.mxu0 %v6396_v36  ;;  %v6451_v35 = vld [vmem:[%s8822_s2 + $0xb88] ss:$16 sps:$4 sm:$0xff]   ;;  %v6456_v36 = vld [vmem:[%s8822_s2 + $0xba4] ss:$16 sps:$4 sm:$0xff]  }
 0x1ac   :  { %3607 = vmatprep.subr.bf16.mxu1 %v6399_v17  ;;  %v351_v17 = vadd.f32 1.0, %v6613_v39  ;;  %v6523_v39 = vld [vmem:[%s8822_s2 + $0xd08] ss:$16 sps:$4 sm:$0xff]  }
 0x1ae   :  { %3321 = vmatpush1.bf16.msra.mxu0 %v6394_v18  ;;  %v6459_v18 = vld [vmem:[%s8822_s2 + $0xbac] ss:$16 sps:$4 sm:$0xff]   ;;  %6616 = vrcp.f32 %v351_v17  ;;  %v6534_v17 = vld [vmem:[%s8822_s2 + $0xd44] ss:$16 sps:$4 sm:$0xff]  }
 0x1af   :  { %3608 = vmatpush1.bf16.msra.mxu1 %v6397_v20  ;;  %3322 = vmatprep.subr.bf16.mxu0 %v6402_v26  ;;  %v6454_v20 = vld [vmem:[%s8822_s2 + $0xba0] ss:$16 sps:$4 sm:$0xff]   ;;  %v6457_v26 = vld [vmem:[%s8822_s2 + $0xba8] ss:$16 sps:$4 sm:$0xff]  }
 0x1b0   :  { %3609 = vmatprep.subr.bf16.mxu1 %v6405_v27  ;;  %v6462_v27 = vld [vmem:[%s8822_s2 + $0xbc4] ss:$16 sps:$4 sm:$0xff]  }
 0x1b2   :  { %3323 = vmatpush1.bf16.msra.mxu0 %v6400_v46  ;;  %v6468_v46 = vld [vmem:[%s8822_s2 + $0xbe4] ss:$16 sps:$4 sm:$0xff]  }
 0x1b3   :  { %3610 = vmatpush1.bf16.msra.mxu1 %v6403_v63  ;;  %3324 = vmatprep.subr.bf16.mxu0 %v6408_v45  ;;  %v6466_v63 = vld [vmem:[%s8822_s2 + $0xbe0] ss:$16 sps:$4 sm:$0xff]   ;;  %v6469_v45 = vld [vmem:[%s8822_s2 + $0xbe8] ss:$16 sps:$4 sm:$0xff]  }
 0x1b4   :  { %3611 = vmatprep.subr.bf16.mxu1 %v6411_v52  ;;  %v6615_v52 = vpop.eup %6614 }
 0x1b6   :  { %3325 = vmatpush1.bf16.msra.mxu0 %v6406_v48 }
 0x1b7   :  { %3612 = vmatpush1.bf16.msra.mxu1 %v6409_v54  ;;  %3326 = vmatprep.subr.bf16.mxu0 %v6414_v59  ;;  %v390_v54 = vpack.c.bf16 %v6615_v52, %v6615_v52  ;;  %v6475_v59 = vld [vmem:[%s8822_s2 + $0xc08] ss:$16 sps:$4 sm:$0xff]  }
 0x1b8   :  { %3613 = vmatprep.subr.bf16.mxu1 %v6417_v55  ;;  %v6617_v48 = vpop.eup %6616  ;;  %v6480_v55 = vld [vmem:[%s8822_s2 + $0xc24] ss:$16 sps:$4 sm:$0xff]   ;;  %v6547_v52 = vld [vmem:[%s8822_s2 + $0xd88] ss:$16 sps:$4 sm:$0xff]  }
 0x1b9   :  { %v393_v56 = vpack.c.bf16 %v6617_v48, %v6617_v48  ;;  %v6555_v48 = vld [vmem:[%s8822_s2 + $0xdac] ss:$16 sps:$4 sm:$0xff]  }
 0x1ba   :  { %3327 = vmatpush1.bf16.msra.mxu0 %v6412_v57  ;;  %v6483_v57 = vld [vmem:[%s8822_s2 + $0xc2c] ss:$16 sps:$4 sm:$0xff]  }
 0x1bb   :  { %3614 = vmatpush1.bf16.msra.mxu1 %v6415_v60  ;;  %3328 = vmatprep.subr.bf16.mxu0 %v6420_v62  ;;  %v6481_v60 = vld [vmem:[%s8822_s2 + $0xc28] ss:$16 sps:$4 sm:$0xff]   ;;  %v6486_v62 = vld [vmem:[%s8822_s2 + $0xc44] ss:$16 sps:$4 sm:$0xff]  }
 0x1bc   :  { %3615 = vmatprep.subr.bf16.mxu1 %v6423_v2  ;;  %v6489_v2 = vld [vmem:[%s8822_s2 + $0xc4c] ss:$16 sps:$4 sm:$0xff]  }
 0x1be   :  { %3329 = vmatpush1.bf16.msra.mxu0 %v6418_v4  ;;  %v6487_v4 = vld [vmem:[%s8822_s2 + $0xc48] ss:$16 sps:$4 sm:$0xff]  }
 0x1bf   :  { %3616 = vmatpush1.bf16.msra.mxu1 %v6421_v6  ;;  %3330 = vmatprep.subr.bf16.mxu0 %v6426_v9  ;;  %v6495_v6 = vld [vmem:[%s8822_s2 + $0xc6c] ss:$16 sps:$4 sm:$0xff]   ;;  %v6490_v9 = vld [vmem:[%s8822_s2 + $0xc60] ss:$16 sps:$4 sm:$0xff]  }
 0x1c0   :  { %3617 = vmatprep.subr.bf16.mxu1 %v6429_v10  ;;  %v6493_v10 = vld [vmem:[%s8822_s2 + $0xc68] ss:$16 sps:$4 sm:$0xff]  }
 0x1c2   :  { %3331 = vmatpush1.bf16.msra.mxu0 %v6424_v14  ;;  %v6501_v14 = vld [vmem:[%s8822_s2 + $0xc8c] ss:$16 sps:$4 sm:$0xff]  }
 0x1c3   :  { %3618 = vmatpush1.bf16.msra.mxu1 %v6427_v16  ;;  %3332 = vmatprep.subr.bf16.mxu0 %v6432_v19  ;;  %v6499_v16 = vld [vmem:[%s8822_s2 + $0xc88] ss:$16 sps:$4 sm:$0xff]   ;;  %v6504_v19 = vld [vmem:[%s8822_s2 + $0xca4] ss:$16 sps:$4 sm:$0xff]  }
 0x1c4   :  { %3619 = vmatprep.subr.bf16.mxu1 %v6435_v21  ;;  %v6507_v21 = vld [vmem:[%s8822_s2 + $0xcac] ss:$16 sps:$4 sm:$0xff]  }
 0x1c6   :  { %3333 = vmatpush1.bf16.msra.mxu0 %v6430_v22  ;;  %v6502_v22 = vld [vmem:[%s8822_s2 + $0xca0] ss:$16 sps:$4 sm:$0xff]  }
 0x1c7   :  { %3620 = vmatpush1.bf16.msra.mxu1 %v6433_v11  ;;  %3334 = vmatprep.subr.bf16.mxu0 %v6438_v23  ;;  %v6505_v11 = vld [vmem:[%s8822_s2 + $0xca8] ss:$16 sps:$4 sm:$0xff]   ;;  %v6510_v23 = vld [vmem:[%s8822_s2 + $0xcc4] ss:$16 sps:$4 sm:$0xff]  }
 0x1c8   :  { %3621 = vmatprep.subr.bf16.mxu1 %v6441_v44  ;;  %v6513_v44 = vld [vmem:[%s8822_s2 + $0xccc] ss:$16 sps:$4 sm:$0xff]  }
 0x1ca   :  { %3335 = vmatpush1.bf16.msra.mxu0 %v6436_v24  ;;  %v294_v24 = vmul.f32 500.0, %v280_v43  ;;  %v6514_v43 = vld [vmem:[%s8822_s2 + $0xce0] ss:$16 sps:$4 sm:$0xff]  }
 0x1cb   :  { %3622 = vmatpush1.bf16.msra.mxu1 %v6439_v25  ;;  %3336 = vmatprep.subr.bf16.mxu0 %v6444_v28  ;;  %v6508_v25 = vld [vmem:[%s8822_s2 + $0xcc0] ss:$16 sps:$4 sm:$0xff]   ;;  %v6511_v28 = vld [vmem:[%s8822_s2 + $0xcc8] ss:$16 sps:$4 sm:$0xff]  }
 0x1cc   :  { %3623 = vmatprep.subr.bf16.mxu1 %v6447_v29  ;;  %v6516_v29 = vld [vmem:[%s8822_s2 + $0xce4] ss:$16 sps:$4 sm:$0xff]   ;;  %v308_v61 = vsub.f32 0.0, %v294_v24  ;;  %v3753_v24 = vld [vmem:[%s8824_s6 + $0x98] sm:$0xff] }
 0x1ce   :  { %3337 = vmatpush1.bf16.msra.mxu0 %v6442_v30  ;;  %v6517_v30 = vld [vmem:[%s8822_s2 + $0xce8] ss:$16 sps:$4 sm:$0xff]  }
 0x1cf   :  { %3624 = vmatpush1.bf16.msra.mxu1 %v6445_v32  ;;  %3338 = vmatprep.subr.bf16.mxu0 %v6450_v0  ;;  %v6525_v32 = vld [vmem:[%s8822_s2 + $0xd0c] ss:$16 sps:$4 sm:$0xff]   ;;  %v334_v0 = vmul.f32 1.442695, %v308_v61 }
 0x1d0   :  { %3625 = vmatprep.subr.bf16.mxu1 %v6453_v1  ;;  %v6520_v1 = vld [vmem:[%s8822_s2 + $0xd00] ss:$16 sps:$4 sm:$0xff]  }
 0x1d1   :  { %6618 = vpow2.f32 %v334_v0 }
 0x1d2   :  { %3339 = vmatpush1.bf16.msra.mxu0 %v6448_v37  ;;  %v6531_v37 = vld [vmem:[%s8822_s2 + $0xd2c] ss:$16 sps:$4 sm:$0xff]  }
 0x1d3   :  { %3626 = vmatpush1.bf16.msra.mxu1 %v6451_v35  ;;  %3340 = vmatprep.subr.bf16.mxu0 %v6456_v36  ;;  %v6526_v35 = vld [vmem:[%s8822_s2 + $0xd20] ss:$16 sps:$4 sm:$0xff]   ;;  %v6529_v36 = vld [vmem:[%s8822_s2 + $0xd28] ss:$16 sps:$4 sm:$0xff]  }
 0x1d4   :  { %3627 = vmatprep.subr.bf16.mxu1 %v6459_v18  ;;  %v6537_v18 = vld [vmem:[%s8822_s2 + $0xd4c] ss:$16 sps:$4 sm:$0xff]  }
 0x1d6   :  { %3341 = vmatpush1.bf16.msra.mxu0 %v6454_v20  ;;  %v6532_v20 = vld [vmem:[%s8822_s2 + $0xd40] ss:$16 sps:$4 sm:$0xff]  }
 0x1d7   :  { %3628 = vmatpush1.bf16.msra.mxu1 %v6457_v26  ;;  %3342 = vmatprep.subr.bf16.mxu0 %v6462_v27  ;;  %v6535_v26 = vld [vmem:[%s8822_s2 + $0xd48] ss:$16 sps:$4 sm:$0xff]   ;;  %v6540_v27 = vld [vmem:[%s8822_s2 + $0xd64] ss:$16 sps:$4 sm:$0xff]  }
 0x1d8   :  { %3629 = vmatprep.subr.bf16.mxu1 %v6465_v38  ;;  %v6543_v38 = vld [vmem:[%s8822_s2 + $0xd6c] ss:$16 sps:$4 sm:$0xff]  }
 0x1da   :  { %3343 = vmatpush1.bf16.msra.mxu0 %v6460_v40  ;;  %v6538_v40 = vld [vmem:[%s8822_s2 + $0xd60] ss:$16 sps:$4 sm:$0xff]  }
 0x1db   :  { %3630 = vmatpush1.bf16.msra.mxu1 %v6463_v42  ;;  %3344 = vmatprep.subr.bf16.mxu0 %v6468_v46  ;;  %v6619_v42 = vpop.eup %6618  ;;  %v6541_v46 = vld [vmem:[%s8822_s2 + $0xd68] ss:$16 sps:$4 sm:$0xff]  }
 0x1dc   :  { %3631 = vmatprep.subr.bf16.mxu1 %v6471_v47  ;;  %v6546_v47 = vld [vmem:[%s8822_s2 + $0xd84] ss:$16 sps:$4 sm:$0xff]  }
 0x1de   :  { %3345 = vmatpush1.bf16.msra.mxu0 %v6466_v63  ;;  %v6549_v63 = vld [vmem:[%s8822_s2 + $0xd8c] ss:$16 sps:$4 sm:$0xff]  }
 0x1df   :  { %3632 = vmatpush1.bf16.msra.mxu1 %v6469_v45  ;;  %3355 = vmatprep.subr.bf16.mxu0 %v6474_v50  ;;  %v350_v45 = vadd.f32 1.0, %v6619_v42  ;;  %v6544_v50 = vld [vmem:[%s8822_s2 + $0xd80] ss:$16 sps:$4 sm:$0xff]  }
 0x1e0   :  { %3642 = vmatprep.subr.bf16.mxu1 %v6477_v53  ;;  %v6552_v53 = vld [vmem:[%s8822_s2 + $0xda4] ss:$16 sps:$4 sm:$0xff]  }
 0x1e1   :  { %3347 = vmatmul.mubr.bf16.vlgmr.msra.gmra.mrb[0].mxu0 %v390_v54  ;;  %6620 = vrcp.f32 %v350_v45  ;;  %v3756_v42 = vld [vmem:[%s8824_s6 + $0xb0] sm:$0xff] }
 0x1e2   :  { %3634 = vmatmul.mubr.bf16.vlgmr.msra.gmra.mrb[0].mxu1 %v390_v54  ;;  %3356 = vmatpush1.bf16.msra.mxu0 %v6472_v49  ;;  %v6550_v49 = vld [vmem:[%s8822_s2 + $0xda0] ss:$16 sps:$4 sm:$0xff]   ;;  %v6553_v54 = vld [vmem:[%s8822_s2 + $0xda8] ss:$16 sps:$4 sm:$0xff]  }
 0x1e3   :  { %5359 = vmatprep.mubr.msk.bf16.mxu0 %vm3092_vm1, %v393_v56  ;;  %3643 = vmatpush1.bf16.msra.mxu1 %v6475_v59  ;;  %v6558_v59 = vld [vmem:[%s8822_s2 + $0xdc4] ss:$16 sps:$4 sm:$0xff]  }
 0x1e4   :  { %5361 = vmatprep.mubr.msk.bf16.mxu1 %vm3092_vm1, %v393_v56  ;;  %3357 = vmatprep.subr.bf16.mxu0 %v6480_v55  ;;  %v6561_v55 = vld [vmem:[%s8822_s2 + $0xdcc] ss:$16 sps:$4 sm:$0xff]   ;;  %v838_v56 = vld [vmem:[%s8822_s2 + $0xde0] sm:$0x77] }
 0x1e5   :  { %3644 = vmatprep.subr.bf16.mxu1 %v6483_v57  ;;  %v839_v57 = vld [vmem:[%s8822_s2 + $0xde8] sm:$0x77] }
 0x1e6   :  { %3358 = vmatpush1.bf16.msra.mxu0 %v6478_v58  ;;  %v6556_v58 = vld [vmem:[%s8822_s2 + $0xdc0] ss:$16 sps:$4 sm:$0xff]  }
 0x1e7   :  { %3645 = vmatpush1.bf16.msra.mxu1 %v6481_v60  ;;  %3359 = vmatprep.subr.bf16.mxu0 %v6486_v62  ;;  %v6559_v60 = vld [vmem:[%s8822_s2 + $0xdc8] ss:$16 sps:$4 sm:$0xff]   ;;  %v5355_v62 = vcombine.high %v838_v56, %v838_v56 }
 0x1e8   :  { %3646 = vmatprep.subr.bf16.mxu1 %v6489_v2  ;;  %v5354_v2 = vcombine.low %v838_v56, %v838_v56 }
 0x1ea   :  { %3360 = vmatpush1.bf16.msra.mxu0 %v6484_v3  ;;  %v5357_v3 = vcombine.high %v839_v57, %v839_v57 }
 0x1eb   :  { %3647 = vmatpush1.bf16.msra.mxu1 %v6487_v4  ;;  %3361 = vmatprep.subr.bf16.mxu0 %v6492_v5  ;;  %v5356_v4 = vcombine.low %v839_v57, %v839_v57  ;;  %v3750_v5 = vld [vmem:[%s8824_s6 + $0x80] sm:$0xff] }
 0x1ec   :  { %3648 = vmatprep.subr.bf16.mxu1 %v6495_v6  ;;  %v3751_v6 = vld [vmem:[%s8824_s6 + $0x88] sm:$0xff]  ;;  %v3758_v57 = vld [vmem:[%s8824_s6 + $0xc0] sm:$0xff] }
 0x1ee   :  { %3362 = vmatpush1.bf16.msra.mxu0 %v6490_v9  ;;  %v3782_v9 = vld [vmem:[%s8824_s6 + $0x180] sm:$0xff] }
 0x1ef   :  { %3649 = vmatpush1.bf16.msra.mxu1 %v6493_v10  ;;  %3363 = vmatprep.subr.bf16.mxu0 %v6498_v12  ;;  %v3783_v10 = vld [vmem:[%s8824_s6 + $0x188] sm:$0xff]  ;;  %v3098_v12 = vsel %vm3096_vm2, %v5354_v2, 0 }
 0x1f0   :  { %3650 = vmatprep.subr.bf16.mxu1 %v6501_v14  ;;  %v8283_v14 = vpack.c.bf16 %v3751_v6, %v3750_v5  ;;  %v3791_v2 = vld [vmem:[%s8824_s6 + $0x1c8] sm:$0xff] }
 0x1f2   :  { %3364 = vmatpush1.bf16.msra.mxu0 %v6496_v15  ;;  %v3734_v15 = vld [vmem:[%s8824_s6] sm:$0xff] }
 0x1f3   :  { %3651 = vmatpush1.bf16.msra.mxu1 %v6499_v16  ;;  %3365 = vmatprep.subr.bf16.mxu0 %v6504_v19  ;;  %v3735_v16 = vld [vmem:[%s8824_s6 + $0x8] sm:$0xff]  ;;  %v3766_v19 = vld [vmem:[%s8824_s6 + $0x100] sm:$0xff] }
 0x1f4   :  { %3652 = vmatprep.subr.bf16.mxu1 %v6507_v21  ;;  %v6621_v21 = vpop.eup %6620 }
 0x1f6   :  { %3366 = vmatpush1.bf16.msra.mxu0 %v6502_v22  ;;  %v3104_v22 = vsel %vm3096_vm2, %v5356_v4, 0  ;;  %v3743_v4 = vld [vmem:[%s8824_s6 + $0x48] sm:$0xff] }
 0x1f7   :  { %3653 = vmatpush1.bf16.msra.mxu1 %v6505_v11  ;;  %3367 = vmatprep.subr.bf16.mxu0 %v6510_v23  ;;  %v8296_v11 = vpack.c.bf16 %v3783_v10, %v3782_v9  ;;  %v3767_v23 = vld [vmem:[%s8824_s6 + $0x108] sm:$0xff]  ;;  %v3774_v9 = vld [vmem:[%s8824_s6 + $0x140] sm:$0xff] }
 0x1f8   :  { %3654 = vmatprep.subr.bf16.mxu1 %v6513_v44  ;;  %v3752_v44 = vld [vmem:[%s8824_s6 + $0x90] sm:$0xff]  ;;  %v8316_v61 = vpack.c.bf16 %v3767_v23, %v3766_v19  ;;  %v3775_v10 = vld [vmem:[%s8824_s6 + $0x148] sm:$0xff] }
 0x1f9   :  { %v3792_v19 = vld [vmem:[%s8824_s6 + $0x1d0] sm:$0xff] }
 0x1fa   :  { %3368 = vmatpush1.bf16.msra.mxu0 %v6508_v25  ;;  %v3784_v25 = vld [vmem:[%s8824_s6 + $0x190] sm:$0xff] }
 0x1fb   :  { %3655 = vmatpush1.bf16.msra.mxu1 %v6511_v28  ;;  %3369 = vmatprep.subr.bf16.mxu0 %v6516_v29  ;;  %v3785_v28 = vld [vmem:[%s8824_s6 + $0x198] sm:$0xff]  ;;  %v8313_v29 = vpack.c.bf16 %v3735_v16, %v3734_v15  ;;  %v3760_v15 = vld [vmem:[%s8824_s6 + $0xd0] sm:$0xff] }
 0x1fc   :  { %3656 = vmatprep.subr.bf16.mxu1 %v6519_v51  ;;  %v392_v51 = vpack.c.bf16 %v6621_v21, %v6621_v21  ;;  %v8330_v0 = vpack.c.bf16 %v3785_v28, %v3784_v25  ;;  %v3761_v16 = vld [vmem:[%s8824_s6 + $0xd8] sm:$0xff]  ;;  %v3744_v23 = vld [vmem:[%s8824_s6 + $0x50] sm:$0xff] }
 0x1fd   :  { %v8462_v21 = vpack.c.bf16 %v3761_v16, %v3760_v15  ;;  %v3776_v28 = vld [vmem:[%s8824_s6 + $0x150] sm:$0xff] }
 0x1fe   :  { %3370 = vmatpush1.bf16.msra.mxu0 %v6514_v43  ;;  %v8318_v43 = vpack.c.bf16 %v3753_v24, %v3752_v44  ;;  %v3745_v44 = vld [vmem:[%s8824_s6 + $0x58] sm:$0xff] }
 0x1ff   :  { %3657 = vmatpush1.bf16.msra.mxu1 %v6517_v30  ;;  %3371 = vmatprep.subr.bf16.mxu0 %v6522_v31  ;;  %v3736_v30 = vld [vmem:[%s8824_s6 + $0x10] sm:$0xff]  ;;  %v3737_v31 = vld [vmem:[%s8824_s6 + $0x18] sm:$0xff]  ;;  %v8475_v25 = vpack.c.bf16 %v3745_v44, %v3744_v23 }
 0x200   :  { %3658 = vmatprep.subr.bf16.mxu1 %v6525_v32  ;;  %v3768_v32 = vld [vmem:[%s8824_s6 + $0x110] sm:$0xff] }
 0x202   :  { %3372 = vmatpush1.bf16.msra.mxu0 %v6520_v1  ;;  %v3769_v1 = vld [vmem:[%s8824_s6 + $0x118] sm:$0xff] }
 0x203   :  { %3659 = vmatpush1.bf16.msra.mxu1 %v6523_v39  ;;  %3373 = vmatprep.subr.bf16.mxu0 %v6528_v34  ;;  %v3754_v39 = vld [vmem:[%s8824_s6 + $0xa0] sm:$0xff]  ;;  %v3755_v34 = vld [vmem:[%s8824_s6 + $0xa8] sm:$0xff] }
 0x204   :  { %3660 = vmatprep.subr.bf16.mxu1 %v6531_v37  ;;  %v3786_v37 = vld [vmem:[%s8824_s6 + $0x1a0] sm:$0xff] }
 0x206   :  { %3374 = vmatpush1.bf16.msra.mxu0 %v6526_v35  ;;  %v3787_v35 = vld [vmem:[%s8824_s6 + $0x1a8] sm:$0xff] }
 0x207   :  { %3661 = vmatpush1.bf16.msra.mxu1 %v6529_v36  ;;  %3375 = vmatprep.subr.bf16.mxu0 %v6534_v17  ;;  %v8348_v36 = vpack.c.bf16 %v3737_v31, %v3736_v30  ;;  %v8352_v17 = vpack.c.bf16 %v3769_v1, %v3768_v32  ;;  %v3762_v31 = vld [vmem:[%s8824_s6 + $0xe0] sm:$0xff]  ;;  %v3763_v32 = vld [vmem:[%s8824_s6 + $0xe8] sm:$0xff] }
 0x208   :  { %3662 = vmatprep.subr.bf16.mxu1 %v6537_v18  ;;  %v8354_v18 = vpack.c.bf16 %v3755_v34, %v3754_v39  ;;  %v3794_v1 = vld [vmem:[%s8824_s6 + $0x1e0] sm:$0xff]  ;;  %v8498_v39 = vpack.c.bf16 %v3763_v32, %v3762_v31  ;;  %v3795_v34 = vld [vmem:[%s8824_s6 + $0x1e8] sm:$0xff] }
 0x20a   :  { %3376 = vmatpush1.bf16.msra.mxu0 %v6532_v20  ;;  %v3738_v20 = vld [vmem:[%s8824_s6 + $0x20] sm:$0xff] }
 0x20b   :  { %3663 = vmatpush1.bf16.msra.mxu1 %v6535_v26  ;;  %3377 = vmatprep.subr.bf16.mxu0 %v6540_v27  ;;  %v3739_v26 = vld [vmem:[%s8824_s6 + $0x28] sm:$0xff]  ;;  %v3770_v27 = vld [vmem:[%s8824_s6 + $0x120] sm:$0xff] }
 0x20c   :  { %3664 = vmatprep.subr.bf16.mxu1 %v6543_v38  ;;  %v8366_v38 = vpack.c.bf16 %v3787_v35, %v3786_v37  ;;  %v8384_v45 = vpack.c.bf16 %v3739_v26, %v3738_v20  ;;  %v3746_v37 = vld [vmem:[%s8824_s6 + $0x60] sm:$0xff]  ;;  %v3747_v35 = vld [vmem:[%s8824_s6 + $0x68] sm:$0xff]  ;;  %v8509_v20 = vpack.c.bf16 %v3795_v34, %v3794_v1 }
 0x20d   :  { %v8511_v26 = vpack.c.bf16 %v3747_v35, %v3746_v37 }
 0x20e   :  { %3378 = vmatpush1.bf16.msra.mxu0 %v6538_v40  ;;  %v3771_v40 = vld [vmem:[%s8824_s6 + $0x128] sm:$0xff] }
 0x20f   :  { %3665 = vmatpush1.bf16.msra.mxu1 %v6541_v46  ;;  %3379 = vmatprep.subr.bf16.mxu0 %v6546_v47  ;;  %v3757_v46 = vld [vmem:[%s8824_s6 + $0xb8] sm:$0xff]  ;;  %v3788_v47 = vld [vmem:[%s8824_s6 + $0x1b0] sm:$0xff] }
 0x210   :  { %3666 = vmatprep.subr.bf16.mxu1 %v6549_v63  ;;  %v3789_v63 = vld [vmem:[%s8824_s6 + $0x1b8] sm:$0xff] }
 0x212   :  { %3380 = vmatpush1.bf16.msra.mxu0 %v6544_v50  ;;  %v8388_v50 = vpack.c.bf16 %v3771_v40, %v3770_v27  ;;  %v3778_v27 = vld [vmem:[%s8824_s6 + $0x160] sm:$0xff]  ;;  %v3779_v40 = vld [vmem:[%s8824_s6 + $0x168] sm:$0xff] }
 0x213   :  { %3667 = vmatpush1.bf16.msra.mxu1 %v6547_v52  ;;  %3381 = vmatprep.subr.bf16.mxu0 %v6552_v53  ;;  %v8390_v52 = vpack.c.bf16 %v3757_v46, %v3756_v42  ;;  %v3740_v53 = vld [vmem:[%s8824_s6 + $0x30] sm:$0xff]  ;;  %v8520_v42 = vpack.c.bf16 %v3779_v40, %v3778_v27 }
 0x214   :  { %3668 = vmatprep.subr.bf16.mxu1 %v6555_v48  ;;  %v3741_v48 = vld [vmem:[%s8824_s6 + $0x38] sm:$0xff]  ;;  %v3764_v46 = vld [vmem:[%s8824_s6 + $0xf0] sm:$0xff] }
 0x216   :  { %3382 = vmatpush1.bf16.msra.mxu0 %v6550_v49  ;;  %v8399_v49 = vpack.c.bf16 %v3789_v63, %v3788_v47  ;;  %v3765_v47 = vld [vmem:[%s8824_s6 + $0xf8] sm:$0xff]  ;;  %v3796_v63 = vld [vmem:[%s8824_s6 + $0x1f0] sm:$0xff] }
 0x217   :  { %3669 = vmatpush1.bf16.msra.mxu1 %v6553_v54  ;;  %3383 = vmatprep.subr.bf16.mxu0 %v6558_v59  ;;  %v3772_v54 = vld [vmem:[%s8824_s6 + $0x130] sm:$0xff]  ;;  %v3773_v59 = vld [vmem:[%s8824_s6 + $0x138] sm:$0xff] }
 0x218   :  { %3670 = vmatprep.subr.bf16.mxu1 %v6561_v55  ;;  %v8408_v55 = vpack.c.bf16 %v3741_v48, %v3740_v53  ;;  %v8412_v56 = vpack.c.bf16 %v3773_v59, %v3772_v54  ;;  %v8534_v53 = vpack.c.bf16 %v3765_v47, %v3764_v46  ;;  %v3797_v48 = vld [vmem:[%s8824_s6 + $0x1f8] sm:$0xff]  ;;  %v3748_v54 = vld [vmem:[%s8824_s6 + $0x70] sm:$0xff] }
 0x219   :  { %v3749_v59 = vld [vmem:[%s8824_s6 + $0x78] sm:$0xff] }
 0x21a   :  { %3384 = vmatpush1.bf16.msra.mxu0 %v6556_v58  ;;  %v3759_v58 = vld [vmem:[%s8824_s6 + $0xc8] sm:$0xff]  ;;  %8848 = vst [vmem:[#allocation5_spill] sm:$0xff] %v8534_v53 }
 0x21b   :  { %3671 = vmatpush1.bf16.msra.mxu1 %v6559_v60  ;;  %5358 = vmatprep.subr.msk.bf16.mxu0 %vm3096_vm2, %v5355_v62  ;;  %v3790_v60 = vld [vmem:[%s8824_s6 + $0x1c0] sm:$0xff]  ;;  %v8426_v62 = vpack.c.bf16 %v3759_v58, %v3758_v57  ;;  %v8545_v57 = vpack.c.bf16 %v3797_v48, %v3796_v63  ;;  %v8547_v58 = vpack.c.bf16 %v3749_v59, %v3748_v54 }
 0x21c   :  { %5360 = vmatprep.subr.msk.bf16.mxu1 %vm3096_vm2, %v5357_v3  ;;  %v3742_v3 = vld [vmem:[%s8824_s6 + $0x40] sm:$0xff]  ;;  %v8437_v5 = vpack.c.bf16 %v3791_v2, %v3790_v60  ;;  %v3780_v60 = vld [vmem:[%s8824_s6 + $0x170] sm:$0xff]  ;;  %v3781_v2 = vld [vmem:[%s8824_s6 + $0x178] sm:$0xff] }
 0x21d   :  { %v8439_v6 = vpack.c.bf16 %v3743_v4, %v3742_v3  ;;  %8849 = vst [vmem:[#allocation6_spill] sm:$0xff] %v8545_v57  ;;  %8850 = vst [vmem:[#allocation7_spill] sm:$0xff] %v8547_v58  ;;  %v8556_v3 = vpack.c.bf16 %v3781_v2, %v3780_v60  ;;  %v840_v4 = vld [vmem:[%s8825_s3] sm:$0xf] }
 0x21e   :  { %3386 = vmatpush1.bf16.msra.mxu0 %v3098_v12  ;;  %v8448_v12 = vpack.c.bf16 %v3775_v10, %v3774_v9  ;;  %v845_v9 = vrot.slane %v840_v4, %v6959_v8  ;;  %v853_v10 = vrot.slane %v840_v4, %v7074_v41  ;;  %v849_v15 = vrot.slane %v840_v4, %v6970_v13 }
 0x21f   :  { %3673 = vmatpush1.bf16.msra.mxu1 %v3104_v22  ;;  %5607 = vmatprep.subr.bf16.mxu0 %v8283_v14  ;;  %v3793_v22 = vld [vmem:[%s8824_s6 + $0x1d8] sm:$0xff]  ;;  %8851 = vst [vmem:[#allocation8_spill] sm:$0xff] %v8556_v3  ;;  %v857_v16 = vrot.slane %v840_v4, %v6983_v33 }
 0x220   :  { %5639 = vmatprep.subr.bf16.mxu1 %v8296_v11  ;;  %v8473_v24 = vpack.c.bf16 %v3793_v22, %v3792_v19 }
 0x221   :  { %3388 = vmatmul.mubr.bf16.vlgmr.msra.gmra.mrb[0].mxu0 %v392_v51 }
 0x222   :  { %3675 = vmatmul.mubr.bf16.vlgmr.msra.gmra.mrb[0].mxu1 %v392_v51  ;;  %5609 = vmatpush3.bf16.msra.mxu0 %v8313_v29  ;;  %v3777_v51 = vld [vmem:[%s8824_s6 + $0x158] sm:$0xff] }
 0x223   :  { %5641 = vmatpush3.bf16.msra.mxu1 %v8316_v61  ;;  %5611 = vmatprep.subr.bf16.mxu0 %v8318_v43  ;;  %v8484_v30 = vpack.c.bf16 %v3777_v51, %v3776_v28 }
 0x224   :  { %5643 = vmatprep.subr.bf16.mxu1 %v8330_v0 }
 0x226   :  { %5613 = vmatpush3.bf16.msra.mxu0 %v8348_v36 }
 0x227   :  { %5645 = vmatpush3.bf16.msra.mxu1 %v8352_v17  ;;  %5615 = vmatprep.subr.bf16.mxu0 %v8354_v18 }
 0x228   :  { %5647 = vmatprep.subr.bf16.mxu1 %v8366_v38 }
 0x22a   :  { %5617 = vmatpush3.bf16.msra.mxu0 %v8384_v45 }
 0x22b   :  { %5649 = vmatpush3.bf16.msra.mxu1 %v8388_v50  ;;  %5619 = vmatprep.subr.bf16.mxu0 %v8390_v52 }
 0x22c   :  { %5651 = vmatprep.subr.bf16.mxu1 %v8399_v49 }
 0x22e   :  { %5621 = vmatpush3.bf16.msra.mxu0 %v8408_v55 }
 0x22f   :  { %5653 = vmatpush3.bf16.msra.mxu1 %v8412_v56  ;;  %5623 = vmatprep.subr.bf16.mxu0 %v8426_v62 }
 0x230   :  { %5655 = vmatprep.subr.bf16.mxu1 %v8437_v5 }
 0x232   :  { %5625 = vmatpush3.bf16.msra.mxu0 %v8439_v6 }
 0x233   :  { %5657 = vmatpush3.bf16.msra.mxu1 %v8448_v12  ;;  %5627 = vmatprep.subr.bf16.mxu0 %v8462_v21 }
 0x234   :  { %5659 = vmatprep.subr.bf16.mxu1 %v8473_v24 }
 0x236   :  { %5629 = vmatpush3.bf16.msra.mxu0 %v8475_v25 }
 0x237   :  { %5661 = vmatpush3.bf16.msra.mxu1 %v8484_v30  ;;  %5631 = vmatprep.subr.bf16.mxu0 %v8498_v39 }
 0x238   :  { %5663 = vmatprep.subr.bf16.mxu1 %v8509_v20 }
 0x23a   :  { %5633 = vmatpush3.bf16.msra.mxu0 %v8511_v26 }
 0x23b   :  { %5665 = vmatpush3.bf16.msra.mxu1 %v8520_v42  ;;  %5635 = vmatprep.subr.bf16.mxu0 %v8534_v53 }
 0x23c   :  { %5667 = vmatprep.subr.bf16.mxu1 %v8545_v57 }
 0x23e   :  { %5637 = vmatpush3.bf16.msra.mxu0 %v8547_v58 }
 0x23f   :  { %5669 = vmatpush3.bf16.msra.mxu1 %v8556_v3 }
 0x2f4   :  { %v3389_v19 = vpop.f32.mrb[0].mxu0 }
 0x2f5   :  { %v8569_v22 = vadd.f32 %v3389_v19, %v845_v9  ;;  %v3676_v23 = vpop.f32.mrb[0].mxu1  ;;  %v3391_v44 = vpop.f32.mrb[1].mxu0 }
 0x2f6   :  { %v8571_v28 = vadd.f32 %v3676_v23, %v853_v10  ;;  %v8573_v51 = vadd.f32 %v3391_v44, %v849_v15  ;;  %v3678_v31 = vpop.f32.mrb[1].mxu1  ;;  %v3393_v32 = vpop.f32.mrb[2].mxu0 }
 0x2f7   :  { %v3706_v41 = vsel %vm3703_vm3, %v8569_v22, 0.0  ;;  %v8578_v13 = vadd.f32 %v3678_v31, %v857_v16  ;;  %v3680_v33 = vpop.f32.mrb[2].mxu1  ;;  %v3394_v1 = vpop.f32.mrb[3].mxu0 }
 0x2f8   :  { %v3710_v34 = vrot.slane %v3706_v41, 4  ;;  %v3708_v37 = vsel %vm3703_vm3, %v8571_v28, 0.0  ;;  %v3707_v35 = vsel %vm3703_vm3, %v8573_v51, 0.0  ;;  %v3681_v27 = vpop.f32.mrb[3].mxu1 }
 0x2f9   :  { %v3722_v40 = vrot.slane %v3708_v37, 4  ;;  %v3716_v46 = vrot.slane %v3707_v35, 4  ;;  %v3709_v47 = vsel %vm3703_vm3, %v8578_v13, 0.0 }
 0x2fa   :  { %v3711_v63 = vadd.f32 %v3710_v34, %v3706_v41  ;;  %v3728_v48 = vrot.slane %v3709_v47, 4  ;;  %v3940_v34 = vld [vmem:[%s8826_s7 + $0x8] sm:$0xff] }
 0x2fb   :  { %v3723_v54 = vadd.f32 %v3722_v40, %v3708_v37  ;;  %v3717_v59 = vadd.f32 %v3716_v46, %v3707_v35  ;;  %v3944_v37 = vld [vmem:[%s8826_s7 + $0x28] sm:$0xff]  ;;  %v3942_v35 = vld [vmem:[%s8826_s7 + $0x18] sm:$0xff] }
 0x2fc   :  { %v3712_v60 = vrot.slane %v3711_v63, 2  ;;  %v3729_v2 = vadd.f32 %v3728_v48, %v3709_v47  ;;  %v8598_v40 = vpack.c.bf16 %v3944_v37, %v3940_v34  ;;  %v3946_v46 = vld [vmem:[%s8826_s7 + $0x38] sm:$0xff]  ;;  %v3943_v47 = vld [vmem:[%s8826_s7 + $0x20] sm:$0xff] }
 0x2fd   :  { %v3724_v4 = vrot.slane %v3723_v54, 2  ;;  %v3718_v9 = vrot.slane %v3717_v59, 2 }
 0x2fe   :  { %v3713_v10 = vadd.f32 %v3712_v60, %v3711_v63  ;;  %v3730_v15 = vrot.slane %v3729_v2, 2  ;;  %v8609_v63 = vpack.c.bf16 %v3946_v46, %v3942_v35  ;;  %5671 = vmatprep.subr.bf16.mxu0 %v8598_v40 }
 0x2ff   :  { %v3725_v16 = vadd.f32 %v3724_v4, %v3723_v54  ;;  %v3719_v19 = vadd.f32 %v3718_v9, %v3717_v59  ;;  %v3941_v54 = vld [vmem:[%s8826_s7 + $0x10] sm:$0xff]  ;;  %v8633_v4 = vld [vmem:[%s8826_s7 + $0x58] sm:$0xf]  ;;  %v8642_v9 = vld [vmem:[%s8826_s7 + $0x40] sm:$0xf] }
 0x300   :  { %v3714_v23 = vrot.slane %v3713_v10, 1  ;;  %v3731_v44 = vadd.f32 %v3730_v15, %v3729_v2  ;;  %v3945_v59 = vld [vmem:[%s8826_s7 + $0x30] sm:$0xff]  ;;  %5675 = vmatprep.subr.bf16.mxu1 %v8609_v63  ;;  %v8628_v2 = vld [vmem:[%s8826_s7 + $0x48] sm:$0xf]  ;;  %v8834_v15 = vmov 0.0  }
 0x301   :  { %v3726_v31 = vrot.slane %v3725_v16, 1  ;;  %v3720_v32 = vrot.slane %v3719_v19, 1  ;;  %v8620_v60 = vpack.c.bf16 %v3945_v59, %v3941_v54 }
 0x302   :  { %v3732_v33 = vrot.slane %v3731_v44, 1  ;;  %v3715_v7 = vadd.f32 %v3714_v23, %v3713_v10  ;;  %v8647_v10 = vld [vmem:[%s8826_s7 + $0x50] sm:$0xf] }
 0x303   :  { %v3721_v1 = vadd.f32 %v3720_v32, %v3719_v19  ;;  %v3727_v41 = vadd.f32 %v3726_v31, %v3725_v16 }
 0x304   :  { %v3733_v27 = vadd.f32 %v3732_v33, %v3731_v44 }
 0x305   :  { %3862 = vmatprep.mubr.f32.mxu0 %v3721_v1 }
 0x306   :  { %3932 = vmatprep.mubr.f32.mxu1 %v3733_v27  ;;  %3863 = vmatmul.mubr.f32.vlgmr.msra.gmra.mrb[4].mxu0 %v3715_v7  ;;  %v3939_v7 = vld [vmem:[%s8826_s7] sm:$0xff] }
 0x307   :  { %3933 = vmatmul.mubr.f32.vlgmr.msra.gmra.mrb[4].mxu1 %v3727_v41  ;;  %v8611_v48 = vpack.c.bf16 %v3943_v47, %v3939_v7  ;;  %4032 = vmatprep.mubr.f32.mxu0 %v8834_v15 }
 0x308   :  { %5677 = vmatpush1.bf16.msra.mxu1 %v8620_v60  ;;  %4103 = vmatprep.mubr.f32.mxu1 %v8834_v15 }
 0x309   :  { %5673 = vmatpush1.bf16.msra.mxu0 %v8611_v48  ;;  %5365 = vmatprep.subr.msk.mxu1 %vm3955_vm4, %v8633_v4 }
 0x30a   :  { %5362 = vmatprep.subr.msk.mxu0 %vm3955_vm4, %v8628_v2 }
 0x30c   :  { %5366 = vmatpush1.msk.msra.mxu1 %vm3955_vm4, %v8647_v10 }
 0x30d   :  { %5363 = vmatpush1.msk.msra.mxu0 %vm3955_vm4, %v8642_v9  ;;  %5711 = vmatprep.subr.bf16.mxu1 %v8296_v11 }
 0x30e   :  { %5679 = vmatprep.subr.bf16.mxu0 %v8283_v14 }
 0x3d9   :  { %v5415_v16 = vpop.f32.mrb[4].mxu0 }
 0x3da   :  { %v5450_v19 = vpop.f32.mrb[4].mxu1  ;;  %v5416_v23 = vpop.f32.mrb[5].mxu0 }
 0x3db   :  { %v5417_v44 = vadd.f32 %v5416_v23, %v5415_v16  ;;  %v5451_v31 = vpop.f32.mrb[5].mxu1 }
 0x3dc   :  { %v5452_v32 = vadd.f32 %v5451_v31, %v5450_v19 }
 0x3de   :  { %v3935_v33 = vadd.f32 %v5452_v32, %v5417_v44 }
 0x3e0   :  { %v3938_v1 = vmul.f32 0.02, %v3935_v33 }
 0x3e2   :  { %5364 = vmatmul.mubr.msk.f32.vlgmr.msra.gmra.mrb[6].mxu0 %vm3951_vm5, %v3938_v1  ;;  %5367 = vmatmul.mubr.msk.f32.vlgmr.msra.gmra.mrb[6].mxu1 %vm3951_vm5, %v3938_v1 }
 0x3e3   :  { %5681 = vmatpush3.bf16.msra.mxu0 %v8313_v29  ;;  %5713 = vmatpush3.bf16.msra.mxu1 %v8316_v61 }
 0x3e4   :  { %5683 = vmatprep.subr.bf16.mxu0 %v8318_v43  ;;  %5715 = vmatprep.subr.bf16.mxu1 %v8330_v0 }
 0x3e7   :  { %5685 = vmatpush3.bf16.msra.mxu0 %v8348_v36  ;;  %5717 = vmatpush3.bf16.msra.mxu1 %v8352_v17 }
 0x3e8   :  { %5687 = vmatprep.subr.bf16.mxu0 %v8354_v18  ;;  %5719 = vmatprep.subr.bf16.mxu1 %v8366_v38 }
 0x3eb   :  { %5689 = vmatpush3.bf16.msra.mxu0 %v8384_v45  ;;  %5721 = vmatpush3.bf16.msra.mxu1 %v8388_v50 }
 0x3ec   :  { %5691 = vmatprep.subr.bf16.mxu0 %v8390_v52  ;;  %5723 = vmatprep.subr.bf16.mxu1 %v8399_v49 }
 0x3ef   :  { %5693 = vmatpush3.bf16.msra.mxu0 %v8408_v55  ;;  %5725 = vmatpush3.bf16.msra.mxu1 %v8412_v56 }
 0x3f0   :  { %5695 = vmatprep.subr.bf16.mxu0 %v8426_v62  ;;  %5727 = vmatprep.subr.bf16.mxu1 %v8437_v5 }
 0x3f3   :  { %5697 = vmatpush3.bf16.msra.mxu0 %v8439_v6  ;;  %5729 = vmatpush3.bf16.msra.mxu1 %v8448_v12 }
 0x3f4   :  { %5699 = vmatprep.subr.bf16.mxu0 %v8462_v21  ;;  %5731 = vmatprep.subr.bf16.mxu1 %v8473_v24 }
 0x3f7   :  { %5701 = vmatpush3.bf16.msra.mxu0 %v8475_v25  ;;  %5733 = vmatpush3.bf16.msra.mxu1 %v8484_v30 }
 0x3f8   :  { %5703 = vmatprep.subr.bf16.mxu0 %v8498_v39  ;;  %5735 = vmatprep.subr.bf16.mxu1 %v8509_v20 }
 0x3fb   :  { %5705 = vmatpush3.bf16.msra.mxu0 %v8511_v26  ;;  %5737 = vmatpush3.bf16.msra.mxu1 %v8520_v42 }
 0x3fc   :  { %5707 = vmatprep.subr.bf16.mxu0 %v8534_v53  ;;  %5739 = vmatprep.subr.bf16.mxu1 %v8545_v57 }
 0x3ff   :  { %5709 = vmatpush3.bf16.msra.mxu0 %v8547_v58  ;;  %5741 = vmatpush3.bf16.msra.mxu1 %v8556_v3 }
 0x400   :  { %5743 = vmatprep.subr.bf16.mxu0 %v8598_v40  ;;  %5747 = vmatprep.subr.bf16.mxu1 %v8609_v63 }
 0x4b5   :  { %v4034_v27 = vpop.f32.mrb[6].mxu0  ;;  %v4105_v41 = vpop.f32.mrb[6].mxu1 }
 0x4b6   :  { %v4113_v34 = vrot.slane %v4034_v27, %v6959_v8  ;;  %v4121_v37 = vrot.slane %v4105_v41, %v6959_v8  ;;  %v4036_v35 = vpop.f32.mrb[7].mxu0  ;;  %v4107_v46 = vpop.f32.mrb[7].mxu1 }
 0x4b7   :  { %v4117_v7 = vrot.slane %v4036_v35, %v6959_v8  ;;  %v4125_v47 = vrot.slane %v4107_v46, %v6959_v8 }
 0x4b8   :  { %v8696_v54 = vsub.f32 %v8569_v22, %v4113_v34  ;;  %v8699_v59 = vsub.f32 %v8571_v28, %v4121_v37 }
 0x4b9   :  { %v8702_v16 = vsub.f32 %v8573_v51, %v4117_v7  ;;  %v8705_v19 = vsub.f32 %v8578_v13, %v4125_v47 }
 0x4ba   :  { %8852 = vst [vmem:[#allocation9_spill] sm:$0xff] %v8696_v54  ;;  %8853 = vst [vmem:[#allocation10_spill] sm:$0xff] %v8699_v59  ;;  %v4130_v44 = vsel %vm3703_vm3, %v8696_v54, 0.0  ;;  %v4132_v31 = vsel %vm3703_vm3, %v8699_v59, 0.0 }
 0x4bb   :  { %8854 = vst [vmem:[#allocation11_spill] sm:$0xff] %v8702_v16  ;;  %8855 = vst [vmem:[#allocation12_spill] sm:$0xff] %v8705_v19  ;;  %v4134_v32 = vmul.f32 %v4130_v44, %v4130_v44  ;;  %v4136_v22 = vmul.f32 %v4132_v31, %v4132_v31  ;;  %v4131_v28 = vsel %vm3703_vm3, %v8702_v16, 0.0  ;;  %v4133_v51 = vsel %vm3703_vm3, %v8705_v19, 0.0 }
 0x4bc   :  { %v4135_v13 = vmul.f32 %v4131_v28, %v4131_v28  ;;  %v4137_v33 = vmul.f32 %v4133_v51, %v4133_v51 }
 0x4bd   :  { %v4138_v1 = vrot.slane %v4134_v32, 4  ;;  %v4150_v27 = vrot.slane %v4136_v22, 4 }
 0x4be   :  { %v4144_v41 = vrot.slane %v4135_v13, 4  ;;  %v4156_v34 = vrot.slane %v4137_v33, 4 }
 0x4bf   :  { %v4139_v37 = vadd.f32 %v4138_v1, %v4134_v32  ;;  %v4151_v35 = vadd.f32 %v4150_v27, %v4136_v22  ;;  %v4303_v32 = vld [vmem:[%s8827_s4] sm:$0x1] }
 0x4c0   :  { %v4145_v46 = vadd.f32 %v4144_v41, %v4135_v13  ;;  %v4157_v7 = vadd.f32 %v4156_v34, %v4137_v33 }
 0x4c1   :  { %v4140_v47 = vrot.slane %v4139_v37, 2  ;;  %v4152_v44 = vrot.slane %v4151_v35, 2 }
 0x4c2   :  { %v4146_v31 = vrot.slane %v4145_v46, 2  ;;  %v4158_v15 = vrot.slane %v4157_v7, 2 }
 0x4c3   :  { %v4141_v59 = vadd.f32 %v4140_v47, %v4139_v37  ;;  %v4153_v16 = vadd.f32 %v4152_v44, %v4151_v35 }
 0x4c4   :  { %v4147_v54 = vadd.f32 %v4146_v31, %v4145_v46  ;;  %v4159_v8 = vadd.f32 %v4158_v15, %v4157_v7  ;;  %v8857_v15 = vmov 0.0  }
 0x4c5   :  { %v4142_v23 = vrot.slane %v4141_v59, 1  ;;  %v4154_v19 = vrot.slane %v4153_v16, 1 }
 0x4c6   :  { %v4148_v28 = vrot.slane %v4147_v54, 1  ;;  %v4160_v51 = vrot.slane %v4159_v8, 1 }
 0x4c7   :  { %v4143_v57 = vadd.f32 %v4142_v23, %v4141_v59  ;;  %v4155_v53 = vadd.f32 %v4154_v19, %v4153_v16 }
 0x4c8   :  { %v4149_v3 = vadd.f32 %v4148_v28, %v4147_v54  ;;  %v4161_v58 = vadd.f32 %v4160_v51, %v4159_v8 }
 0x4ca   :  { %4226 = vmatprep.mubr.f32.mxu0 %v4149_v3  ;;  %4296 = vmatprep.mubr.f32.mxu1 %v4161_v58 }
 0x4cb   :  { %4227 = vmatmul.mubr.f32.vlgmr.msra.gmra.mrb[8].mxu0 %v4143_v57  ;;  %4297 = vmatmul.mubr.f32.vlgmr.msra.gmra.mrb[8].mxu1 %v4155_v53 }
 0x4cc   :  { %5745 = vmatpush1.bf16.msra.mxu0 %v8611_v48  ;;  %5749 = vmatpush1.bf16.msra.mxu1 %v8620_v60 }
 0x4cd   :  { %5368 = vmatprep.subr.msk.mxu0 %vm3955_vm4, %v8628_v2  ;;  %5371 = vmatprep.subr.msk.mxu1 %vm3955_vm4, %v8633_v4 }
 0x4ce   :  { %4374 = vmatprep.mubr.f32.mxu0 %v8857_v15  ;;  %4445 = vmatprep.mubr.f32.mxu1 %v8857_v15 }
 0x4d0   :  { %5369 = vmatpush1.msk.msra.mxu0 %vm3955_vm4, %v8642_v9  ;;  %5372 = vmatpush1.msk.msra.mxu1 %vm3955_vm4, %v8647_v10 }
 0x4d1   :  { %5751 = vmatprep.subr.bf16.mxu0 %v8598_v40  ;;  %5755 = vmatprep.subr.bf16.mxu1 %v8609_v63  ;;  %v4452_v40 = vld [vmem:[%s8828_s5] sm:$0x1] }
 0x59e   :  { %v5485_v8 = vpop.f32.mrb[8].mxu0  ;;  %v5520_v53 = vpop.f32.mrb[8].mxu1 }
 0x59f   :  { %v5486_v57 = vpop.f32.mrb[9].mxu0  ;;  %v5521_v58 = vpop.f32.mrb[9].mxu1 }
 0x5a0   :  { %v5487_v3 = vadd.f32 %v5486_v57, %v5485_v8  ;;  %v5522_v54 = vadd.f32 %v5521_v58, %v5520_v53  ;;  %v4803_v58 = vld [vmem:[%s8829_s8] sm:$0xff] }
 0x5a2   :  { %v4299_v59 = vadd.f32 %v5522_v54, %v5487_v3  ;;  %v4804_v3 = vld [vmem:[%s8829_s8 + $0x8] sm:$0xff] }
 0x5a3   :  { %v5823_v54 = vpack.c.bf16 %v4804_v3, %v4803_v58 }
 0x5a4   :  { %v4302_v16 = vmul.f32 0.02, %v4299_v59  ;;  %v6662_v59 = vmov 0.0|0.0  }
 0x5a6   :  { %v4304_v19 = vadd.f32 1e-05, %v4302_v16  ;;  %v4805_v16 = vld [vmem:[%s8829_s8 + $0x10] sm:$0xf] }
 0x5a8   :  { %6622 = vrsqrt.f32 %v4304_v19 }
 0x5b2   :  { %v6623_v22 = vpop.eup %6622 }
 0x5b3   :  { %v4306_v13 = vmul.f32 %v6623_v22, %v4303_v32 }
 0x5b5   :  { %5370 = vmatmul.mubr.msk.f32.vlgmr.msra.gmra.mrb[10].mxu0 %vm3951_vm5, %v4306_v13  ;;  %5373 = vmatmul.mubr.msk.f32.vlgmr.msra.gmra.mrb[10].mxu1 %vm3951_vm5, %v4306_v13 }
 0x5b6   :  { %5753 = vmatpush1.bf16.msra.mxu0 %v8611_v48  ;;  %5757 = vmatpush1.bf16.msra.mxu1 %v8620_v60 }
 0x5b7   :  { %5374 = vmatprep.subr.msk.mxu0 %vm3955_vm4, %v8628_v2  ;;  %5377 = vmatprep.subr.msk.mxu1 %vm3955_vm4, %v8633_v4 }
 0x5b8   :  { %4520 = vmatprep.mubr.f32.mxu0 %v8857_v15  ;;  %4591 = vmatprep.mubr.f32.mxu1 %v8857_v15 }
 0x5ba   :  { %5375 = vmatpush1.msk.msra.mxu0 %vm3955_vm4, %v8642_v9  ;;  %5378 = vmatpush1.msk.msra.mxu1 %vm3955_vm4, %v8647_v10 }
 0x5bb   :  { %5376 = vmatmul.mubr.msk.f32.vlgmr.msra.gmra.mrb[12].mxu0 %vm3951_vm5, %v4452_v40  ;;  %5379 = vmatmul.mubr.msk.f32.vlgmr.msra.gmra.mrb[12].mxu1 %vm3951_vm5, %v4452_v40 }
 0x5bc   :  { %5759 = vmatprep.subr.bf16.mxu0 %v8283_v14  ;;  %5791 = vmatprep.subr.bf16.mxu1 %v8296_v11  ;;  %v8858_v14 = vld [vmem:[#allocation5_spill] sm:$0xff]  ;;  %v8859_v11 = vld [vmem:[#allocation6_spill] sm:$0xff] }
 0x5bd   :  { %5761 = vmatpush3.bf16.msra.mxu0 %v8313_v29  ;;  %5793 = vmatpush3.bf16.msra.mxu1 %v8316_v61  ;;  %v8860_v29 = vld [vmem:[#allocation7_spill] sm:$0xff]  ;;  %v8861_v61 = vld [vmem:[#allocation8_spill] sm:$0xff] }
 0x5be   :  { %5763 = vmatprep.subr.bf16.mxu0 %v8318_v43  ;;  %5795 = vmatprep.subr.bf16.mxu1 %v8330_v0 }
 0x5c1   :  { %5765 = vmatpush3.bf16.msra.mxu0 %v8348_v36  ;;  %5797 = vmatpush3.bf16.msra.mxu1 %v8352_v17 }
 0x5c2   :  { %5767 = vmatprep.subr.bf16.mxu0 %v8354_v18  ;;  %5799 = vmatprep.subr.bf16.mxu1 %v8366_v38  ;;  %v8862_v18 = vld [vmem:[#allocation4_spill] sm:$0xff] }
 0x5c5   :  { %5769 = vmatpush3.bf16.msra.mxu0 %v8384_v45  ;;  %5801 = vmatpush3.bf16.msra.mxu1 %v8388_v50 }
 0x5c6   :  { %5771 = vmatprep.subr.bf16.mxu0 %v8390_v52  ;;  %5803 = vmatprep.subr.bf16.mxu1 %v8399_v49 }
 0x5c9   :  { %5773 = vmatpush3.bf16.msra.mxu0 %v8408_v55  ;;  %5805 = vmatpush3.bf16.msra.mxu1 %v8412_v56  ;;  %v8863_v56 = vld [vmem:[#allocation9_spill] sm:$0xff] }
 0x5ca   :  { %5775 = vmatprep.subr.bf16.mxu0 %v8426_v62  ;;  %5807 = vmatprep.subr.bf16.mxu1 %v8437_v5  ;;  %v8864_v5 = vld [vmem:[#allocation10_spill] sm:$0xff] }
 0x5cd   :  { %5777 = vmatpush3.bf16.msra.mxu0 %v8439_v6  ;;  %5809 = vmatpush3.bf16.msra.mxu1 %v8448_v12 }
 0x5ce   :  { %5779 = vmatprep.subr.bf16.mxu0 %v8462_v21  ;;  %5811 = vmatprep.subr.bf16.mxu1 %v8473_v24 }
 0x5d1   :  { %5781 = vmatpush3.bf16.msra.mxu0 %v8475_v25  ;;  %5813 = vmatpush3.bf16.msra.mxu1 %v8484_v30  ;;  %v8865_v30 = vld [vmem:[#allocation11_spill] sm:$0xff] }
 0x5d2   :  { %5783 = vmatprep.subr.bf16.mxu0 %v8498_v39  ;;  %5815 = vmatprep.subr.bf16.mxu1 %v8509_v20  ;;  %v8866_v20 = vld [vmem:[#allocation12_spill] sm:$0xff] }
 0x5d5   :  { %5785 = vmatpush3.bf16.msra.mxu0 %v8511_v26  ;;  %5817 = vmatpush3.bf16.msra.mxu1 %v8520_v42 }
 0x5d6   :  { %5787 = vmatprep.subr.bf16.mxu0 %v8858_v14  ;;  %5819 = vmatprep.subr.bf16.mxu1 %v8859_v11 }
 0x5d9   :  { %5789 = vmatpush3.bf16.msra.mxu0 %v8860_v29  ;;  %5821 = vmatpush3.bf16.msra.mxu1 %v8861_v61  ;;  %v5380_v61 = vld [vmem:[%s8830_s9] ss:$0 sm:$0xff] }
 0x5da   :  { %5822 = vmatprep.subr.bf16.mxu0 %v6662_v59 }
 0x688   :  { %v4376_v43 = vpop.f32.mrb[10].mxu0  ;;  %v4447_v0 = vpop.f32.mrb[10].mxu1 }
 0x689   :  { %v4378_v36 = vpop.f32.mrb[11].mxu0  ;;  %v4449_v17 = vpop.f32.mrb[11].mxu1  ;;  %v4601_v38 = vrot.slane %v4376_v43, %v8862_v18  ;;  %v4609_v45 = vrot.slane %v4447_v0, %v8862_v18 }
 0x68a   :  { %v4605_v50 = vrot.slane %v4378_v36, %v8862_v18  ;;  %v4613_v52 = vrot.slane %v4449_v17, %v8862_v18 }
 0x68b   :  { %v4614_v62 = vmul.f32 %v4601_v38, %v8863_v56  ;;  %v4616_v6 = vmul.f32 %v4609_v45, %v8864_v5 }
 0x68c   :  { %v4615_v39 = vmul.f32 %v4605_v50, %v8865_v30  ;;  %v4617_v26 = vmul.f32 %v4613_v52, %v8866_v20 }
 0x68e   :  { %v4522_v49 = vpop.f32.mrb[12].mxu0  ;;  %v4593_v55 = vpop.f32.mrb[12].mxu1 }
 0x68f   :  { %v4621_v12 = vrot.slane %v4522_v49, %v8862_v18  ;;  %v4629_v21 = vrot.slane %v4593_v55, %v8862_v18  ;;  %v4524_v24 = vpop.f32.mrb[13].mxu0  ;;  %v4595_v25 = vpop.f32.mrb[13].mxu1 }
 0x690   :  { %v4625_v42 = vrot.slane %v4524_v24, %v8862_v18  ;;  %v4633_v63 = vrot.slane %v4595_v25, %v8862_v18 }
 0x691   :  { %v4634_v48 = vadd.f32 %v4621_v12, %v4614_v62  ;;  %v4636_v60 = vadd.f32 %v4629_v21, %v4616_v6 }
 0x692   :  { %v4635_v2 = vadd.f32 %v4625_v42, %v4615_v39  ;;  %v4637_v4 = vadd.f32 %v4633_v63, %v4617_v26 }
 0x693   :  { %v4638_v9 = vsub.f32 0.0, %v4634_v48  ;;  %v4640_v10 = vsub.f32 0.0, %v4636_v60 }
 0x694   :  { %v4639_v33 = vsub.f32 0.0, %v4635_v2  ;;  %v4641_v1 = vsub.f32 0.0, %v4637_v4 }
 0x695   :  { %v4642_v27 = vmul.f32 1.442695, %v4638_v9  ;;  %v4646_v41 = vmul.f32 1.442695, %v4640_v10 }
 0x696   :  { %v4644_v34 = vmul.f32 1.442695, %v4639_v33  ;;  %v4648_v37 = vmul.f32 1.442695, %v4641_v1 }
 0x697   :  { %6624 = vpow2.f32 %v4642_v27 }
 0x698   :  { %6626 = vpow2.f32 %v4646_v41 }
 0x699   :  { %6628 = vpow2.f32 %v4644_v34 }
 0x69a   :  { %6630 = vpow2.f32 %v4648_v37 }
 0x6a1   :  { %v6625_v35 = vpop.eup %6624 }
 0x6a2   :  { %v6627_v46 = vpop.eup %6626  ;;  %v4650_v7 = vadd.f32 1.0, %v6625_v35 }
 0x6a3   :  { %v6629_v47 = vpop.eup %6628  ;;  %v4652_v31 = vadd.f32 1.0, %v6627_v46 }
 0x6a4   :  { %v6631_v44 = vpop.eup %6630  ;;  %v4651_v23 = vadd.f32 1.0, %v6629_v47  ;;  %6632 = vrcp.f32 %v4650_v7 }
 0x6a5   :  { %v4653_v28 = vadd.f32 1.0, %v6631_v44 }
 0x6a6   :  { %6634 = vrcp.f32 %v4651_v23 }
 0x6a7   :  { %6636 = vrcp.f32 %v4653_v28 }
 0x6a8   :  { %6638 = vrcp.f32 %v4652_v31 }
 0x6ae   :  { %v6633_v51 = vpop.eup %6632 }
 0x6b0   :  { %v6635_v8 = vpop.eup %6634 }
 0x6b1   :  { %v6637_v53 = vpop.eup %6636  ;;  %4726 = vmatprep.mubr.f32.mxu0 %v6635_v8 }
 0x6b2   :  { %v6639_v57 = vpop.eup %6638  ;;  %4796 = vmatprep.mubr.f32.mxu1 %v6637_v53  ;;  %4727 = vmatmul.mubr.f32.vlgmr.msra.gmra.mrb[14].mxu0 %v6633_v51 }
 0x6b3   :  { %4797 = vmatmul.mubr.f32.vlgmr.msra.gmra.mrb[14].mxu1 %v6639_v57  ;;  %5824 = vmatpush3.bf16.msra.mxu0 %v5823_v54 }
 0x6b4   :  { %5601 = vmatprep.subr.mxu0 %v8857_v15  ;;  %5603 = vmatprep.mubr.msk.f32.mxu0 %vm6663_vm6, %v8857_v15 }
 0x6b7   :  { %5602 = vmatpush3.msk.msra.mxu0 %vm3955_vm4, %v4805_v16 }
 0x785   :  { %v5555_v19 = vpop.f32.mrb[14].mxu0 }
 0x786   :  { %v5590_v32 = vpop.f32.mrb[14].mxu1  ;;  %v5556_v22 = vpop.f32.mrb[15].mxu0 }
 0x787   :  { %v5557_v13 = vadd.f32 %v5556_v22, %v5555_v19  ;;  %v5591_v40 = vpop.f32.mrb[15].mxu1 }
 0x788   :  { %v5592_v14 = vadd.f32 %v5591_v40, %v5590_v32 }
 0x78a   :  { %v4799_v11 = vadd.f32 %v5592_v14, %v5557_v13 }
 0x78c   :  { %v4802_v29 = vmul.f32 0.04, %v4799_v11 }
 0x78e   :  { %5604 = vmatmul.mubr.msk.f32.vlgmr.msra.gmra.mrb[16].mxu0 %vm3951_vm5, %v4802_v29 }
 0x861   :  { %v4885_v43 = vpop.f32.mrb[16].mxu0 }
 0x862   :  { %v4886_v0 = vadd.f32 %v5380_v61, %v4885_v43  ;;  %v5605_v36 = vpop.f32.mrb[17].mxu0 }
 0x864   :  { %v4890_v15 = vsel %vm4889_vm7, %v4886_v0, -inf }
 0x865   :  { %4891 = vmax.xlane.f32.xlu1 %v4890_v15 }
 0x8f2   :  { %v4892_v17 = vpop.xlane.xlu1 %4891 }
 0x8f3   :  { %v4893_v18 = vsub.f32 %v4886_v0, %v4892_v17 }
 0x8f5   :  { %v4894_v38 = vmul.f32 1.442695, %v4893_v18 }
 0x8f7   :  { %6640 = vpow2.f32 %v4894_v38 }
 0x901   :  { %v6641_v45 = vpop.eup %6640 }
 0x902   :  { %v4896_v50 = vsel %vm4889_vm7, %v6641_v45, 0.0 }
 0x903   :  { %4897 = vadd.xlane.f32.xlu0 %v4896_v50 }
 0x990   :  { %v4898_v52 = vpop.xlane.xlu0 %4897 }
 0x991   :  { %6642 = vlog2.f32 %v4898_v52 }
 0x99b   :  { %v6643_v49 = vpop.eup %6642 }
 0x99c   :  { %v4900_v55 = vmul.f32 0.6931472, %v6643_v49 }
 0x99e   :  { %v4901_v56 = vadd.f32 %v4900_v55, %v4892_v17 }
 0x9a0   :  { %v4902_v62 = vsub.f32 %v4886_v0, %v4901_v56 }
 0x9a2   :  { %4903 = vst.msk [vmem:[%s8831_s10] sm:$0xff] %vm4889_vm7, %v4902_v62 }

</bundles_post_ra>
